<compile_context>
chip_gen: v7x
topology: tpu7x:2x2x1
jax: 0.10.0
libtpu: 0.0.40
codegen_flags: <defaults>
</compile_context>

<pallas_src>
import jax
import jax.numpy as jnp
from jax import lax
from jax.experimental import pallas as pl
from jax.experimental.pallas import tpu as pltpu


# ---------------------------------------------------------------------------
# Fused Pallas kernel: [GRU layer] x L  ->  out[skip:]  ->  Linear
# ---------------------------------------------------------------------------
def _make_fused_gru_kernel(num_layers, S, B, H, skip):
    def kernel(*refs):
        x_ref = refs[0]                                          # (S*B, I)
        layer_refs = [refs[1 + 4 * l: 1 + 4 * (l + 1)] for l in range(num_layers)]
        fcw_ref, fcb_ref, out_ref, h_scr = refs[1 + 4 * num_layers:]

        def run_layer(inp, wi_ref, bi_ref, wh_ref, bhn_ref, is_last):
            # Hoisted input projection: ONE (S*B, F) x (F, 3H) matmul covering
            # every timestep.  bi already contains b_ih + b_hh for r,z gates.
            gi = jnp.dot(inp, wi_ref[...],
                         preferred_element_type=jnp.float32) + bi_ref[...]
            wh = wh_ref[...]          # (H, 3H), vreg-resident across steps
            bhn = bhn_ref[...]        # (1, H)  -- b_hh of the n gate only

            h = jnp.zeros((B, H), jnp.float32)
            # Fully-unrolled recurrence (S small & static): LLO scheduler can
            # overlap MXU (hidden matmul), EUP (sigmoid/tanh) and VPU across
            # neighbouring steps.
            for t in range(S):
                lo = t * B
                gi_t = gi[lo:lo + B]                              # (B, 3H)
                gh = jnp.dot(h, wh, preferred_element_type=jnp.float32)
                r = jax.nn.sigmoid(gi_t[:, 0:H] + gh[:, 0:H])
                z = jax.nn.sigmoid(gi_t[:, H:2 * H] + gh[:, H:2 * H])
                n = jnp.tanh(gi_t[:, 2 * H:3 * H]
                             + r * (gh[:, 2 * H:3 * H] + bhn))
                h = n + z * (h - n)                               # (1-z)n + zh
                if is_last:
                    # FC only consumes t >= skip: skip the dead stores.
                    if t >= skip:
                        o = (t - skip) * B
                        h_scr[o:o + B, :] = h
                else:
                    h_scr[lo:lo + B, :] = h                       # store h_t

        # Layer 0 consumes the (already flattened) input sequence.
        run_layer(x_ref[...], *layer_refs[0], is_last=(num_layers == 1))
        # Deeper layers consume the previous layer's full hidden sequence,
        # loaded once BEFORE this layer's own stores overwrite the scratch
        # (program order of load-then-store guarantees correctness).
        for l in range(1, num_layers):
            run_layer(h_scr[...], *layer_refs[l],
                      is_last=(l == num_layers - 1))

        # FC epilogue on timesteps >= skip, fused into the same kernel.
        tail = h_scr[0:(S - skip) * B, :]                         # ((S-skip)*B, H)
        out_ref[...] = jnp.dot(tail, fcw_ref[...],
                               preferred_element_type=jnp.float32) + fcb_ref[...]

    return kernel


# ---------------------------------------------------------------------------
# Wrapper
# ---------------------------------------------------------------------------
def gru_model_forward(x, layer_params, fc_w, fc_b, skip=12):
    """Equivalent of gruModel.forward: GRU stack -> out[12:] -> Linear.

    x: (S, B, I) float32.  Returns (S - skip, B, O) float32.
    """
    S, B, I = x.shape
    H = layer_params[0]["wh"].shape[0]
    O = fc_w.shape[1]
    L = len(layer_params)

    x2 = x.reshape(S * B, I)          # time-major flatten (metadata-only)

    args = [x2]
    for p in layer_params:
        # Exact PyTorch-GRU fold: b_hh of r,z gates moves into b_ih (they are
        # only ever added together); b_hh of n stays inside r * (Wh h + b_hn).
        bi_f = p["bi"].at[:, 0:2 * H].add(p["bh"][:, 0:2 * H])
        bhn = p["bh"][:, 2 * H:3 * H]
        args += [p["wi"], bi_f, p["wh"], bhn]
    args += [fc_w, fc_b]

    vmem = pl.BlockSpec(memory_space=pltpu.MemorySpace.VMEM)
    out2 = pl.pallas_call(
        _make_fused_gru_kernel(L, S, B, H, skip),
        out_shape=jax.ShapeDtypeStruct(((S - skip) * B, O), jnp.float32),
        in_specs=[vmem] * len(args),
        out_specs=vmem,
        scratch_shapes=[pltpu.VMEM((S * B, H), jnp.float32)],   # hidden sequence
    )(*args)
    return out2.reshape(S - skip, B, O)


# ---------------------------------------------------------------------------
# Deterministic parameter init (PyTorch-style uniform(-1/sqrt(H), 1/sqrt(H)))
# with fused-gate packing: wi (F, 3H), wh (H, 3H), bi/bh (1, 3H); order r|z|n.
# ---------------------------------------------------------------------------
def init_params(key, in_dim, hidden_dim, out_dim, num_layers):
    k = 1.0 / jnp.sqrt(jnp.float32(hidden_dim))
    layers = []
    for l in range(num_layers):
        in_l = in_dim if l == 0 else hidden_dim
        key, k1, k2, k3, k4 = jax.random.split(key, 5)
        w_ih = jax.random.uniform(k1, (3 * hidden_dim, in_l), jnp.float32, -k, k)
        w_hh = jax.random.uniform(k2, (3 * hidden_dim, hidden_dim), jnp.float32, -k, k)
        b_ih = jax.random.uniform(k3, (3 * hidden_dim,), jnp.float32, -k, k)
        b_hh = jax.random.uniform(k4, (3 * hidden_dim,), jnp.float32, -k, k)
        layers.append({
            "wi": w_ih.T,                              # (in_l, 3H): x @ wi == x @ W_ih^T
            "bi": b_ih.reshape(1, 3 * hidden_dim),
            "wh": w_hh.T,                              # (H, 3H)
            "bh": b_hh.reshape(1, 3 * hidden_dim),
        })
    key, k5, k6 = jax.random.split(key, 3)
    fc_w = jax.random.uniform(k5, (hidden_dim, out_dim), jnp.float32, -k, k)
    fc_b = jax.random.uniform(k6, (1, out_dim), jnp.float32, -k, k)
    return layers, fc_w, fc_b


# ---------------------------------------------------------------------------
# Pure-JAX reference (for correctness check) -- uses the UNfolded biases.
# ---------------------------------------------------------------------------
def gru_model_ref(x, layer_params, fc_w, fc_b):
    h_all = x
    B = x.shape[1]
    for p in layer_params:
        H = p["wh"].shape[0]

        def step(h, x_t, p=p, H=H):
            gi = x_t @ p["wi"] + p["bi"][0]
            gh = h @ p["wh"] + p["bh"][0]
            r = jax.nn.sigmoid(gi[:, 0:H] + gh[:, 0:H])
            z = jax.nn.sigmoid(gi[:, H:2 * H] + gh[:, H:2 * H])
            n = jnp.tanh(gi[:, 2 * H:3 * H] + r * gh[:, 2 * H:3 * H])
            h_new = (1.0 - z) * n + z * h
            return h_new, h_new

        h0 = jnp.zeros((B, H), jnp.float32)
        _, h_all = lax.scan(step, h0, h_all)
    out = h_all[12:]
    return out @ fc_w + fc_b


# ---------------------------------------------------------------------------
# Main
# ---------------------------------------------------------------------------
if __name__ == "__main__":
    SEQ, BATCH, IN_DIM, HIDDEN, OUT_DIM, LAYERS = 16, 2, 4, 32, 1, 2

    key = jax.random.PRNGKey(0)
    key, xkey, pkey = jax.random.split(key, 3)
    x = jax.random.normal(xkey, (SEQ, BATCH, IN_DIM), jnp.float32)

    layer_params, fc_w, fc_b = init_params(pkey, IN_DIM, HIDDEN, OUT_DIM, LAYERS)

    fwd = jax.jit(gru_model_forward)
    out = jax.block_until_ready(fwd(x, layer_params, fc_w, fc_b))

    ref = jax.block_until_ready(gru_model_ref(x, layer_params, fc_w, fc_b))
    assert out.shape == (SEQ - 12, BATCH, OUT_DIM), out.shape
    assert jnp.allclose(out, ref, atol=1e-5, rtol=1e-5), float(jnp.abs(out - ref).max())

    print("KERNEL_OK")
</pallas_src>

<mosaic_0001>
module attributes {stable_mosaic.version = 11 : i64} {
  func.func @kernel(%arg0: memref<32x4xf32, #tpu.memory_space<vmem>>, %arg1: memref<4x96xf32, #tpu.memory_space<vmem>>, %arg2: memref<1x96xf32, #tpu.memory_space<vmem>>, %arg3: memref<32x96xf32, #tpu.memory_space<vmem>>, %arg4: memref<1x32xf32, #tpu.memory_space<vmem>>, %arg5: memref<32x96xf32, #tpu.memory_space<vmem>>, %arg6: memref<1x96xf32, #tpu.memory_space<vmem>>, %arg7: memref<32x96xf32, #tpu.memory_space<vmem>>, %arg8: memref<1x32xf32, #tpu.memory_space<vmem>>, %arg9: memref<32x1xf32, #tpu.memory_space<vmem>>, %arg10: memref<1x1xf32, #tpu.memory_space<vmem>>, %arg11: memref<8x1xf32, #tpu.memory_space<vmem>>, %arg12: memref<32x32xf32, #tpu.memory_space<vmem>>) attributes {dimension_semantics = [], scalar_prefetch = 0 : i64, scratch_operands = 1 : i64, tpu.core_type = #tpu.core_type<tc>} {
    %c0 = arith.constant 0 : index
    %c0_0 = arith.constant 0 : index
    %0 = vector.load %arg0[%c0, %c0_0] : memref<32x4xf32, #tpu.memory_space<vmem>>, vector<32x4xf32>
    %c0_1 = arith.constant 0 : index
    %c0_2 = arith.constant 0 : index
    %1 = vector.load %arg1[%c0_1, %c0_2] : memref<4x96xf32, #tpu.memory_space<vmem>>, vector<4x96xf32>
    %cst = arith.constant dense<0.000000e+00> : vector<32x96xf32>
    %2 = tpu.matmul %0, %1, %cst {dimension_numbers = #tpu.dot_dimension_numbers<[1], [0], [0], [1], [0, 0, 1, 1], [], []>} : vector<32x4xf32>, vector<4x96xf32>, vector<32x96xf32> -> vector<32x96xf32>
    %c0_3 = arith.constant 0 : index
    %c0_4 = arith.constant 0 : index
    %3 = vector.load %arg2[%c0_3, %c0_4] : memref<1x96xf32, #tpu.memory_space<vmem>>, vector<1x96xf32>
    %4 = vector.broadcast %3 : vector<1x96xf32> to vector<32x96xf32>
    %5 = arith.addf %2, %4 : vector<32x96xf32>
    %c0_5 = arith.constant 0 : index
    %c0_6 = arith.constant 0 : index
    %6 = vector.load %arg3[%c0_5, %c0_6] : memref<32x96xf32, #tpu.memory_space<vmem>>, vector<32x96xf32>
    %c0_7 = arith.constant 0 : index
    %c0_8 = arith.constant 0 : index
    %7 = vector.load %arg4[%c0_7, %c0_8] : memref<1x32xf32, #tpu.memory_space<vmem>>, vector<1x32xf32>
    %cst_9 = arith.constant 0.000000e+00 : f32
    %8 = vector.broadcast %cst_9 : f32 to vector<2x32xf32>
    %9 = vector.extract_strided_slice %5 {offsets = [0, 0], sizes = [2, 96], strides = [1, 1]} : vector<32x96xf32> to vector<2x96xf32>
    %cst_10 = arith.constant dense<0.000000e+00> : vector<2x96xf32>
    %10 = tpu.matmul %8, %6, %cst_10 {dimension_numbers = #tpu.dot_dimension_numbers<[1], [0], [0], [1], [0, 0, 1, 1], [], []>} : vector<2x32xf32>, vector<32x96xf32>, vector<2x96xf32> -> vector<2x96xf32>
    %11 = vector.extract_strided_slice %9 {offsets = [0, 0], sizes = [2, 32], strides = [1, 1]} : vector<2x96xf32> to vector<2x32xf32>
    %12 = vector.extract_strided_slice %10 {offsets = [0, 0], sizes = [2, 32], strides = [1, 1]} : vector<2x96xf32> to vector<2x32xf32>
    %13 = arith.addf %11, %12 : vector<2x32xf32>
    %14 = arith.negf %13 : vector<2x32xf32>
    %15 = math.exp %14 : vector<2x32xf32>
    %cst_11 = arith.constant 1.000000e+00 : f32
    %16 = vector.broadcast %cst_11 : f32 to vector<2x32xf32>
    %17 = arith.addf %16, %15 : vector<2x32xf32>
    %18 = arith.divf %16, %17 : vector<2x32xf32>
    %19 = vector.extract_strided_slice %9 {offsets = [0, 32], sizes = [2, 32], strides = [1, 1]} : vector<2x96xf32> to vector<2x32xf32>
    %20 = vector.extract_strided_slice %10 {offsets = [0, 32], sizes = [2, 32], strides = [1, 1]} : vector<2x96xf32> to vector<2x32xf32>
    %21 = arith.addf %19, %20 : vector<2x32xf32>
    %22 = arith.negf %21 : vector<2x32xf32>
    %23 = math.exp %22 : vector<2x32xf32>
    %cst_12 = arith.constant 1.000000e+00 : f32
    %24 = vector.broadcast %cst_12 : f32 to vector<2x32xf32>
    %25 = arith.addf %24, %23 : vector<2x32xf32>
    %26 = arith.divf %24, %25 : vector<2x32xf32>
    %27 = vector.extract_strided_slice %9 {offsets = [0, 64], sizes = [2, 32], strides = [1, 1]} : vector<2x96xf32> to vector<2x32xf32>
    %28 = vector.extract_strided_slice %10 {offsets = [0, 64], sizes = [2, 32], strides = [1, 1]} : vector<2x96xf32> to vector<2x32xf32>
    %29 = vector.broadcast %7 : vector<1x32xf32> to vector<2x32xf32>
    %30 = arith.addf %28, %29 : vector<2x32xf32>
    %31 = arith.mulf %18, %30 : vector<2x32xf32>
    %32 = arith.addf %27, %31 : vector<2x32xf32>
    %33 = math.tanh %32 : vector<2x32xf32>
    %34 = arith.subf %8, %33 : vector<2x32xf32>
    %35 = arith.mulf %26, %34 : vector<2x32xf32>
    %36 = arith.addf %33, %35 : vector<2x32xf32>
    %c0_13 = arith.constant 0 : index
    %c0_14 = arith.constant 0 : index
    %37 = vector.load %arg12[%c0_13, %c0_14] : memref<32x32xf32, #tpu.memory_space<vmem>>, vector<2x32xf32>
    tpu.vector_store %arg12[%c0_13, %c0_14], %36 {strides = array<i32>} : memref<32x32xf32, #tpu.memory_space<vmem>>, vector<2x32xf32>,
    %38 = vector.extract_strided_slice %5 {offsets = [2, 0], sizes = [2, 96], strides = [1, 1]} : vector<32x96xf32> to vector<2x96xf32>
    %cst_15 = arith.constant dense<0.000000e+00> : vector<2x96xf32>
    %39 = tpu.matmul %36, %6, %cst_15 {dimension_numbers = #tpu.dot_dimension_numbers<[1], [0], [0], [1], [0, 0, 1, 1], [], []>} : vector<2x32xf32>, vector<32x96xf32>, vector<2x96xf32> -> vector<2x96xf32>
    %40 = vector.extract_strided_slice %38 {offsets = [0, 0], sizes = [2, 32], strides = [1, 1]} : vector<2x96xf32> to vector<2x32xf32>
    %41 = vector.extract_strided_slice %39 {offsets = [0, 0], sizes = [2, 32], strides = [1, 1]} : vector<2x96xf32> to vector<2x32xf32>
    %42 = arith.addf %40, %41 : vector<2x32xf32>
    %43 = arith.negf %42 : vector<2x32xf32>
    %44 = math.exp %43 : vector<2x32xf32>
    %cst_16 = arith.constant 1.000000e+00 : f32
    %45 = vector.broadcast %cst_16 : f32 to vector<2x32xf32>
    %46 = arith.addf %45, %44 : vector<2x32xf32>
    %47 = arith.divf %45, %46 : vector<2x32xf32>
    %48 = vector.extract_strided_slice %38 {offsets = [0, 32], sizes = [2, 32], strides = [1, 1]} : vector<2x96xf32> to vector<2x32xf32>
    %49 = vector.extract_strided_slice %39 {offsets = [0, 32], sizes = [2, 32], strides = [1, 1]} : vector<2x96xf32> to vector<2x32xf32>
    %50 = arith.addf %48, %49 : vector<2x32xf32>
    %51 = arith.negf %50 : vector<2x32xf32>
    %52 = math.exp %51 : vector<2x32xf32>
    %cst_17 = arith.constant 1.000000e+00 : f32
    %53 = vector.broadcast %cst_17 : f32 to vector<2x32xf32>
    %54 = arith.addf %53, %52 : vector<2x32xf32>
    %55 = arith.divf %53, %54 : vector<2x32xf32>
    %56 = vector.extract_strided_slice %38 {offsets = [0, 64], sizes = [2, 32], strides = [1, 1]} : vector<2x96xf32> to vector<2x32xf32>
    %57 = vector.extract_strided_slice %39 {offsets = [0, 64], sizes = [2, 32], strides = [1, 1]} : vector<2x96xf32> to vector<2x32xf32>
    %58 = vector.broadcast %7 : vector<1x32xf32> to vector<2x32xf32>
    %59 = arith.addf %57, %58 : vector<2x32xf32>
    %60 = arith.mulf %47, %59 : vector<2x32xf32>
    %61 = arith.addf %56, %60 : vector<2x32xf32>
    %62 = math.tanh %61 : vector<2x32xf32>
    %63 = arith.subf %36, %62 : vector<2x32xf32>
    %64 = arith.mulf %55, %63 : vector<2x32xf32>
    %65 = arith.addf %62, %64 : vector<2x32xf32>
    %c2 = arith.constant 2 : index
    %c0_18 = arith.constant 0 : index
    %66 = vector.load %arg12[%c2, %c0_18] : memref<32x32xf32, #tpu.memory_space<vmem>>, vector<2x32xf32>
    tpu.vector_store %arg12[%c2, %c0_18], %65 {strides = array<i32>} : memref<32x32xf32, #tpu.memory_space<vmem>>, vector<2x32xf32>,
    %67 = vector.extract_strided_slice %5 {offsets = [4, 0], sizes = [2, 96], strides = [1, 1]} : vector<32x96xf32> to vector<2x96xf32>
    %cst_19 = arith.constant dense<0.000000e+00> : vector<2x96xf32>
    %68 = tpu.matmul %65, %6, %cst_19 {dimension_numbers = #tpu.dot_dimension_numbers<[1], [0], [0], [1], [0, 0, 1, 1], [], []>} : vector<2x32xf32>, vector<32x96xf32>, vector<2x96xf32> -> vector<2x96xf32>
    %69 = vector.extract_strided_slice %67 {offsets = [0, 0], sizes = [2, 32], strides = [1, 1]} : vector<2x96xf32> to vector<2x32xf32>
    %70 = vector.extract_strided_slice %68 {offsets = [0, 0], sizes = [2, 32], strides = [1, 1]} : vector<2x96xf32> to vector<2x32xf32>
    %71 = arith.addf %69, %70 : vector<2x32xf32>
    %72 = arith.negf %71 : vector<2x32xf32>
    %73 = math.exp %72 : vector<2x32xf32>
    %cst_20 = arith.constant 1.000000e+00 : f32
    %74 = vector.broadcast %cst_20 : f32 to vector<2x32xf32>
    %75 = arith.addf %74, %73 : vector<2x32xf32>
    %76 = arith.divf %74, %75 : vector<2x32xf32>
    %77 = vector.extract_strided_slice %67 {offsets = [0, 32], sizes = [2, 32], strides = [1, 1]} : vector<2x96xf32> to vector<2x32xf32>
    %78 = vector.extract_strided_slice %68 {offsets = [0, 32], sizes = [2, 32], strides = [1, 1]} : vector<2x96xf32> to vector<2x32xf32>
    %79 = arith.addf %77, %78 : vector<2x32xf32>
    %80 = arith.negf %79 : vector<2x32xf32>
    %81 = math.exp %80 : vector<2x32xf32>
    %cst_21 = arith.constant 1.000000e+00 : f32
    %82 = vector.broadcast %cst_21 : f32 to vector<2x32xf32>
    %83 = arith.addf %82, %81 : vector<2x32xf32>
    %84 = arith.divf %82, %83 : vector<2x32xf32>
    %85 = vector.extract_strided_slice %67 {offsets = [0, 64], sizes = [2, 32], strides = [1, 1]} : vector<2x96xf32> to vector<2x32xf32>
    %86 = vector.extract_strided_slice %68 {offsets = [0, 64], sizes = [2, 32], strides = [1, 1]} : vector<2x96xf32> to vector<2x32xf32>
    %87 = vector.broadcast %7 : vector<1x32xf32> to vector<2x32xf32>
    %88 = arith.addf %86, %87 : vector<2x32xf32>
    %89 = arith.mulf %76, %88 : vector<2x32xf32>
    %90 = arith.addf %85, %89 : vector<2x32xf32>
    %91 = math.tanh %90 : vector<2x32xf32>
    %92 = arith.subf %65, %91 : vector<2x32xf32>
    %93 = arith.mulf %84, %92 : vector<2x32xf32>
    %94 = arith.addf %91, %93 : vector<2x32xf32>
    %c4 = arith.constant 4 : index
    %c0_22 = arith.constant 0 : index
    %95 = vector.load %arg12[%c4, %c0_22] : memref<32x32xf32, #tpu.memory_space<vmem>>, vector<2x32xf32>
    tpu.vector_store %arg12[%c4, %c0_22], %94 {strides = array<i32>} : memref<32x32xf32, #tpu.memory_space<vmem>>, vector<2x32xf32>,
    %96 = vector.extract_strided_slice %5 {offsets = [6, 0], sizes = [2, 96], strides = [1, 1]} : vector<32x96xf32> to vector<2x96xf32>
    %cst_23 = arith.constant dense<0.000000e+00> : vector<2x96xf32>
    %97 = tpu.matmul %94, %6, %cst_23 {dimension_numbers = #tpu.dot_dimension_numbers<[1], [0], [0], [1], [0, 0, 1, 1], [], []>} : vector<2x32xf32>, vector<32x96xf32>, vector<2x96xf32> -> vector<2x96xf32>
    %98 = vector.extract_strided_slice %96 {offsets = [0, 0], sizes = [2, 32], strides = [1, 1]} : vector<2x96xf32> to vector<2x32xf32>
    %99 = vector.extract_strided_slice %97 {offsets = [0, 0], sizes = [2, 32], strides = [1, 1]} : vector<2x96xf32> to vector<2x32xf32>
    %100 = arith.addf %98, %99 : vector<2x32xf32>
    %101 = arith.negf %100 : vector<2x32xf32>
    %102 = math.exp %101 : vector<2x32xf32>
    %cst_24 = arith.constant 1.000000e+00 : f32
    %103 = vector.broadcast %cst_24 : f32 to vector<2x32xf32>
    %104 = arith.addf %103, %102 : vector<2x32xf32>
    %105 = arith.divf %103, %104 : vector<2x32xf32>
    %106 = vector.extract_strided_slice %96 {offsets = [0, 32], sizes = [2, 32], strides = [1, 1]} : vector<2x96xf32> to vector<2x32xf32>
    %107 = vector.extract_strided_slice %97 {offsets = [0, 32], sizes = [2, 32], strides = [1, 1]} : vector<2x96xf32> to vector<2x32xf32>
    %108 = arith.addf %106, %107 : vector<2x32xf32>
    %109 = arith.negf %108 : vector<2x32xf32>
    %110 = math.exp %109 : vector<2x32xf32>
    %cst_25 = arith.constant 1.000000e+00 : f32
    %111 = vector.broadcast %cst_25 : f32 to vector<2x32xf32>
    %112 = arith.addf %111, %110 : vector<2x32xf32>
    %113 = arith.divf %111, %112 : vector<2x32xf32>
    %114 = vector.extract_strided_slice %96 {offsets = [0, 64], sizes = [2, 32], strides = [1, 1]} : vector<2x96xf32> to vector<2x32xf32>
    %115 = vector.extract_strided_slice %97 {offsets = [0, 64], sizes = [2, 32], strides = [1, 1]} : vector<2x96xf32> to vector<2x32xf32>
    %116 = vector.broadcast %7 : vector<1x32xf32> to vector<2x32xf32>
    %117 = arith.addf %115, %116 : vector<2x32xf32>
    %118 = arith.mulf %105, %117 : vector<2x32xf32>
    %119 = arith.addf %114, %118 : vector<2x32xf32>
    %120 = math.tanh %119 : vector<2x32xf32>
    %121 = arith.subf %94, %120 : vector<2x32xf32>
    %122 = arith.mulf %113, %121 : vector<2x32xf32>
    %123 = arith.addf %120, %122 : vector<2x32xf32>
    %c6 = arith.constant 6 : index
    %c0_26 = arith.constant 0 : index
    %124 = vector.load %arg12[%c6, %c0_26] : memref<32x32xf32, #tpu.memory_space<vmem>>, vector<2x32xf32>
    tpu.vector_store %arg12[%c6, %c0_26], %123 {strides = array<i32>} : memref<32x32xf32, #tpu.memory_space<vmem>>, vector<2x32xf32>,
    %125 = vector.extract_strided_slice %5 {offsets = [8, 0], sizes = [2, 96], strides = [1, 1]} : vector<32x96xf32> to vector<2x96xf32>
    %cst_27 = arith.constant dense<0.000000e+00> : vector<2x96xf32>
    %126 = tpu.matmul %123, %6, %cst_27 {dimension_numbers = #tpu.dot_dimension_numbers<[1], [0], [0], [1], [0, 0, 1, 1], [], []>} : vector<2x32xf32>, vector<32x96xf32>, vector<2x96xf32> -> vector<2x96xf32>
    %127 = vector.extract_strided_slice %125 {offsets = [0, 0], sizes = [2, 32], strides = [1, 1]} : vector<2x96xf32> to vector<2x32xf32>
    %128 = vector.extract_strided_slice %126 {offsets = [0, 0], sizes = [2, 32], strides = [1, 1]} : vector<2x96xf32> to vector<2x32xf32>
    %129 = arith.addf %127, %128 : vector<2x32xf32>
    %130 = arith.negf %129 : vector<2x32xf32>
    %131 = math.exp %130 : vector<2x32xf32>
    %cst_28 = arith.constant 1.000000e+00 : f32
    %132 = vector.broadcast %cst_28 : f32 to vector<2x32xf32>
    %133 = arith.addf %132, %131 : vector<2x32xf32>
    %134 = arith.divf %132, %133 : vector<2x32xf32>
    %135 = vector.extract_strided_slice %125 {offsets = [0, 32], sizes = [2, 32], strides = [1, 1]} : vector<2x96xf32> to vector<2x32xf32>
    %136 = vector.extract_strided_slice %126 {offsets = [0, 32], sizes = [2, 32], strides = [1, 1]} : vector<2x96xf32> to vector<2x32xf32>
    %137 = arith.addf %135, %136 : vector<2x32xf32>
    %138 = arith.negf %137 : vector<2x32xf32>
    %139 = math.exp %138 : vector<2x32xf32>
    %cst_29 = arith.constant 1.000000e+00 : f32
    %140 = vector.broadcast %cst_29 : f32 to vector<2x32xf32>
    %141 = arith.addf %140, %139 : vector<2x32xf32>
    %142 = arith.divf %140, %141 : vector<2x32xf32>
    %143 = vector.extract_strided_slice %125 {offsets = [0, 64], sizes = [2, 32], strides = [1, 1]} : vector<2x96xf32> to vector<2x32xf32>
    %144 = vector.extract_strided_slice %126 {offsets = [0, 64], sizes = [2, 32], strides = [1, 1]} : vector<2x96xf32> to vector<2x32xf32>
    %145 = vector.broadcast %7 : vector<1x32xf32> to vector<2x32xf32>
    %146 = arith.addf %144, %145 : vector<2x32xf32>
    %147 = arith.mulf %134, %146 : vector<2x32xf32>
    %148 = arith.addf %143, %147 : vector<2x32xf32>
    %149 = math.tanh %148 : vector<2x32xf32>
    %150 = arith.subf %123, %149 : vector<2x32xf32>
    %151 = arith.mulf %142, %150 : vector<2x32xf32>
    %152 = arith.addf %149, %151 : vector<2x32xf32>
    %c8 = arith.constant 8 : index
    %c0_30 = arith.constant 0 : index
    %153 = vector.load %arg12[%c8, %c0_30] : memref<32x32xf32, #tpu.memory_space<vmem>>, vector<2x32xf32>
    tpu.vector_store %arg12[%c8, %c0_30], %152 {strides = array<i32>} : memref<32x32xf32, #tpu.memory_space<vmem>>, vector<2x32xf32>,
    %154 = vector.extract_strided_slice %5 {offsets = [10, 0], sizes = [2, 96], strides = [1, 1]} : vector<32x96xf32> to vector<2x96xf32>
    %cst_31 = arith.constant dense<0.000000e+00> : vector<2x96xf32>
    %155 = tpu.matmul %152, %6, %cst_31 {dimension_numbers = #tpu.dot_dimension_numbers<[1], [0], [0], [1], [0, 0, 1, 1], [], []>} : vector<2x32xf32>, vector<32x96xf32>, vector<2x96xf32> -> vector<2x96xf32>
    %156 = vector.extract_strided_slice %154 {offsets = [0, 0], sizes = [2, 32], strides = [1, 1]} : vector<2x96xf32> to vector<2x32xf32>
    %157 = vector.extract_strided_slice %155 {offsets = [0, 0], sizes = [2, 32], strides = [1, 1]} : vector<2x96xf32> to vector<2x32xf32>
    %158 = arith.addf %156, %157 : vector<2x32xf32>
    %159 = arith.negf %158 : vector<2x32xf32>
    %160 = math.exp %159 : vector<2x32xf32>
    %cst_32 = arith.constant 1.000000e+00 : f32
    %161 = vector.broadcast %cst_32 : f32 to vector<2x32xf32>
    %162 = arith.addf %161, %160 : vector<2x32xf32>
    %163 = arith.divf %161, %162 : vector<2x32xf32>
    %164 = vector.extract_strided_slice %154 {offsets = [0, 32], sizes = [2, 32], strides = [1, 1]} : vector<2x96xf32> to vector<2x32xf32>
    %165 = vector.extract_strided_slice %155 {offsets = [0, 32], sizes = [2, 32], strides = [1, 1]} : vector<2x96xf32> to vector<2x32xf32>
    %166 = arith.addf %164, %165 : vector<2x32xf32>
    %167 = arith.negf %166 : vector<2x32xf32>
    %168 = math.exp %167 : vector<2x32xf32>
    %cst_33 = arith.constant 1.000000e+00 : f32
    %169 = vector.broadcast %cst_33 : f32 to vector<2x32xf32>
    %170 = arith.addf %169, %168 : vector<2x32xf32>
    %171 = arith.divf %169, %170 : vector<2x32xf32>
    %172 = vector.extract_strided_slice %154 {offsets = [0, 64], sizes = [2, 32], strides = [1, 1]} : vector<2x96xf32> to vector<2x32xf32>
    %173 = vector.extract_strided_slice %155 {offsets = [0, 64], sizes = [2, 32], strides = [1, 1]} : vector<2x96xf32> to vector<2x32xf32>
    %174 = vector.broadcast %7 : vector<1x32xf32> to vector<2x32xf32>
    %175 = arith.addf %173, %174 : vector<2x32xf32>
    %176 = arith.mulf %163, %175 : vector<2x32xf32>
    %177 = arith.addf %172, %176 : vector<2x32xf32>
    %178 = math.tanh %177 : vector<2x32xf32>
    %179 = arith.subf %152, %178 : vector<2x32xf32>
    %180 = arith.mulf %171, %179 : vector<2x32xf32>
    %181 = arith.addf %178, %180 : vector<2x32xf32>
    %c10 = arith.constant 10 : index
    %c0_34 = arith.constant 0 : index
    %182 = vector.load %arg12[%c10, %c0_34] : memref<32x32xf32, #tpu.memory_space<vmem>>, vector<2x32xf32>
    tpu.vector_store %arg12[%c10, %c0_34], %181 {strides = array<i32>} : memref<32x32xf32, #tpu.memory_space<vmem>>, vector<2x32xf32>,
    %183 = vector.extract_strided_slice %5 {offsets = [12, 0], sizes = [2, 96], strides = [1, 1]} : vector<32x96xf32> to vector<2x96xf32>
    %cst_35 = arith.constant dense<0.000000e+00> : vector<2x96xf32>
    %184 = tpu.matmul %181, %6, %cst_35 {dimension_numbers = #tpu.dot_dimension_numbers<[1], [0], [0], [1], [0, 0, 1, 1], [], []>} : vector<2x32xf32>, vector<32x96xf32>, vector<2x96xf32> -> vector<2x96xf32>
    %185 = vector.extract_strided_slice %183 {offsets = [0, 0], sizes = [2, 32], strides = [1, 1]} : vector<2x96xf32> to vector<2x32xf32>
    %186 = vector.extract_strided_slice %184 {offsets = [0, 0], sizes = [2, 32], strides = [1, 1]} : vector<2x96xf32> to vector<2x32xf32>
    %187 = arith.addf %185, %186 : vector<2x32xf32>
    %188 = arith.negf %187 : vector<2x32xf32>
    %189 = math.exp %188 : vector<2x32xf32>
    %cst_36 = arith.constant 1.000000e+00 : f32
    %190 = vector.broadcast %cst_36 : f32 to vector<2x32xf32>
    %191 = arith.addf %190, %189 : vector<2x32xf32>
    %192 = arith.divf %190, %191 : vector<2x32xf32>
    %193 = vector.extract_strided_slice %183 {offsets = [0, 32], sizes = [2, 32], strides = [1, 1]} : vector<2x96xf32> to vector<2x32xf32>
    %194 = vector.extract_strided_slice %184 {offsets = [0, 32], sizes = [2, 32], strides = [1, 1]} : vector<2x96xf32> to vector<2x32xf32>
    %195 = arith.addf %193, %194 : vector<2x32xf32>
    %196 = arith.negf %195 : vector<2x32xf32>
    %197 = math.exp %196 : vector<2x32xf32>
    %cst_37 = arith.constant 1.000000e+00 : f32
    %198 = vector.broadcast %cst_37 : f32 to vector<2x32xf32>
    %199 = arith.addf %198, %197 : vector<2x32xf32>
    %200 = arith.divf %198, %199 : vector<2x32xf32>
    %201 = vector.extract_strided_slice %183 {offsets = [0, 64], sizes = [2, 32], strides = [1, 1]} : vector<2x96xf32> to vector<2x32xf32>
    %202 = vector.extract_strided_slice %184 {offsets = [0, 64], sizes = [2, 32], strides = [1, 1]} : vector<2x96xf32> to vector<2x32xf32>
    %203 = vector.broadcast %7 : vector<1x32xf32> to vector<2x32xf32>
    %204 = arith.addf %202, %203 : vector<2x32xf32>
    %205 = arith.mulf %192, %204 : vector<2x32xf32>
    %206 = arith.addf %201, %205 : vector<2x32xf32>
    %207 = math.tanh %206 : vector<2x32xf32>
    %208 = arith.subf %181, %207 : vector<2x32xf32>
    %209 = arith.mulf %200, %208 : vector<2x32xf32>
    %210 = arith.addf %207, %209 : vector<2x32xf32>
    %c12 = arith.constant 12 : index
    %c0_38 = arith.constant 0 : index
    %211 = vector.load %arg12[%c12, %c0_38] : memref<32x32xf32, #tpu.memory_space<vmem>>, vector<2x32xf32>
    tpu.vector_store %arg12[%c12, %c0_38], %210 {strides = array<i32>} : memref<32x32xf32, #tpu.memory_space<vmem>>, vector<2x32xf32>,
    %212 = vector.extract_strided_slice %5 {offsets = [14, 0], sizes = [2, 96], strides = [1, 1]} : vector<32x96xf32> to vector<2x96xf32>
    %cst_39 = arith.constant dense<0.000000e+00> : vector<2x96xf32>
    %213 = tpu.matmul %210, %6, %cst_39 {dimension_numbers = #tpu.dot_dimension_numbers<[1], [0], [0], [1], [0, 0, 1, 1], [], []>} : vector<2x32xf32>, vector<32x96xf32>, vector<2x96xf32> -> vector<2x96xf32>
    %214 = vector.extract_strided_slice %212 {offsets = [0, 0], sizes = [2, 32], strides = [1, 1]} : vector<2x96xf32> to vector<2x32xf32>
    %215 = vector.extract_strided_slice %213 {offsets = [0, 0], sizes = [2, 32], strides = [1, 1]} : vector<2x96xf32> to vector<2x32xf32>
    %216 = arith.addf %214, %215 : vector<2x32xf32>
    %217 = arith.negf %216 : vector<2x32xf32>
    %218 = math.exp %217 : vector<2x32xf32>
    %cst_40 = arith.constant 1.000000e+00 : f32
    %219 = vector.broadcast %cst_40 : f32 to vector<2x32xf32>
    %220 = arith.addf %219, %218 : vector<2x32xf32>
    %221 = arith.divf %219, %220 : vector<2x32xf32>
    %222 = vector.extract_strided_slice %212 {offsets = [0, 32], sizes = [2, 32], strides = [1, 1]} : vector<2x96xf32> to vector<2x32xf32>
    %223 = vector.extract_strided_slice %213 {offsets = [0, 32], sizes = [2, 32], strides = [1, 1]} : vector<2x96xf32> to vector<2x32xf32>
    %224 = arith.addf %222, %223 : vector<2x32xf32>
    %225 = arith.negf %224 : vector<2x32xf32>
    %226 = math.exp %225 : vector<2x32xf32>
    %cst_41 = arith.constant 1.000000e+00 : f32
    %227 = vector.broadcast %cst_41 : f32 to vector<2x32xf32>
    %228 = arith.addf %227, %226 : vector<2x32xf32>
    %229 = arith.divf %227, %228 : vector<2x32xf32>
    %230 = vector.extract_strided_slice %212 {offsets = [0, 64], sizes = [2, 32], strides = [1, 1]} : vector<2x96xf32> to vector<2x32xf32>
    %231 = vector.extract_strided_slice %213 {offsets = [0, 64], sizes = [2, 32], strides = [1, 1]} : vector<2x96xf32> to vector<2x32xf32>
    %232 = vector.broadcast %7 : vector<1x32xf32> to vector<2x32xf32>
    %233 = arith.addf %231, %232 : vector<2x32xf32>
    %234 = arith.mulf %221, %233 : vector<2x32xf32>
    %235 = arith.addf %230, %234 : vector<2x32xf32>
    %236 = math.tanh %235 : vector<2x32xf32>
    %237 = arith.subf %210, %236 : vector<2x32xf32>
    %238 = arith.mulf %229, %237 : vector<2x32xf32>
    %239 = arith.addf %236, %238 : vector<2x32xf32>
    %c14 = arith.constant 14 : index
    %c0_42 = arith.constant 0 : index
    %240 = vector.load %arg12[%c14, %c0_42] : memref<32x32xf32, #tpu.memory_space<vmem>>, vector<2x32xf32>
    tpu.vector_store %arg12[%c14, %c0_42], %239 {strides = array<i32>} : memref<32x32xf32, #tpu.memory_space<vmem>>, vector<2x32xf32>,
    %241 = vector.extract_strided_slice %5 {offsets = [16, 0], sizes = [2, 96], strides = [1, 1]} : vector<32x96xf32> to vector<2x96xf32>
    %cst_43 = arith.constant dense<0.000000e+00> : vector<2x96xf32>
    %242 = tpu.matmul %239, %6, %cst_43 {dimension_numbers = #tpu.dot_dimension_numbers<[1], [0], [0], [1], [0, 0, 1, 1], [], []>} : vector<2x32xf32>, vector<32x96xf32>, vector<2x96xf32> -> vector<2x96xf32>
    %243 = vector.extract_strided_slice %241 {offsets = [0, 0], sizes = [2, 32], strides = [1, 1]} : vector<2x96xf32> to vector<2x32xf32>
    %244 = vector.extract_strided_slice %242 {offsets = [0, 0], sizes = [2, 32], strides = [1, 1]} : vector<2x96xf32> to vector<2x32xf32>
    %245 = arith.addf %243, %244 : vector<2x32xf32>
    %246 = arith.negf %245 : vector<2x32xf32>
    %247 = math.exp %246 : vector<2x32xf32>
    %cst_44 = arith.constant 1.000000e+00 : f32
    %248 = vector.broadcast %cst_44 : f32 to vector<2x32xf32>
    %249 = arith.addf %248, %247 : vector<2x32xf32>
    %250 = arith.divf %248, %249 : vector<2x32xf32>
    %251 = vector.extract_strided_slice %241 {offsets = [0, 32], sizes = [2, 32], strides = [1, 1]} : vector<2x96xf32> to vector<2x32xf32>
    %252 = vector.extract_strided_slice %242 {offsets = [0, 32], sizes = [2, 32], strides = [1, 1]} : vector<2x96xf32> to vector<2x32xf32>
    %253 = arith.addf %251, %252 : vector<2x32xf32>
    %254 = arith.negf %253 : vector<2x32xf32>
    %255 = math.exp %254 : vector<2x32xf32>
    %cst_45 = arith.constant 1.000000e+00 : f32
    %256 = vector.broadcast %cst_45 : f32 to vector<2x32xf32>
    %257 = arith.addf %256, %255 : vector<2x32xf32>
    %258 = arith.divf %256, %257 : vector<2x32xf32>
    %259 = vector.extract_strided_slice %241 {offsets = [0, 64], sizes = [2, 32], strides = [1, 1]} : vector<2x96xf32> to vector<2x32xf32>
    %260 = vector.extract_strided_slice %242 {offsets = [0, 64], sizes = [2, 32], strides = [1, 1]} : vector<2x96xf32> to vector<2x32xf32>
    %261 = vector.broadcast %7 : vector<1x32xf32> to vector<2x32xf32>
    %262 = arith.addf %260, %261 : vector<2x32xf32>
    %263 = arith.mulf %250, %262 : vector<2x32xf32>
    %264 = arith.addf %259, %263 : vector<2x32xf32>
    %265 = math.tanh %264 : vector<2x32xf32>
    %266 = arith.subf %239, %265 : vector<2x32xf32>
    %267 = arith.mulf %258, %266 : vector<2x32xf32>
    %268 = arith.addf %265, %267 : vector<2x32xf32>
    %c16 = arith.constant 16 : index
    %c0_46 = arith.constant 0 : index
    %269 = vector.load %arg12[%c16, %c0_46] : memref<32x32xf32, #tpu.memory_space<vmem>>, vector<2x32xf32>
    tpu.vector_store %arg12[%c16, %c0_46], %268 {strides = array<i32>} : memref<32x32xf32, #tpu.memory_space<vmem>>, vector<2x32xf32>,
    %270 = vector.extract_strided_slice %5 {offsets = [18, 0], sizes = [2, 96], strides = [1, 1]} : vector<32x96xf32> to vector<2x96xf32>
    %cst_47 = arith.constant dense<0.000000e+00> : vector<2x96xf32>
    %271 = tpu.matmul %268, %6, %cst_47 {dimension_numbers = #tpu.dot_dimension_numbers<[1], [0], [0], [1], [0, 0, 1, 1], [], []>} : vector<2x32xf32>, vector<32x96xf32>, vector<2x96xf32> -> vector<2x96xf32>
    %272 = vector.extract_strided_slice %270 {offsets = [0, 0], sizes = [2, 32], strides = [1, 1]} : vector<2x96xf32> to vector<2x32xf32>
    %273 = vector.extract_strided_slice %271 {offsets = [0, 0], sizes = [2, 32], strides = [1, 1]} : vector<2x96xf32> to vector<2x32xf32>
    %274 = arith.addf %272, %273 : vector<2x32xf32>
    %275 = arith.negf %274 : vector<2x32xf32>
    %276 = math.exp %275 : vector<2x32xf32>
    %cst_48 = arith.constant 1.000000e+00 : f32
    %277 = vector.broadcast %cst_48 : f32 to vector<2x32xf32>
    %278 = arith.addf %277, %276 : vector<2x32xf32>
    %279 = arith.divf %277, %278 : vector<2x32xf32>
    %280 = vector.extract_strided_slice %270 {offsets = [0, 32], sizes = [2, 32], strides = [1, 1]} : vector<2x96xf32> to vector<2x32xf32>
    %281 = vector.extract_strided_slice %271 {offsets = [0, 32], sizes = [2, 32], strides = [1, 1]} : vector<2x96xf32> to vector<2x32xf32>
    %282 = arith.addf %280, %281 : vector<2x32xf32>
    %283 = arith.negf %282 : vector<2x32xf32>
    %284 = math.exp %283 : vector<2x32xf32>
    %cst_49 = arith.constant 1.000000e+00 : f32
    %285 = vector.broadcast %cst_49 : f32 to vector<2x32xf32>
    %286 = arith.addf %285, %284 : vector<2x32xf32>
    %287 = arith.divf %285, %286 : vector<2x32xf32>
    %288 = vector.extract_strided_slice %270 {offsets = [0, 64], sizes = [2, 32], strides = [1, 1]} : vector<2x96xf32> to vector<2x32xf32>
    %289 = vector.extract_strided_slice %271 {offsets = [0, 64], sizes = [2, 32], strides = [1, 1]} : vector<2x96xf32> to vector<2x32xf32>
    %290 = vector.broadcast %7 : vector<1x32xf32> to vector<2x32xf32>
    %291 = arith.addf %289, %290 : vector<2x32xf32>
    %292 = arith.mulf %279, %291 : vector<2x32xf32>
    %293 = arith.addf %288, %292 : vector<2x32xf32>
    %294 = math.tanh %293 : vector<2x32xf32>
    %295 = arith.subf %268, %294 : vector<2x32xf32>
    %296 = arith.mulf %287, %295 : vector<2x32xf32>
    %297 = arith.addf %294, %296 : vector<2x32xf32>
    %c18 = arith.constant 18 : index
    %c0_50 = arith.constant 0 : index
    %298 = vector.load %arg12[%c18, %c0_50] : memref<32x32xf32, #tpu.memory_space<vmem>>, vector<2x32xf32>
    tpu.vector_store %arg12[%c18, %c0_50], %297 {strides = array<i32>} : memref<32x32xf32, #tpu.memory_space<vmem>>, vector<2x32xf32>,
    %299 = vector.extract_strided_slice %5 {offsets = [20, 0], sizes = [2, 96], strides = [1, 1]} : vector<32x96xf32> to vector<2x96xf32>
    %cst_51 = arith.constant dense<0.000000e+00> : vector<2x96xf32>
    %300 = tpu.matmul %297, %6, %cst_51 {dimension_numbers = #tpu.dot_dimension_numbers<[1], [0], [0], [1], [0, 0, 1, 1], [], []>} : vector<2x32xf32>, vector<32x96xf32>, vector<2x96xf32> -> vector<2x96xf32>
    %301 = vector.extract_strided_slice %299 {offsets = [0, 0], sizes = [2, 32], strides = [1, 1]} : vector<2x96xf32> to vector<2x32xf32>
    %302 = vector.extract_strided_slice %300 {offsets = [0, 0], sizes = [2, 32], strides = [1, 1]} : vector<2x96xf32> to vector<2x32xf32>
    %303 = arith.addf %301, %302 : vector<2x32xf32>
    %304 = arith.negf %303 : vector<2x32xf32>
    %305 = math.exp %304 : vector<2x32xf32>
    %cst_52 = arith.constant 1.000000e+00 : f32
    %306 = vector.broadcast %cst_52 : f32 to vector<2x32xf32>
    %307 = arith.addf %306, %305 : vector<2x32xf32>
    %308 = arith.divf %306, %307 : vector<2x32xf32>
    %309 = vector.extract_strided_slice %299 {offsets = [0, 32], sizes = [2, 32], strides = [1, 1]} : vector<2x96xf32> to vector<2x32xf32>
    %310 = vector.extract_strided_slice %300 {offsets = [0, 32], sizes = [2, 32], strides = [1, 1]} : vector<2x96xf32> to vector<2x32xf32>
    %311 = arith.addf %309, %310 : vector<2x32xf32>
    %312 = arith.negf %311 : vector<2x32xf32>
    %313 = math.exp %312 : vector<2x32xf32>
    %cst_53 = arith.constant 1.000000e+00 : f32
    %314 = vector.broadcast %cst_53 : f32 to vector<2x32xf32>
    %315 = arith.addf %314, %313 : vector<2x32xf32>
    %316 = arith.divf %314, %315 : vector<2x32xf32>
    %317 = vector.extract_strided_slice %299 {offsets = [0, 64], sizes = [2, 32], strides = [1, 1]} : vector<2x96xf32> to vector<2x32xf32>
    %318 = vector.extract_strided_slice %300 {offsets = [0, 64], sizes = [2, 32], strides = [1, 1]} : vector<2x96xf32> to vector<2x32xf32>
    %319 = vector.broadcast %7 : vector<1x32xf32> to vector<2x32xf32>
    %320 = arith.addf %318, %319 : vector<2x32xf32>
    %321 = arith.mulf %308, %320 : vector<2x32xf32>
    %322 = arith.addf %317, %321 : vector<2x32xf32>
    %323 = math.tanh %322 : vector<2x32xf32>
    %324 = arith.subf %297, %323 : vector<2x32xf32>
    %325 = arith.mulf %316, %324 : vector<2x32xf32>
    %326 = arith.addf %323, %325 : vector<2x32xf32>
    %c20 = arith.constant 20 : index
    %c0_54 = arith.constant 0 : index
    %327 = vector.load %arg12[%c20, %c0_54] : memref<32x32xf32, #tpu.memory_space<vmem>>, vector<2x32xf32>
    tpu.vector_store %arg12[%c20, %c0_54], %326 {strides = array<i32>} : memref<32x32xf32, #tpu.memory_space<vmem>>, vector<2x32xf32>,
    %328 = vector.extract_strided_slice %5 {offsets = [22, 0], sizes = [2, 96], strides = [1, 1]} : vector<32x96xf32> to vector<2x96xf32>
    %cst_55 = arith.constant dense<0.000000e+00> : vector<2x96xf32>
    %329 = tpu.matmul %326, %6, %cst_55 {dimension_numbers = #tpu.dot_dimension_numbers<[1], [0], [0], [1], [0, 0, 1, 1], [], []>} : vector<2x32xf32>, vector<32x96xf32>, vector<2x96xf32> -> vector<2x96xf32>
    %330 = vector.extract_strided_slice %328 {offsets = [0, 0], sizes = [2, 32], strides = [1, 1]} : vector<2x96xf32> to vector<2x32xf32>
    %331 = vector.extract_strided_slice %329 {offsets = [0, 0], sizes = [2, 32], strides = [1, 1]} : vector<2x96xf32> to vector<2x32xf32>
    %332 = arith.addf %330, %331 : vector<2x32xf32>
    %333 = arith.negf %332 : vector<2x32xf32>
    %334 = math.exp %333 : vector<2x32xf32>
    %cst_56 = arith.constant 1.000000e+00 : f32
    %335 = vector.broadcast %cst_56 : f32 to vector<2x32xf32>
    %336 = arith.addf %335, %334 : vector<2x32xf32>
    %337 = arith.divf %335, %336 : vector<2x32xf32>
    %338 = vector.extract_strided_slice %328 {offsets = [0, 32], sizes = [2, 32], strides = [1, 1]} : vector<2x96xf32> to vector<2x32xf32>
    %339 = vector.extract_strided_slice %329 {offsets = [0, 32], sizes = [2, 32], strides = [1, 1]} : vector<2x96xf32> to vector<2x32xf32>
    %340 = arith.addf %338, %339 : vector<2x32xf32>
    %341 = arith.negf %340 : vector<2x32xf32>
    %342 = math.exp %341 : vector<2x32xf32>
    %cst_57 = arith.constant 1.000000e+00 : f32
    %343 = vector.broadcast %cst_57 : f32 to vector<2x32xf32>
    %344 = arith.addf %343, %342 : vector<2x32xf32>
    %345 = arith.divf %343, %344 : vector<2x32xf32>
    %346 = vector.extract_strided_slice %328 {offsets = [0, 64], sizes = [2, 32], strides = [1, 1]} : vector<2x96xf32> to vector<2x32xf32>
    %347 = vector.extract_strided_slice %329 {offsets = [0, 64], sizes = [2, 32], strides = [1, 1]} : vector<2x96xf32> to vector<2x32xf32>
    %348 = vector.broadcast %7 : vector<1x32xf32> to vector<2x32xf32>
    %349 = arith.addf %347, %348 : vector<2x32xf32>
    %350 = arith.mulf %337, %349 : vector<2x32xf32>
    %351 = arith.addf %346, %350 : vector<2x32xf32>
    %352 = math.tanh %351 : vector<2x32xf32>
    %353 = arith.subf %326, %352 : vector<2x32xf32>
    %354 = arith.mulf %345, %353 : vector<2x32xf32>
    %355 = arith.addf %352, %354 : vector<2x32xf32>
    %c22 = arith.constant 22 : index
    %c0_58 = arith.constant 0 : index
    %356 = vector.load %arg12[%c22, %c0_58] : memref<32x32xf32, #tpu.memory_space<vmem>>, vector<2x32xf32>
    tpu.vector_store %arg12[%c22, %c0_58], %355 {strides = array<i32>} : memref<32x32xf32, #tpu.memory_space<vmem>>, vector<2x32xf32>,
    %357 = vector.extract_strided_slice %5 {offsets = [24, 0], sizes = [2, 96], strides = [1, 1]} : vector<32x96xf32> to vector<2x96xf32>
    %cst_59 = arith.constant dense<0.000000e+00> : vector<2x96xf32>
    %358 = tpu.matmul %355, %6, %cst_59 {dimension_numbers = #tpu.dot_dimension_numbers<[1], [0], [0], [1], [0, 0, 1, 1], [], []>} : vector<2x32xf32>, vector<32x96xf32>, vector<2x96xf32> -> vector<2x96xf32>
    %359 = vector.extract_strided_slice %357 {offsets = [0, 0], sizes = [2, 32], strides = [1, 1]} : vector<2x96xf32> to vector<2x32xf32>
    %360 = vector.extract_strided_slice %358 {offsets = [0, 0], sizes = [2, 32], strides = [1, 1]} : vector<2x96xf32> to vector<2x32xf32>
    %361 = arith.addf %359, %360 : vector<2x32xf32>
    %362 = arith.negf %361 : vector<2x32xf32>
    %363 = math.exp %362 : vector<2x32xf32>
    %cst_60 = arith.constant 1.000000e+00 : f32
    %364 = vector.broadcast %cst_60 : f32 to vector<2x32xf32>
    %365 = arith.addf %364, %363 : vector<2x32xf32>
    %366 = arith.divf %364, %365 : vector<2x32xf32>
    %367 = vector.extract_strided_slice %357 {offsets = [0, 32], sizes = [2, 32], strides = [1, 1]} : vector<2x96xf32> to vector<2x32xf32>
    %368 = vector.extract_strided_slice %358 {offsets = [0, 32], sizes = [2, 32], strides = [1, 1]} : vector<2x96xf32> to vector<2x32xf32>
    %369 = arith.addf %367, %368 : vector<2x32xf32>
    %370 = arith.negf %369 : vector<2x32xf32>
    %371 = math.exp %370 : vector<2x32xf32>
    %cst_61 = arith.constant 1.000000e+00 : f32
    %372 = vector.broadcast %cst_61 : f32 to vector<2x32xf32>
    %373 = arith.addf %372, %371 : vector<2x32xf32>
    %374 = arith.divf %372, %373 : vector<2x32xf32>
    %375 = vector.extract_strided_slice %357 {offsets = [0, 64], sizes = [2, 32], strides = [1, 1]} : vector<2x96xf32> to vector<2x32xf32>
    %376 = vector.extract_strided_slice %358 {offsets = [0, 64], sizes = [2, 32], strides = [1, 1]} : vector<2x96xf32> to vector<2x32xf32>
    %377 = vector.broadcast %7 : vector<1x32xf32> to vector<2x32xf32>
    %378 = arith.addf %376, %377 : vector<2x32xf32>
    %379 = arith.mulf %366, %378 : vector<2x32xf32>
    %380 = arith.addf %375, %379 : vector<2x32xf32>
    %381 = math.tanh %380 : vector<2x32xf32>
    %382 = arith.subf %355, %381 : vector<2x32xf32>
    %383 = arith.mulf %374, %382 : vector<2x32xf32>
    %384 = arith.addf %381, %383 : vector<2x32xf32>
    %c24 = arith.constant 24 : index
    %c0_62 = arith.constant 0 : index
    %385 = vector.load %arg12[%c24, %c0_62] : memref<32x32xf32, #tpu.memory_space<vmem>>, vector<2x32xf32>
    tpu.vector_store %arg12[%c24, %c0_62], %384 {strides = array<i32>} : memref<32x32xf32, #tpu.memory_space<vmem>>, vector<2x32xf32>,
    %386 = vector.extract_strided_slice %5 {offsets = [26, 0], sizes = [2, 96], strides = [1, 1]} : vector<32x96xf32> to vector<2x96xf32>
    %cst_63 = arith.constant dense<0.000000e+00> : vector<2x96xf32>
    %387 = tpu.matmul %384, %6, %cst_63 {dimension_numbers = #tpu.dot_dimension_numbers<[1], [0], [0], [1], [0, 0, 1, 1], [], []>} : vector<2x32xf32>, vector<32x96xf32>, vector<2x96xf32> -> vector<2x96xf32>
    %388 = vector.extract_strided_slice %386 {offsets = [0, 0], sizes = [2, 32], strides = [1, 1]} : vector<2x96xf32> to vector<2x32xf32>
    %389 = vector.extract_strided_slice %387 {offsets = [0, 0], sizes = [2, 32], strides = [1, 1]} : vector<2x96xf32> to vector<2x32xf32>
    %390 = arith.addf %388, %389 : vector<2x32xf32>
    %391 = arith.negf %390 : vector<2x32xf32>
    %392 = math.exp %391 : vector<2x32xf32>
    %cst_64 = arith.constant 1.000000e+00 : f32
    %393 = vector.broadcast %cst_64 : f32 to vector<2x32xf32>
    %394 = arith.addf %393, %392 : vector<2x32xf32>
    %395 = arith.divf %393, %394 : vector<2x32xf32>
    %396 = vector.extract_strided_slice %386 {offsets = [0, 32], sizes = [2, 32], strides = [1, 1]} : vector<2x96xf32> to vector<2x32xf32>
    %397 = vector.extract_strided_slice %387 {offsets = [0, 32], sizes = [2, 32], strides = [1, 1]} : vector<2x96xf32> to vector<2x32xf32>
    %398 = arith.addf %396, %397 : vector<2x32xf32>
    %399 = arith.negf %398 : vector<2x32xf32>
    %400 = math.exp %399 : vector<2x32xf32>
    %cst_65 = arith.constant 1.000000e+00 : f32
    %401 = vector.broadcast %cst_65 : f32 to vector<2x32xf32>
    %402 = arith.addf %401, %400 : vector<2x32xf32>
    %403 = arith.divf %401, %402 : vector<2x32xf32>
    %404 = vector.extract_strided_slice %386 {offsets = [0, 64], sizes = [2, 32], strides = [1, 1]} : vector<2x96xf32> to vector<2x32xf32>
    %405 = vector.extract_strided_slice %387 {offsets = [0, 64], sizes = [2, 32], strides = [1, 1]} : vector<2x96xf32> to vector<2x32xf32>
    %406 = vector.broadcast %7 : vector<1x32xf32> to vector<2x32xf32>
    %407 = arith.addf %405, %406 : vector<2x32xf32>
    %408 = arith.mulf %395, %407 : vector<2x32xf32>
    %409 = arith.addf %404, %408 : vector<2x32xf32>
    %410 = math.tanh %409 : vector<2x32xf32>
    %411 = arith.subf %384, %410 : vector<2x32xf32>
    %412 = arith.mulf %403, %411 : vector<2x32xf32>
    %413 = arith.addf %410, %412 : vector<2x32xf32>
    %c26 = arith.constant 26 : index
    %c0_66 = arith.constant 0 : index
    %414 = vector.load %arg12[%c26, %c0_66] : memref<32x32xf32, #tpu.memory_space<vmem>>, vector<2x32xf32>
    tpu.vector_store %arg12[%c26, %c0_66], %413 {strides = array<i32>} : memref<32x32xf32, #tpu.memory_space<vmem>>, vector<2x32xf32>,
    %415 = vector.extract_strided_slice %5 {offsets = [28, 0], sizes = [2, 96], strides = [1, 1]} : vector<32x96xf32> to vector<2x96xf32>
    %cst_67 = arith.constant dense<0.000000e+00> : vector<2x96xf32>
    %416 = tpu.matmul %413, %6, %cst_67 {dimension_numbers = #tpu.dot_dimension_numbers<[1], [0], [0], [1], [0, 0, 1, 1], [], []>} : vector<2x32xf32>, vector<32x96xf32>, vector<2x96xf32> -> vector<2x96xf32>
    %417 = vector.extract_strided_slice %415 {offsets = [0, 0], sizes = [2, 32], strides = [1, 1]} : vector<2x96xf32> to vector<2x32xf32>
    %418 = vector.extract_strided_slice %416 {offsets = [0, 0], sizes = [2, 32], strides = [1, 1]} : vector<2x96xf32> to vector<2x32xf32>
    %419 = arith.addf %417, %418 : vector<2x32xf32>
    %420 = arith.negf %419 : vector<2x32xf32>
    %421 = math.exp %420 : vector<2x32xf32>
    %cst_68 = arith.constant 1.000000e+00 : f32
    %422 = vector.broadcast %cst_68 : f32 to vector<2x32xf32>
    %423 = arith.addf %422, %421 : vector<2x32xf32>
    %424 = arith.divf %422, %423 : vector<2x32xf32>
    %425 = vector.extract_strided_slice %415 {offsets = [0, 32], sizes = [2, 32], strides = [1, 1]} : vector<2x96xf32> to vector<2x32xf32>
    %426 = vector.extract_strided_slice %416 {offsets = [0, 32], sizes = [2, 32], strides = [1, 1]} : vector<2x96xf32> to vector<2x32xf32>
    %427 = arith.addf %425, %426 : vector<2x32xf32>
    %428 = arith.negf %427 : vector<2x32xf32>
    %429 = math.exp %428 : vector<2x32xf32>
    %cst_69 = arith.constant 1.000000e+00 : f32
    %430 = vector.broadcast %cst_69 : f32 to vector<2x32xf32>
    %431 = arith.addf %430, %429 : vector<2x32xf32>
    %432 = arith.divf %430, %431 : vector<2x32xf32>
    %433 = vector.extract_strided_slice %415 {offsets = [0, 64], sizes = [2, 32], strides = [1, 1]} : vector<2x96xf32> to vector<2x32xf32>
    %434 = vector.extract_strided_slice %416 {offsets = [0, 64], sizes = [2, 32], strides = [1, 1]} : vector<2x96xf32> to vector<2x32xf32>
    %435 = vector.broadcast %7 : vector<1x32xf32> to vector<2x32xf32>
    %436 = arith.addf %434, %435 : vector<2x32xf32>
    %437 = arith.mulf %424, %436 : vector<2x32xf32>
    %438 = arith.addf %433, %437 : vector<2x32xf32>
    %439 = math.tanh %438 : vector<2x32xf32>
    %440 = arith.subf %413, %439 : vector<2x32xf32>
    %441 = arith.mulf %432, %440 : vector<2x32xf32>
    %442 = arith.addf %439, %441 : vector<2x32xf32>
    %c28 = arith.constant 28 : index
    %c0_70 = arith.constant 0 : index
    %443 = vector.load %arg12[%c28, %c0_70] : memref<32x32xf32, #tpu.memory_space<vmem>>, vector<2x32xf32>
    tpu.vector_store %arg12[%c28, %c0_70], %442 {strides = array<i32>} : memref<32x32xf32, #tpu.memory_space<vmem>>, vector<2x32xf32>,
    %444 = vector.extract_strided_slice %5 {offsets = [30, 0], sizes = [2, 96], strides = [1, 1]} : vector<32x96xf32> to vector<2x96xf32>
    %cst_71 = arith.constant dense<0.000000e+00> : vector<2x96xf32>
    %445 = tpu.matmul %442, %6, %cst_71 {dimension_numbers = #tpu.dot_dimension_numbers<[1], [0], [0], [1], [0, 0, 1, 1], [], []>} : vector<2x32xf32>, vector<32x96xf32>, vector<2x96xf32> -> vector<2x96xf32>
    %446 = vector.extract_strided_slice %444 {offsets = [0, 0], sizes = [2, 32], strides = [1, 1]} : vector<2x96xf32> to vector<2x32xf32>
    %447 = vector.extract_strided_slice %445 {offsets = [0, 0], sizes = [2, 32], strides = [1, 1]} : vector<2x96xf32> to vector<2x32xf32>
    %448 = arith.addf %446, %447 : vector<2x32xf32>
    %449 = arith.negf %448 : vector<2x32xf32>
    %450 = math.exp %449 : vector<2x32xf32>
    %cst_72 = arith.constant 1.000000e+00 : f32
    %451 = vector.broadcast %cst_72 : f32 to vector<2x32xf32>
    %452 = arith.addf %451, %450 : vector<2x32xf32>
    %453 = arith.divf %451, %452 : vector<2x32xf32>
    %454 = vector.extract_strided_slice %444 {offsets = [0, 32], sizes = [2, 32], strides = [1, 1]} : vector<2x96xf32> to vector<2x32xf32>
    %455 = vector.extract_strided_slice %445 {offsets = [0, 32], sizes = [2, 32], strides = [1, 1]} : vector<2x96xf32> to vector<2x32xf32>
    %456 = arith.addf %454, %455 : vector<2x32xf32>
    %457 = arith.negf %456 : vector<2x32xf32>
    %458 = math.exp %457 : vector<2x32xf32>
    %cst_73 = arith.constant 1.000000e+00 : f32
    %459 = vector.broadcast %cst_73 : f32 to vector<2x32xf32>
    %460 = arith.addf %459, %458 : vector<2x32xf32>
    %461 = arith.divf %459, %460 : vector<2x32xf32>
    %462 = vector.extract_strided_slice %444 {offsets = [0, 64], sizes = [2, 32], strides = [1, 1]} : vector<2x96xf32> to vector<2x32xf32>
    %463 = vector.extract_strided_slice %445 {offsets = [0, 64], sizes = [2, 32], strides = [1, 1]} : vector<2x96xf32> to vector<2x32xf32>
    %464 = vector.broadcast %7 : vector<1x32xf32> to vector<2x32xf32>
    %465 = arith.addf %463, %464 : vector<2x32xf32>
    %466 = arith.mulf %453, %465 : vector<2x32xf32>
    %467 = arith.addf %462, %466 : vector<2x32xf32>
    %468 = math.tanh %467 : vector<2x32xf32>
    %469 = arith.subf %442, %468 : vector<2x32xf32>
    %470 = arith.mulf %461, %469 : vector<2x32xf32>
    %471 = arith.addf %468, %470 : vector<2x32xf32>
    %c30 = arith.constant 30 : index
    %c0_74 = arith.constant 0 : index
    %472 = vector.load %arg12[%c30, %c0_74] : memref<32x32xf32, #tpu.memory_space<vmem>>, vector<2x32xf32>
    tpu.vector_store %arg12[%c30, %c0_74], %471 {strides = array<i32>} : memref<32x32xf32, #tpu.memory_space<vmem>>, vector<2x32xf32>,
    %c0_75 = arith.constant 0 : index
    %c0_76 = arith.constant 0 : index
    %473 = vector.load %arg12[%c0_75, %c0_76] : memref<32x32xf32, #tpu.memory_space<vmem>>, vector<32x32xf32>
    %c0_77 = arith.constant 0 : index
    %c0_78 = arith.constant 0 : index
    %474 = vector.load %arg5[%c0_77, %c0_78] : memref<32x96xf32, #tpu.memory_space<vmem>>, vector<32x96xf32>
    %cst_79 = arith.constant dense<0.000000e+00> : vector<32x96xf32>
    %475 = tpu.matmul %473, %474, %cst_79 {dimension_numbers = #tpu.dot_dimension_numbers<[1], [0], [0], [1], [0, 0, 1, 1], [], []>} : vector<32x32xf32>, vector<32x96xf32>, vector<32x96xf32> -> vector<32x96xf32>
    %c0_80 = arith.constant 0 : index
    %c0_81 = arith.constant 0 : index
    %476 = vector.load %arg6[%c0_80, %c0_81] : memref<1x96xf32, #tpu.memory_space<vmem>>, vector<1x96xf32>
    %477 = vector.broadcast %476 : vector<1x96xf32> to vector<32x96xf32>
    %478 = arith.addf %475, %477 : vector<32x96xf32>
    %c0_82 = arith.constant 0 : index
    %c0_83 = arith.constant 0 : index
    %479 = vector.load %arg7[%c0_82, %c0_83] : memref<32x96xf32, #tpu.memory_space<vmem>>, vector<32x96xf32>
    %c0_84 = arith.constant 0 : index
    %c0_85 = arith.constant 0 : index
    %480 = vector.load %arg8[%c0_84, %c0_85] : memref<1x32xf32, #tpu.memory_space<vmem>>, vector<1x32xf32>
    %cst_86 = arith.constant 0.000000e+00 : f32
    %481 = vector.broadcast %cst_86 : f32 to vector<2x32xf32>
    %482 = vector.extract_strided_slice %478 {offsets = [0, 0], sizes = [2, 96], strides = [1, 1]} : vector<32x96xf32> to vector<2x96xf32>
    %cst_87 = arith.constant dense<0.000000e+00> : vector<2x96xf32>
    %483 = tpu.matmul %481, %479, %cst_87 {dimension_numbers = #tpu.dot_dimension_numbers<[1], [0], [0], [1], [0, 0, 1, 1], [], []>} : vector<2x32xf32>, vector<32x96xf32>, vector<2x96xf32> -> vector<2x96xf32>
    %484 = vector.extract_strided_slice %482 {offsets = [0, 0], sizes = [2, 32], strides = [1, 1]} : vector<2x96xf32> to vector<2x32xf32>
    %485 = vector.extract_strided_slice %483 {offsets = [0, 0], sizes = [2, 32], strides = [1, 1]} : vector<2x96xf32> to vector<2x32xf32>
    %486 = arith.addf %484, %485 : vector<2x32xf32>
    %487 = arith.negf %486 : vector<2x32xf32>
    %488 = math.exp %487 : vector<2x32xf32>
    %cst_88 = arith.constant 1.000000e+00 : f32
    %489 = vector.broadcast %cst_88 : f32 to vector<2x32xf32>
    %490 = arith.addf %489, %488 : vector<2x32xf32>
    %491 = arith.divf %489, %490 : vector<2x32xf32>
    %492 = vector.extract_strided_slice %482 {offsets = [0, 32], sizes = [2, 32], strides = [1, 1]} : vector<2x96xf32> to vector<2x32xf32>
    %493 = vector.extract_strided_slice %483 {offsets = [0, 32], sizes = [2, 32], strides = [1, 1]} : vector<2x96xf32> to vector<2x32xf32>
    %494 = arith.addf %492, %493 : vector<2x32xf32>
    %495 = arith.negf %494 : vector<2x32xf32>
    %496 = math.exp %495 : vector<2x32xf32>
    %cst_89 = arith.constant 1.000000e+00 : f32
    %497 = vector.broadcast %cst_89 : f32 to vector<2x32xf32>
    %498 = arith.addf %497, %496 : vector<2x32xf32>
    %499 = arith.divf %497, %498 : vector<2x32xf32>
    %500 = vector.extract_strided_slice %482 {offsets = [0, 64], sizes = [2, 32], strides = [1, 1]} : vector<2x96xf32> to vector<2x32xf32>
    %501 = vector.extract_strided_slice %483 {offsets = [0, 64], sizes = [2, 32], strides = [1, 1]} : vector<2x96xf32> to vector<2x32xf32>
    %502 = vector.broadcast %480 : vector<1x32xf32> to vector<2x32xf32>
    %503 = arith.addf %501, %502 : vector<2x32xf32>
    %504 = arith.mulf %491, %503 : vector<2x32xf32>
    %505 = arith.addf %500, %504 : vector<2x32xf32>
    %506 = math.tanh %505 : vector<2x32xf32>
    %507 = arith.subf %481, %506 : vector<2x32xf32>
    %508 = arith.mulf %499, %507 : vector<2x32xf32>
    %509 = arith.addf %506, %508 : vector<2x32xf32>
    %510 = vector.extract_strided_slice %478 {offsets = [2, 0], sizes = [2, 96], strides = [1, 1]} : vector<32x96xf32> to vector<2x96xf32>
    %cst_90 = arith.constant dense<0.000000e+00> : vector<2x96xf32>
    %511 = tpu.matmul %509, %479, %cst_90 {dimension_numbers = #tpu.dot_dimension_numbers<[1], [0], [0], [1], [0, 0, 1, 1], [], []>} : vector<2x32xf32>, vector<32x96xf32>, vector<2x96xf32> -> vector<2x96xf32>
    %512 = vector.extract_strided_slice %510 {offsets = [0, 0], sizes = [2, 32], strides = [1, 1]} : vector<2x96xf32> to vector<2x32xf32>
    %513 = vector.extract_strided_slice %511 {offsets = [0, 0], sizes = [2, 32], strides = [1, 1]} : vector<2x96xf32> to vector<2x32xf32>
    %514 = arith.addf %512, %513 : vector<2x32xf32>
    %515 = arith.negf %514 : vector<2x32xf32>
    %516 = math.exp %515 : vector<2x32xf32>
    %cst_91 = arith.constant 1.000000e+00 : f32
    %517 = vector.broadcast %cst_91 : f32 to vector<2x32xf32>
    %518 = arith.addf %517, %516 : vector<2x32xf32>
    %519 = arith.divf %517, %518 : vector<2x32xf32>
    %520 = vector.extract_strided_slice %510 {offsets = [0, 32], sizes = [2, 32], strides = [1, 1]} : vector<2x96xf32> to vector<2x32xf32>
    %521 = vector.extract_strided_slice %511 {offsets = [0, 32], sizes = [2, 32], strides = [1, 1]} : vector<2x96xf32> to vector<2x32xf32>
    %522 = arith.addf %520, %521 : vector<2x32xf32>
    %523 = arith.negf %522 : vector<2x32xf32>
    %524 = math.exp %523 : vector<2x32xf32>
    %cst_92 = arith.constant 1.000000e+00 : f32
    %525 = vector.broadcast %cst_92 : f32 to vector<2x32xf32>
    %526 = arith.addf %525, %524 : vector<2x32xf32>
    %527 = arith.divf %525, %526 : vector<2x32xf32>
    %528 = vector.extract_strided_slice %510 {offsets = [0, 64], sizes = [2, 32], strides = [1, 1]} : vector<2x96xf32> to vector<2x32xf32>
    %529 = vector.extract_strided_slice %511 {offsets = [0, 64], sizes = [2, 32], strides = [1, 1]} : vector<2x96xf32> to vector<2x32xf32>
    %530 = vector.broadcast %480 : vector<1x32xf32> to vector<2x32xf32>
    %531 = arith.addf %529, %530 : vector<2x32xf32>
    %532 = arith.mulf %519, %531 : vector<2x32xf32>
    %533 = arith.addf %528, %532 : vector<2x32xf32>
    %534 = math.tanh %533 : vector<2x32xf32>
    %535 = arith.subf %509, %534 : vector<2x32xf32>
    %536 = arith.mulf %527, %535 : vector<2x32xf32>
    %537 = arith.addf %534, %536 : vector<2x32xf32>
    %538 = vector.extract_strided_slice %478 {offsets = [4, 0], sizes = [2, 96], strides = [1, 1]} : vector<32x96xf32> to vector<2x96xf32>
    %cst_93 = arith.constant dense<0.000000e+00> : vector<2x96xf32>
    %539 = tpu.matmul %537, %479, %cst_93 {dimension_numbers = #tpu.dot_dimension_numbers<[1], [0], [0], [1], [0, 0, 1, 1], [], []>} : vector<2x32xf32>, vector<32x96xf32>, vector<2x96xf32> -> vector<2x96xf32>
    %540 = vector.extract_strided_slice %538 {offsets = [0, 0], sizes = [2, 32], strides = [1, 1]} : vector<2x96xf32> to vector<2x32xf32>
    %541 = vector.extract_strided_slice %539 {offsets = [0, 0], sizes = [2, 32], strides = [1, 1]} : vector<2x96xf32> to vector<2x32xf32>
    %542 = arith.addf %540, %541 : vector<2x32xf32>
    %543 = arith.negf %542 : vector<2x32xf32>
    %544 = math.exp %543 : vector<2x32xf32>
    %cst_94 = arith.constant 1.000000e+00 : f32
    %545 = vector.broadcast %cst_94 : f32 to vector<2x32xf32>
    %546 = arith.addf %545, %544 : vector<2x32xf32>
    %547 = arith.divf %545, %546 : vector<2x32xf32>
    %548 = vector.extract_strided_slice %538 {offsets = [0, 32], sizes = [2, 32], strides = [1, 1]} : vector<2x96xf32> to vector<2x32xf32>
    %549 = vector.extract_strided_slice %539 {offsets = [0, 32], sizes = [2, 32], strides = [1, 1]} : vector<2x96xf32> to vector<2x32xf32>
    %550 = arith.addf %548, %549 : vector<2x32xf32>
    %551 = arith.negf %550 : vector<2x32xf32>
    %552 = math.exp %551 : vector<2x32xf32>
    %cst_95 = arith.constant 1.000000e+00 : f32
    %553 = vector.broadcast %cst_95 : f32 to vector<2x32xf32>
    %554 = arith.addf %553, %552 : vector<2x32xf32>
    %555 = arith.divf %553, %554 : vector<2x32xf32>
    %556 = vector.extract_strided_slice %538 {offsets = [0, 64], sizes = [2, 32], strides = [1, 1]} : vector<2x96xf32> to vector<2x32xf32>
    %557 = vector.extract_strided_slice %539 {offsets = [0, 64], sizes = [2, 32], strides = [1, 1]} : vector<2x96xf32> to vector<2x32xf32>
    %558 = vector.broadcast %480 : vector<1x32xf32> to vector<2x32xf32>
    %559 = arith.addf %557, %558 : vector<2x32xf32>
    %560 = arith.mulf %547, %559 : vector<2x32xf32>
    %561 = arith.addf %556, %560 : vector<2x32xf32>
    %562 = math.tanh %561 : vector<2x32xf32>
    %563 = arith.subf %537, %562 : vector<2x32xf32>
    %564 = arith.mulf %555, %563 : vector<2x32xf32>
    %565 = arith.addf %562, %564 : vector<2x32xf32>
    %566 = vector.extract_strided_slice %478 {offsets = [6, 0], sizes = [2, 96], strides = [1, 1]} : vector<32x96xf32> to vector<2x96xf32>
    %cst_96 = arith.constant dense<0.000000e+00> : vector<2x96xf32>
    %567 = tpu.matmul %565, %479, %cst_96 {dimension_numbers = #tpu.dot_dimension_numbers<[1], [0], [0], [1], [0, 0, 1, 1], [], []>} : vector<2x32xf32>, vector<32x96xf32>, vector<2x96xf32> -> vector<2x96xf32>
    %568 = vector.extract_strided_slice %566 {offsets = [0, 0], sizes = [2, 32], strides = [1, 1]} : vector<2x96xf32> to vector<2x32xf32>
    %569 = vector.extract_strided_slice %567 {offsets = [0, 0], sizes = [2, 32], strides = [1, 1]} : vector<2x96xf32> to vector<2x32xf32>
    %570 = arith.addf %568, %569 : vector<2x32xf32>
    %571 = arith.negf %570 : vector<2x32xf32>
    %572 = math.exp %571 : vector<2x32xf32>
    %cst_97 = arith.constant 1.000000e+00 : f32
    %573 = vector.broadcast %cst_97 : f32 to vector<2x32xf32>
    %574 = arith.addf %573, %572 : vector<2x32xf32>
    %575 = arith.divf %573, %574 : vector<2x32xf32>
    %576 = vector.extract_strided_slice %566 {offsets = [0, 32], sizes = [2, 32], strides = [1, 1]} : vector<2x96xf32> to vector<2x32xf32>
    %577 = vector.extract_strided_slice %567 {offsets = [0, 32], sizes = [2, 32], strides = [1, 1]} : vector<2x96xf32> to vector<2x32xf32>
    %578 = arith.addf %576, %577 : vector<2x32xf32>
    %579 = arith.negf %578 : vector<2x32xf32>
    %580 = math.exp %579 : vector<2x32xf32>
    %cst_98 = arith.constant 1.000000e+00 : f32
    %581 = vector.broadcast %cst_98 : f32 to vector<2x32xf32>
    %582 = arith.addf %581, %580 : vector<2x32xf32>
    %583 = arith.divf %581, %582 : vector<2x32xf32>
    %584 = vector.extract_strided_slice %566 {offsets = [0, 64], sizes = [2, 32], strides = [1, 1]} : vector<2x96xf32> to vector<2x32xf32>
    %585 = vector.extract_strided_slice %567 {offsets = [0, 64], sizes = [2, 32], strides = [1, 1]} : vector<2x96xf32> to vector<2x32xf32>
    %586 = vector.broadcast %480 : vector<1x32xf32> to vector<2x32xf32>
    %587 = arith.addf %585, %586 : vector<2x32xf32>
    %588 = arith.mulf %575, %587 : vector<2x32xf32>
    %589 = arith.addf %584, %588 : vector<2x32xf32>
    %590 = math.tanh %589 : vector<2x32xf32>
    %591 = arith.subf %565, %590 : vector<2x32xf32>
    %592 = arith.mulf %583, %591 : vector<2x32xf32>
    %593 = arith.addf %590, %592 : vector<2x32xf32>
    %594 = vector.extract_strided_slice %478 {offsets = [8, 0], sizes = [2, 96], strides = [1, 1]} : vector<32x96xf32> to vector<2x96xf32>
    %cst_99 = arith.constant dense<0.000000e+00> : vector<2x96xf32>
    %595 = tpu.matmul %593, %479, %cst_99 {dimension_numbers = #tpu.dot_dimension_numbers<[1], [0], [0], [1], [0, 0, 1, 1], [], []>} : vector<2x32xf32>, vector<32x96xf32>, vector<2x96xf32> -> vector<2x96xf32>
    %596 = vector.extract_strided_slice %594 {offsets = [0, 0], sizes = [2, 32], strides = [1, 1]} : vector<2x96xf32> to vector<2x32xf32>
    %597 = vector.extract_strided_slice %595 {offsets = [0, 0], sizes = [2, 32], strides = [1, 1]} : vector<2x96xf32> to vector<2x32xf32>
    %598 = arith.addf %596, %597 : vector<2x32xf32>
    %599 = arith.negf %598 : vector<2x32xf32>
    %600 = math.exp %599 : vector<2x32xf32>
    %cst_100 = arith.constant 1.000000e+00 : f32
    %601 = vector.broadcast %cst_100 : f32 to vector<2x32xf32>
    %602 = arith.addf %601, %600 : vector<2x32xf32>
    %603 = arith.divf %601, %602 : vector<2x32xf32>
    %604 = vector.extract_strided_slice %594 {offsets = [0, 32], sizes = [2, 32], strides = [1, 1]} : vector<2x96xf32> to vector<2x32xf32>
    %605 = vector.extract_strided_slice %595 {offsets = [0, 32], sizes = [2, 32], strides = [1, 1]} : vector<2x96xf32> to vector<2x32xf32>
    %606 = arith.addf %604, %605 : vector<2x32xf32>
    %607 = arith.negf %606 : vector<2x32xf32>
    %608 = math.exp %607 : vector<2x32xf32>
    %cst_101 = arith.constant 1.000000e+00 : f32
    %609 = vector.broadcast %cst_101 : f32 to vector<2x32xf32>
    %610 = arith.addf %609, %608 : vector<2x32xf32>
    %611 = arith.divf %609, %610 : vector<2x32xf32>
    %612 = vector.extract_strided_slice %594 {offsets = [0, 64], sizes = [2, 32], strides = [1, 1]} : vector<2x96xf32> to vector<2x32xf32>
    %613 = vector.extract_strided_slice %595 {offsets = [0, 64], sizes = [2, 32], strides = [1, 1]} : vector<2x96xf32> to vector<2x32xf32>
    %614 = vector.broadcast %480 : vector<1x32xf32> to vector<2x32xf32>
    %615 = arith.addf %613, %614 : vector<2x32xf32>
    %616 = arith.mulf %603, %615 : vector<2x32xf32>
    %617 = arith.addf %612, %616 : vector<2x32xf32>
    %618 = math.tanh %617 : vector<2x32xf32>
    %619 = arith.subf %593, %618 : vector<2x32xf32>
    %620 = arith.mulf %611, %619 : vector<2x32xf32>
    %621 = arith.addf %618, %620 : vector<2x32xf32>
    %622 = vector.extract_strided_slice %478 {offsets = [10, 0], sizes = [2, 96], strides = [1, 1]} : vector<32x96xf32> to vector<2x96xf32>
    %cst_102 = arith.constant dense<0.000000e+00> : vector<2x96xf32>
    %623 = tpu.matmul %621, %479, %cst_102 {dimension_numbers = #tpu.dot_dimension_numbers<[1], [0], [0], [1], [0, 0, 1, 1], [], []>} : vector<2x32xf32>, vector<32x96xf32>, vector<2x96xf32> -> vector<2x96xf32>
    %624 = vector.extract_strided_slice %622 {offsets = [0, 0], sizes = [2, 32], strides = [1, 1]} : vector<2x96xf32> to vector<2x32xf32>
    %625 = vector.extract_strided_slice %623 {offsets = [0, 0], sizes = [2, 32], strides = [1, 1]} : vector<2x96xf32> to vector<2x32xf32>
    %626 = arith.addf %624, %625 : vector<2x32xf32>
    %627 = arith.negf %626 : vector<2x32xf32>
    %628 = math.exp %627 : vector<2x32xf32>
    %cst_103 = arith.constant 1.000000e+00 : f32
    %629 = vector.broadcast %cst_103 : f32 to vector<2x32xf32>
    %630 = arith.addf %629, %628 : vector<2x32xf32>
    %631 = arith.divf %629, %630 : vector<2x32xf32>
    %632 = vector.extract_strided_slice %622 {offsets = [0, 32], sizes = [2, 32], strides = [1, 1]} : vector<2x96xf32> to vector<2x32xf32>
    %633 = vector.extract_strided_slice %623 {offsets = [0, 32], sizes = [2, 32], strides = [1, 1]} : vector<2x96xf32> to vector<2x32xf32>
    %634 = arith.addf %632, %633 : vector<2x32xf32>
    %635 = arith.negf %634 : vector<2x32xf32>
    %636 = math.exp %635 : vector<2x32xf32>
    %cst_104 = arith.constant 1.000000e+00 : f32
    %637 = vector.broadcast %cst_104 : f32 to vector<2x32xf32>
    %638 = arith.addf %637, %636 : vector<2x32xf32>
    %639 = arith.divf %637, %638 : vector<2x32xf32>
    %640 = vector.extract_strided_slice %622 {offsets = [0, 64], sizes = [2, 32], strides = [1, 1]} : vector<2x96xf32> to vector<2x32xf32>
    %641 = vector.extract_strided_slice %623 {offsets = [0, 64], sizes = [2, 32], strides = [1, 1]} : vector<2x96xf32> to vector<2x32xf32>
    %642 = vector.broadcast %480 : vector<1x32xf32> to vector<2x32xf32>
    %643 = arith.addf %641, %642 : vector<2x32xf32>
    %644 = arith.mulf %631, %643 : vector<2x32xf32>
    %645 = arith.addf %640, %644 : vector<2x32xf32>
    %646 = math.tanh %645 : vector<2x32xf32>
    %647 = arith.subf %621, %646 : vector<2x32xf32>
    %648 = arith.mulf %639, %647 : vector<2x32xf32>
    %649 = arith.addf %646, %648 : vector<2x32xf32>
    %650 = vector.extract_strided_slice %478 {offsets = [12, 0], sizes = [2, 96], strides = [1, 1]} : vector<32x96xf32> to vector<2x96xf32>
    %cst_105 = arith.constant dense<0.000000e+00> : vector<2x96xf32>
    %651 = tpu.matmul %649, %479, %cst_105 {dimension_numbers = #tpu.dot_dimension_numbers<[1], [0], [0], [1], [0, 0, 1, 1], [], []>} : vector<2x32xf32>, vector<32x96xf32>, vector<2x96xf32> -> vector<2x96xf32>
    %652 = vector.extract_strided_slice %650 {offsets = [0, 0], sizes = [2, 32], strides = [1, 1]} : vector<2x96xf32> to vector<2x32xf32>
    %653 = vector.extract_strided_slice %651 {offsets = [0, 0], sizes = [2, 32], strides = [1, 1]} : vector<2x96xf32> to vector<2x32xf32>
    %654 = arith.addf %652, %653 : vector<2x32xf32>
    %655 = arith.negf %654 : vector<2x32xf32>
    %656 = math.exp %655 : vector<2x32xf32>
    %cst_106 = arith.constant 1.000000e+00 : f32
    %657 = vector.broadcast %cst_106 : f32 to vector<2x32xf32>
    %658 = arith.addf %657, %656 : vector<2x32xf32>
    %659 = arith.divf %657, %658 : vector<2x32xf32>
    %660 = vector.extract_strided_slice %650 {offsets = [0, 32], sizes = [2, 32], strides = [1, 1]} : vector<2x96xf32> to vector<2x32xf32>
    %661 = vector.extract_strided_slice %651 {offsets = [0, 32], sizes = [2, 32], strides = [1, 1]} : vector<2x96xf32> to vector<2x32xf32>
    %662 = arith.addf %660, %661 : vector<2x32xf32>
    %663 = arith.negf %662 : vector<2x32xf32>
    %664 = math.exp %663 : vector<2x32xf32>
    %cst_107 = arith.constant 1.000000e+00 : f32
    %665 = vector.broadcast %cst_107 : f32 to vector<2x32xf32>
    %666 = arith.addf %665, %664 : vector<2x32xf32>
    %667 = arith.divf %665, %666 : vector<2x32xf32>
    %668 = vector.extract_strided_slice %650 {offsets = [0, 64], sizes = [2, 32], strides = [1, 1]} : vector<2x96xf32> to vector<2x32xf32>
    %669 = vector.extract_strided_slice %651 {offsets = [0, 64], sizes = [2, 32], strides = [1, 1]} : vector<2x96xf32> to vector<2x32xf32>
    %670 = vector.broadcast %480 : vector<1x32xf32> to vector<2x32xf32>
    %671 = arith.addf %669, %670 : vector<2x32xf32>
    %672 = arith.mulf %659, %671 : vector<2x32xf32>
    %673 = arith.addf %668, %672 : vector<2x32xf32>
    %674 = math.tanh %673 : vector<2x32xf32>
    %675 = arith.subf %649, %674 : vector<2x32xf32>
    %676 = arith.mulf %667, %675 : vector<2x32xf32>
    %677 = arith.addf %674, %676 : vector<2x32xf32>
    %678 = vector.extract_strided_slice %478 {offsets = [14, 0], sizes = [2, 96], strides = [1, 1]} : vector<32x96xf32> to vector<2x96xf32>
    %cst_108 = arith.constant dense<0.000000e+00> : vector<2x96xf32>
    %679 = tpu.matmul %677, %479, %cst_108 {dimension_numbers = #tpu.dot_dimension_numbers<[1], [0], [0], [1], [0, 0, 1, 1], [], []>} : vector<2x32xf32>, vector<32x96xf32>, vector<2x96xf32> -> vector<2x96xf32>
    %680 = vector.extract_strided_slice %678 {offsets = [0, 0], sizes = [2, 32], strides = [1, 1]} : vector<2x96xf32> to vector<2x32xf32>
    %681 = vector.extract_strided_slice %679 {offsets = [0, 0], sizes = [2, 32], strides = [1, 1]} : vector<2x96xf32> to vector<2x32xf32>
    %682 = arith.addf %680, %681 : vector<2x32xf32>
    %683 = arith.negf %682 : vector<2x32xf32>
    %684 = math.exp %683 : vector<2x32xf32>
    %cst_109 = arith.constant 1.000000e+00 : f32
    %685 = vector.broadcast %cst_109 : f32 to vector<2x32xf32>
    %686 = arith.addf %685, %684 : vector<2x32xf32>
    %687 = arith.divf %685, %686 : vector<2x32xf32>
    %688 = vector.extract_strided_slice %678 {offsets = [0, 32], sizes = [2, 32], strides = [1, 1]} : vector<2x96xf32> to vector<2x32xf32>
    %689 = vector.extract_strided_slice %679 {offsets = [0, 32], sizes = [2, 32], strides = [1, 1]} : vector<2x96xf32> to vector<2x32xf32>
    %690 = arith.addf %688, %689 : vector<2x32xf32>
    %691 = arith.negf %690 : vector<2x32xf32>
    %692 = math.exp %691 : vector<2x32xf32>
    %cst_110 = arith.constant 1.000000e+00 : f32
    %693 = vector.broadcast %cst_110 : f32 to vector<2x32xf32>
    %694 = arith.addf %693, %692 : vector<2x32xf32>
    %695 = arith.divf %693, %694 : vector<2x32xf32>
    %696 = vector.extract_strided_slice %678 {offsets = [0, 64], sizes = [2, 32], strides = [1, 1]} : vector<2x96xf32> to vector<2x32xf32>
    %697 = vector.extract_strided_slice %679 {offsets = [0, 64], sizes = [2, 32], strides = [1, 1]} : vector<2x96xf32> to vector<2x32xf32>
    %698 = vector.broadcast %480 : vector<1x32xf32> to vector<2x32xf32>
    %699 = arith.addf %697, %698 : vector<2x32xf32>
    %700 = arith.mulf %687, %699 : vector<2x32xf32>
    %701 = arith.addf %696, %700 : vector<2x32xf32>
    %702 = math.tanh %701 : vector<2x32xf32>
    %703 = arith.subf %677, %702 : vector<2x32xf32>
    %704 = arith.mulf %695, %703 : vector<2x32xf32>
    %705 = arith.addf %702, %704 : vector<2x32xf32>
    %706 = vector.extract_strided_slice %478 {offsets = [16, 0], sizes = [2, 96], strides = [1, 1]} : vector<32x96xf32> to vector<2x96xf32>
    %cst_111 = arith.constant dense<0.000000e+00> : vector<2x96xf32>
    %707 = tpu.matmul %705, %479, %cst_111 {dimension_numbers = #tpu.dot_dimension_numbers<[1], [0], [0], [1], [0, 0, 1, 1], [], []>} : vector<2x32xf32>, vector<32x96xf32>, vector<2x96xf32> -> vector<2x96xf32>
    %708 = vector.extract_strided_slice %706 {offsets = [0, 0], sizes = [2, 32], strides = [1, 1]} : vector<2x96xf32> to vector<2x32xf32>
    %709 = vector.extract_strided_slice %707 {offsets = [0, 0], sizes = [2, 32], strides = [1, 1]} : vector<2x96xf32> to vector<2x32xf32>
    %710 = arith.addf %708, %709 : vector<2x32xf32>
    %711 = arith.negf %710 : vector<2x32xf32>
    %712 = math.exp %711 : vector<2x32xf32>
    %cst_112 = arith.constant 1.000000e+00 : f32
    %713 = vector.broadcast %cst_112 : f32 to vector<2x32xf32>
    %714 = arith.addf %713, %712 : vector<2x32xf32>
    %715 = arith.divf %713, %714 : vector<2x32xf32>
    %716 = vector.extract_strided_slice %706 {offsets = [0, 32], sizes = [2, 32], strides = [1, 1]} : vector<2x96xf32> to vector<2x32xf32>
    %717 = vector.extract_strided_slice %707 {offsets = [0, 32], sizes = [2, 32], strides = [1, 1]} : vector<2x96xf32> to vector<2x32xf32>
    %718 = arith.addf %716, %717 : vector<2x32xf32>
    %719 = arith.negf %718 : vector<2x32xf32>
    %720 = math.exp %719 : vector<2x32xf32>
    %cst_113 = arith.constant 1.000000e+00 : f32
    %721 = vector.broadcast %cst_113 : f32 to vector<2x32xf32>
    %722 = arith.addf %721, %720 : vector<2x32xf32>
    %723 = arith.divf %721, %722 : vector<2x32xf32>
    %724 = vector.extract_strided_slice %706 {offsets = [0, 64], sizes = [2, 32], strides = [1, 1]} : vector<2x96xf32> to vector<2x32xf32>
    %725 = vector.extract_strided_slice %707 {offsets = [0, 64], sizes = [2, 32], strides = [1, 1]} : vector<2x96xf32> to vector<2x32xf32>
    %726 = vector.broadcast %480 : vector<1x32xf32> to vector<2x32xf32>
    %727 = arith.addf %725, %726 : vector<2x32xf32>
    %728 = arith.mulf %715, %727 : vector<2x32xf32>
    %729 = arith.addf %724, %728 : vector<2x32xf32>
    %730 = math.tanh %729 : vector<2x32xf32>
    %731 = arith.subf %705, %730 : vector<2x32xf32>
    %732 = arith.mulf %723, %731 : vector<2x32xf32>
    %733 = arith.addf %730, %732 : vector<2x32xf32>
    %734 = vector.extract_strided_slice %478 {offsets = [18, 0], sizes = [2, 96], strides = [1, 1]} : vector<32x96xf32> to vector<2x96xf32>
    %cst_114 = arith.constant dense<0.000000e+00> : vector<2x96xf32>
    %735 = tpu.matmul %733, %479, %cst_114 {dimension_numbers = #tpu.dot_dimension_numbers<[1], [0], [0], [1], [0, 0, 1, 1], [], []>} : vector<2x32xf32>, vector<32x96xf32>, vector<2x96xf32> -> vector<2x96xf32>
    %736 = vector.extract_strided_slice %734 {offsets = [0, 0], sizes = [2, 32], strides = [1, 1]} : vector<2x96xf32> to vector<2x32xf32>
    %737 = vector.extract_strided_slice %735 {offsets = [0, 0], sizes = [2, 32], strides = [1, 1]} : vector<2x96xf32> to vector<2x32xf32>
    %738 = arith.addf %736, %737 : vector<2x32xf32>
    %739 = arith.negf %738 : vector<2x32xf32>
    %740 = math.exp %739 : vector<2x32xf32>
    %cst_115 = arith.constant 1.000000e+00 : f32
    %741 = vector.broadcast %cst_115 : f32 to vector<2x32xf32>
    %742 = arith.addf %741, %740 : vector<2x32xf32>
    %743 = arith.divf %741, %742 : vector<2x32xf32>
    %744 = vector.extract_strided_slice %734 {offsets = [0, 32], sizes = [2, 32], strides = [1, 1]} : vector<2x96xf32> to vector<2x32xf32>
    %745 = vector.extract_strided_slice %735 {offsets = [0, 32], sizes = [2, 32], strides = [1, 1]} : vector<2x96xf32> to vector<2x32xf32>
    %746 = arith.addf %744, %745 : vector<2x32xf32>
    %747 = arith.negf %746 : vector<2x32xf32>
    %748 = math.exp %747 : vector<2x32xf32>
    %cst_116 = arith.constant 1.000000e+00 : f32
    %749 = vector.broadcast %cst_116 : f32 to vector<2x32xf32>
    %750 = arith.addf %749, %748 : vector<2x32xf32>
    %751 = arith.divf %749, %750 : vector<2x32xf32>
    %752 = vector.extract_strided_slice %734 {offsets = [0, 64], sizes = [2, 32], strides = [1, 1]} : vector<2x96xf32> to vector<2x32xf32>
    %753 = vector.extract_strided_slice %735 {offsets = [0, 64], sizes = [2, 32], strides = [1, 1]} : vector<2x96xf32> to vector<2x32xf32>
    %754 = vector.broadcast %480 : vector<1x32xf32> to vector<2x32xf32>
    %755 = arith.addf %753, %754 : vector<2x32xf32>
    %756 = arith.mulf %743, %755 : vector<2x32xf32>
    %757 = arith.addf %752, %756 : vector<2x32xf32>
    %758 = math.tanh %757 : vector<2x32xf32>
    %759 = arith.subf %733, %758 : vector<2x32xf32>
    %760 = arith.mulf %751, %759 : vector<2x32xf32>
    %761 = arith.addf %758, %760 : vector<2x32xf32>
    %762 = vector.extract_strided_slice %478 {offsets = [20, 0], sizes = [2, 96], strides = [1, 1]} : vector<32x96xf32> to vector<2x96xf32>
    %cst_117 = arith.constant dense<0.000000e+00> : vector<2x96xf32>
    %763 = tpu.matmul %761, %479, %cst_117 {dimension_numbers = #tpu.dot_dimension_numbers<[1], [0], [0], [1], [0, 0, 1, 1], [], []>} : vector<2x32xf32>, vector<32x96xf32>, vector<2x96xf32> -> vector<2x96xf32>
    %764 = vector.extract_strided_slice %762 {offsets = [0, 0], sizes = [2, 32], strides = [1, 1]} : vector<2x96xf32> to vector<2x32xf32>
    %765 = vector.extract_strided_slice %763 {offsets = [0, 0], sizes = [2, 32], strides = [1, 1]} : vector<2x96xf32> to vector<2x32xf32>
    %766 = arith.addf %764, %765 : vector<2x32xf32>
    %767 = arith.negf %766 : vector<2x32xf32>
    %768 = math.exp %767 : vector<2x32xf32>
    %cst_118 = arith.constant 1.000000e+00 : f32
    %769 = vector.broadcast %cst_118 : f32 to vector<2x32xf32>
    %770 = arith.addf %769, %768 : vector<2x32xf32>
    %771 = arith.divf %769, %770 : vector<2x32xf32>
    %772 = vector.extract_strided_slice %762 {offsets = [0, 32], sizes = [2, 32], strides = [1, 1]} : vector<2x96xf32> to vector<2x32xf32>
    %773 = vector.extract_strided_slice %763 {offsets = [0, 32], sizes = [2, 32], strides = [1, 1]} : vector<2x96xf32> to vector<2x32xf32>
    %774 = arith.addf %772, %773 : vector<2x32xf32>
    %775 = arith.negf %774 : vector<2x32xf32>
    %776 = math.exp %775 : vector<2x32xf32>
    %cst_119 = arith.constant 1.000000e+00 : f32
    %777 = vector.broadcast %cst_119 : f32 to vector<2x32xf32>
    %778 = arith.addf %777, %776 : vector<2x32xf32>
    %779 = arith.divf %777, %778 : vector<2x32xf32>
    %780 = vector.extract_strided_slice %762 {offsets = [0, 64], sizes = [2, 32], strides = [1, 1]} : vector<2x96xf32> to vector<2x32xf32>
    %781 = vector.extract_strided_slice %763 {offsets = [0, 64], sizes = [2, 32], strides = [1, 1]} : vector<2x96xf32> to vector<2x32xf32>
    %782 = vector.broadcast %480 : vector<1x32xf32> to vector<2x32xf32>
    %783 = arith.addf %781, %782 : vector<2x32xf32>
    %784 = arith.mulf %771, %783 : vector<2x32xf32>
    %785 = arith.addf %780, %784 : vector<2x32xf32>
    %786 = math.tanh %785 : vector<2x32xf32>
    %787 = arith.subf %761, %786 : vector<2x32xf32>
    %788 = arith.mulf %779, %787 : vector<2x32xf32>
    %789 = arith.addf %786, %788 : vector<2x32xf32>
    %790 = vector.extract_strided_slice %478 {offsets = [22, 0], sizes = [2, 96], strides = [1, 1]} : vector<32x96xf32> to vector<2x96xf32>
    %cst_120 = arith.constant dense<0.000000e+00> : vector<2x96xf32>
    %791 = tpu.matmul %789, %479, %cst_120 {dimension_numbers = #tpu.dot_dimension_numbers<[1], [0], [0], [1], [0, 0, 1, 1], [], []>} : vector<2x32xf32>, vector<32x96xf32>, vector<2x96xf32> -> vector<2x96xf32>
    %792 = vector.extract_strided_slice %790 {offsets = [0, 0], sizes = [2, 32], strides = [1, 1]} : vector<2x96xf32> to vector<2x32xf32>
    %793 = vector.extract_strided_slice %791 {offsets = [0, 0], sizes = [2, 32], strides = [1, 1]} : vector<2x96xf32> to vector<2x32xf32>
    %794 = arith.addf %792, %793 : vector<2x32xf32>
    %795 = arith.negf %794 : vector<2x32xf32>
    %796 = math.exp %795 : vector<2x32xf32>
    %cst_121 = arith.constant 1.000000e+00 : f32
    %797 = vector.broadcast %cst_121 : f32 to vector<2x32xf32>
    %798 = arith.addf %797, %796 : vector<2x32xf32>
    %799 = arith.divf %797, %798 : vector<2x32xf32>
    %800 = vector.extract_strided_slice %790 {offsets = [0, 32], sizes = [2, 32], strides = [1, 1]} : vector<2x96xf32> to vector<2x32xf32>
    %801 = vector.extract_strided_slice %791 {offsets = [0, 32], sizes = [2, 32], strides = [1, 1]} : vector<2x96xf32> to vector<2x32xf32>
    %802 = arith.addf %800, %801 : vector<2x32xf32>
    %803 = arith.negf %802 : vector<2x32xf32>
    %804 = math.exp %803 : vector<2x32xf32>
    %cst_122 = arith.constant 1.000000e+00 : f32
    %805 = vector.broadcast %cst_122 : f32 to vector<2x32xf32>
    %806 = arith.addf %805, %804 : vector<2x32xf32>
    %807 = arith.divf %805, %806 : vector<2x32xf32>
    %808 = vector.extract_strided_slice %790 {offsets = [0, 64], sizes = [2, 32], strides = [1, 1]} : vector<2x96xf32> to vector<2x32xf32>
    %809 = vector.extract_strided_slice %791 {offsets = [0, 64], sizes = [2, 32], strides = [1, 1]} : vector<2x96xf32> to vector<2x32xf32>
    %810 = vector.broadcast %480 : vector<1x32xf32> to vector<2x32xf32>
    %811 = arith.addf %809, %810 : vector<2x32xf32>
    %812 = arith.mulf %799, %811 : vector<2x32xf32>
    %813 = arith.addf %808, %812 : vector<2x32xf32>
    %814 = math.tanh %813 : vector<2x32xf32>
    %815 = arith.subf %789, %814 : vector<2x32xf32>
    %816 = arith.mulf %807, %815 : vector<2x32xf32>
    %817 = arith.addf %814, %816 : vector<2x32xf32>
    %818 = vector.extract_strided_slice %478 {offsets = [24, 0], sizes = [2, 96], strides = [1, 1]} : vector<32x96xf32> to vector<2x96xf32>
    %cst_123 = arith.constant dense<0.000000e+00> : vector<2x96xf32>
    %819 = tpu.matmul %817, %479, %cst_123 {dimension_numbers = #tpu.dot_dimension_numbers<[1], [0], [0], [1], [0, 0, 1, 1], [], []>} : vector<2x32xf32>, vector<32x96xf32>, vector<2x96xf32> -> vector<2x96xf32>
    %820 = vector.extract_strided_slice %818 {offsets = [0, 0], sizes = [2, 32], strides = [1, 1]} : vector<2x96xf32> to vector<2x32xf32>
    %821 = vector.extract_strided_slice %819 {offsets = [0, 0], sizes = [2, 32], strides = [1, 1]} : vector<2x96xf32> to vector<2x32xf32>
    %822 = arith.addf %820, %821 : vector<2x32xf32>
    %823 = arith.negf %822 : vector<2x32xf32>
    %824 = math.exp %823 : vector<2x32xf32>
    %cst_124 = arith.constant 1.000000e+00 : f32
    %825 = vector.broadcast %cst_124 : f32 to vector<2x32xf32>
    %826 = arith.addf %825, %824 : vector<2x32xf32>
    %827 = arith.divf %825, %826 : vector<2x32xf32>
    %828 = vector.extract_strided_slice %818 {offsets = [0, 32], sizes = [2, 32], strides = [1, 1]} : vector<2x96xf32> to vector<2x32xf32>
    %829 = vector.extract_strided_slice %819 {offsets = [0, 32], sizes = [2, 32], strides = [1, 1]} : vector<2x96xf32> to vector<2x32xf32>
    %830 = arith.addf %828, %829 : vector<2x32xf32>
    %831 = arith.negf %830 : vector<2x32xf32>
    %832 = math.exp %831 : vector<2x32xf32>
    %cst_125 = arith.constant 1.000000e+00 : f32
    %833 = vector.broadcast %cst_125 : f32 to vector<2x32xf32>
    %834 = arith.addf %833, %832 : vector<2x32xf32>
    %835 = arith.divf %833, %834 : vector<2x32xf32>
    %836 = vector.extract_strided_slice %818 {offsets = [0, 64], sizes = [2, 32], strides = [1, 1]} : vector<2x96xf32> to vector<2x32xf32>
    %837 = vector.extract_strided_slice %819 {offsets = [0, 64], sizes = [2, 32], strides = [1, 1]} : vector<2x96xf32> to vector<2x32xf32>
    %838 = vector.broadcast %480 : vector<1x32xf32> to vector<2x32xf32>
    %839 = arith.addf %837, %838 : vector<2x32xf32>
    %840 = arith.mulf %827, %839 : vector<2x32xf32>
    %841 = arith.addf %836, %840 : vector<2x32xf32>
    %842 = math.tanh %841 : vector<2x32xf32>
    %843 = arith.subf %817, %842 : vector<2x32xf32>
    %844 = arith.mulf %835, %843 : vector<2x32xf32>
    %845 = arith.addf %842, %844 : vector<2x32xf32>
    %c0_126 = arith.constant 0 : index
    %c0_127 = arith.constant 0 : index
    %846 = vector.load %arg12[%c0_126, %c0_127] : memref<32x32xf32, #tpu.memory_space<vmem>>, vector<2x32xf32>
    tpu.vector_store %arg12[%c0_126, %c0_127], %845 {strides = array<i32>} : memref<32x32xf32, #tpu.memory_space<vmem>>, vector<2x32xf32>,
    %847 = vector.extract_strided_slice %478 {offsets = [26, 0], sizes = [2, 96], strides = [1, 1]} : vector<32x96xf32> to vector<2x96xf32>
    %cst_128 = arith.constant dense<0.000000e+00> : vector<2x96xf32>
    %848 = tpu.matmul %845, %479, %cst_128 {dimension_numbers = #tpu.dot_dimension_numbers<[1], [0], [0], [1], [0, 0, 1, 1], [], []>} : vector<2x32xf32>, vector<32x96xf32>, vector<2x96xf32> -> vector<2x96xf32>
    %849 = vector.extract_strided_slice %847 {offsets = [0, 0], sizes = [2, 32], strides = [1, 1]} : vector<2x96xf32> to vector<2x32xf32>
    %850 = vector.extract_strided_slice %848 {offsets = [0, 0], sizes = [2, 32], strides = [1, 1]} : vector<2x96xf32> to vector<2x32xf32>
    %851 = arith.addf %849, %850 : vector<2x32xf32>
    %852 = arith.negf %851 : vector<2x32xf32>
    %853 = math.exp %852 : vector<2x32xf32>
    %cst_129 = arith.constant 1.000000e+00 : f32
    %854 = vector.broadcast %cst_129 : f32 to vector<2x32xf32>
    %855 = arith.addf %854, %853 : vector<2x32xf32>
    %856 = arith.divf %854, %855 : vector<2x32xf32>
    %857 = vector.extract_strided_slice %847 {offsets = [0, 32], sizes = [2, 32], strides = [1, 1]} : vector<2x96xf32> to vector<2x32xf32>
    %858 = vector.extract_strided_slice %848 {offsets = [0, 32], sizes = [2, 32], strides = [1, 1]} : vector<2x96xf32> to vector<2x32xf32>
    %859 = arith.addf %857, %858 : vector<2x32xf32>
    %860 = arith.negf %859 : vector<2x32xf32>
    %861 = math.exp %860 : vector<2x32xf32>
    %cst_130 = arith.constant 1.000000e+00 : f32
    %862 = vector.broadcast %cst_130 : f32 to vector<2x32xf32>
    %863 = arith.addf %862, %861 : vector<2x32xf32>
    %864 = arith.divf %862, %863 : vector<2x32xf32>
    %865 = vector.extract_strided_slice %847 {offsets = [0, 64], sizes = [2, 32], strides = [1, 1]} : vector<2x96xf32> to vector<2x32xf32>
    %866 = vector.extract_strided_slice %848 {offsets = [0, 64], sizes = [2, 32], strides = [1, 1]} : vector<2x96xf32> to vector<2x32xf32>
    %867 = vector.broadcast %480 : vector<1x32xf32> to vector<2x32xf32>
    %868 = arith.addf %866, %867 : vector<2x32xf32>
    %869 = arith.mulf %856, %868 : vector<2x32xf32>
    %870 = arith.addf %865, %869 : vector<2x32xf32>
    %871 = math.tanh %870 : vector<2x32xf32>
    %872 = arith.subf %845, %871 : vector<2x32xf32>
    %873 = arith.mulf %864, %872 : vector<2x32xf32>
    %874 = arith.addf %871, %873 : vector<2x32xf32>
    %c2_131 = arith.constant 2 : index
    %c0_132 = arith.constant 0 : index
    %875 = vector.load %arg12[%c2_131, %c0_132] : memref<32x32xf32, #tpu.memory_space<vmem>>, vector<2x32xf32>
    tpu.vector_store %arg12[%c2_131, %c0_132], %874 {strides = array<i32>} : memref<32x32xf32, #tpu.memory_space<vmem>>, vector<2x32xf32>,
    %876 = vector.extract_strided_slice %478 {offsets = [28, 0], sizes = [2, 96], strides = [1, 1]} : vector<32x96xf32> to vector<2x96xf32>
    %cst_133 = arith.constant dense<0.000000e+00> : vector<2x96xf32>
    %877 = tpu.matmul %874, %479, %cst_133 {dimension_numbers = #tpu.dot_dimension_numbers<[1], [0], [0], [1], [0, 0, 1, 1], [], []>} : vector<2x32xf32>, vector<32x96xf32>, vector<2x96xf32> -> vector<2x96xf32>
    %878 = vector.extract_strided_slice %876 {offsets = [0, 0], sizes = [2, 32], strides = [1, 1]} : vector<2x96xf32> to vector<2x32xf32>
    %879 = vector.extract_strided_slice %877 {offsets = [0, 0], sizes = [2, 32], strides = [1, 1]} : vector<2x96xf32> to vector<2x32xf32>
    %880 = arith.addf %878, %879 : vector<2x32xf32>
    %881 = arith.negf %880 : vector<2x32xf32>
    %882 = math.exp %881 : vector<2x32xf32>
    %cst_134 = arith.constant 1.000000e+00 : f32
    %883 = vector.broadcast %cst_134 : f32 to vector<2x32xf32>
    %884 = arith.addf %883, %882 : vector<2x32xf32>
    %885 = arith.divf %883, %884 : vector<2x32xf32>
    %886 = vector.extract_strided_slice %876 {offsets = [0, 32], sizes = [2, 32], strides = [1, 1]} : vector<2x96xf32> to vector<2x32xf32>
    %887 = vector.extract_strided_slice %877 {offsets = [0, 32], sizes = [2, 32], strides = [1, 1]} : vector<2x96xf32> to vector<2x32xf32>
    %888 = arith.addf %886, %887 : vector<2x32xf32>
    %889 = arith.negf %888 : vector<2x32xf32>
    %890 = math.exp %889 : vector<2x32xf32>
    %cst_135 = arith.constant 1.000000e+00 : f32
    %891 = vector.broadcast %cst_135 : f32 to vector<2x32xf32>
    %892 = arith.addf %891, %890 : vector<2x32xf32>
    %893 = arith.divf %891, %892 : vector<2x32xf32>
    %894 = vector.extract_strided_slice %876 {offsets = [0, 64], sizes = [2, 32], strides = [1, 1]} : vector<2x96xf32> to vector<2x32xf32>
    %895 = vector.extract_strided_slice %877 {offsets = [0, 64], sizes = [2, 32], strides = [1, 1]} : vector<2x96xf32> to vector<2x32xf32>
    %896 = vector.broadcast %480 : vector<1x32xf32> to vector<2x32xf32>
    %897 = arith.addf %895, %896 : vector<2x32xf32>
    %898 = arith.mulf %885, %897 : vector<2x32xf32>
    %899 = arith.addf %894, %898 : vector<2x32xf32>
    %900 = math.tanh %899 : vector<2x32xf32>
    %901 = arith.subf %874, %900 : vector<2x32xf32>
    %902 = arith.mulf %893, %901 : vector<2x32xf32>
    %903 = arith.addf %900, %902 : vector<2x32xf32>
    %c4_136 = arith.constant 4 : index
    %c0_137 = arith.constant 0 : index
    %904 = vector.load %arg12[%c4_136, %c0_137] : memref<32x32xf32, #tpu.memory_space<vmem>>, vector<2x32xf32>
    tpu.vector_store %arg12[%c4_136, %c0_137], %903 {strides = array<i32>} : memref<32x32xf32, #tpu.memory_space<vmem>>, vector<2x32xf32>,
    %905 = vector.extract_strided_slice %478 {offsets = [30, 0], sizes = [2, 96], strides = [1, 1]} : vector<32x96xf32> to vector<2x96xf32>
    %cst_138 = arith.constant dense<0.000000e+00> : vector<2x96xf32>
    %906 = tpu.matmul %903, %479, %cst_138 {dimension_numbers = #tpu.dot_dimension_numbers<[1], [0], [0], [1], [0, 0, 1, 1], [], []>} : vector<2x32xf32>, vector<32x96xf32>, vector<2x96xf32> -> vector<2x96xf32>
    %907 = vector.extract_strided_slice %905 {offsets = [0, 0], sizes = [2, 32], strides = [1, 1]} : vector<2x96xf32> to vector<2x32xf32>
    %908 = vector.extract_strided_slice %906 {offsets = [0, 0], sizes = [2, 32], strides = [1, 1]} : vector<2x96xf32> to vector<2x32xf32>
    %909 = arith.addf %907, %908 : vector<2x32xf32>
    %910 = arith.negf %909 : vector<2x32xf32>
    %911 = math.exp %910 : vector<2x32xf32>
    %cst_139 = arith.constant 1.000000e+00 : f32
    %912 = vector.broadcast %cst_139 : f32 to vector<2x32xf32>
    %913 = arith.addf %912, %911 : vector<2x32xf32>
    %914 = arith.divf %912, %913 : vector<2x32xf32>
    %915 = vector.extract_strided_slice %905 {offsets = [0, 32], sizes = [2, 32], strides = [1, 1]} : vector<2x96xf32> to vector<2x32xf32>
    %916 = vector.extract_strided_slice %906 {offsets = [0, 32], sizes = [2, 32], strides = [1, 1]} : vector<2x96xf32> to vector<2x32xf32>
    %917 = arith.addf %915, %916 : vector<2x32xf32>
    %918 = arith.negf %917 : vector<2x32xf32>
    %919 = math.exp %918 : vector<2x32xf32>
    %cst_140 = arith.constant 1.000000e+00 : f32
    %920 = vector.broadcast %cst_140 : f32 to vector<2x32xf32>
    %921 = arith.addf %920, %919 : vector<2x32xf32>
    %922 = arith.divf %920, %921 : vector<2x32xf32>
    %923 = vector.extract_strided_slice %905 {offsets = [0, 64], sizes = [2, 32], strides = [1, 1]} : vector<2x96xf32> to vector<2x32xf32>
    %924 = vector.extract_strided_slice %906 {offsets = [0, 64], sizes = [2, 32], strides = [1, 1]} : vector<2x96xf32> to vector<2x32xf32>
    %925 = vector.broadcast %480 : vector<1x32xf32> to vector<2x32xf32>
    %926 = arith.addf %924, %925 : vector<2x32xf32>
    %927 = arith.mulf %914, %926 : vector<2x32xf32>
    %928 = arith.addf %923, %927 : vector<2x32xf32>
    %929 = math.tanh %928 : vector<2x32xf32>
    %930 = arith.subf %903, %929 : vector<2x32xf32>
    %931 = arith.mulf %922, %930 : vector<2x32xf32>
    %932 = arith.addf %929, %931 : vector<2x32xf32>
    %c6_141 = arith.constant 6 : index
    %c0_142 = arith.constant 0 : index
    %933 = vector.load %arg12[%c6_141, %c0_142] : memref<32x32xf32, #tpu.memory_space<vmem>>, vector<2x32xf32>
    tpu.vector_store %arg12[%c6_141, %c0_142], %932 {strides = array<i32>} : memref<32x32xf32, #tpu.memory_space<vmem>>, vector<2x32xf32>,
    %c0_143 = arith.constant 0 : index
    %c0_144 = arith.constant 0 : index
    %934 = vector.load %arg12[%c0_143, %c0_144] : memref<32x32xf32, #tpu.memory_space<vmem>>, vector<8x32xf32>
    %c0_145 = arith.constant 0 : index
    %c0_146 = arith.constant 0 : index
    %935 = vector.load %arg9[%c0_145, %c0_146] : memref<32x1xf32, #tpu.memory_space<vmem>>, vector<32x1xf32>
    %cst_147 = arith.constant dense<0.000000e+00> : vector<8x1xf32>
    %936 = tpu.matmul %934, %935, %cst_147 {dimension_numbers = #tpu.dot_dimension_numbers<[1], [0], [0], [1], [0, 0, 1, 1], [], []>} : vector<8x32xf32>, vector<32x1xf32>, vector<8x1xf32> -> vector<8x1xf32>
    %c0_148 = arith.constant 0 : index
    %c0_149 = arith.constant 0 : index
    %937 = vector.load %arg10[%c0_148, %c0_149] : memref<1x1xf32, #tpu.memory_space<vmem>>, vector<1x1xf32>
    %938 = vector.broadcast %937 : vector<1x1xf32> to vector<8x1xf32>
    %939 = arith.addf %936, %938 : vector<8x1xf32>
    %c0_150 = arith.constant 0 : index
    %c0_151 = arith.constant 0 : index
    %940 = vector.load %arg11[%c0_150, %c0_151] : memref<8x1xf32, #tpu.memory_space<vmem>>, vector<8x1xf32>
    tpu.vector_store %arg11[%c0_150, %c0_151], %939 {strides = array<i32>} : memref<8x1xf32, #tpu.memory_space<vmem>>, vector<8x1xf32>,
    return
  }
}

</mosaic_0001>

<bundles_post_ra>
// kernel: gru_model_forward.1
= control target key start
LH: loop header
LB: loop body
LE: loop exit
PB: predicated region body
PF: predicated region fallthrough
CT: control target
= control target key end

     0   :  { %vm65_vm0 = vcmask 1043456   ;;  %vm52_vm1 = vcmask 31744   ;;  %v5095_v0 = vmov 0.0|0.0   ;;  %vm5096_vm2 = vmmov 0   ;;  %s5098_s13 = smov 64   ;;  %s5100_s18 = smov 32   ;;  %s5885_s3 = inlined_call_operand.vmem [shape: f32[32,96], index: 3, kind: input, shape index: {}]   ;;  %s5886_s1 = inlined_call_operand.vmem [shape: f32[4,96], index: 1, kind: input, shape index: {}]   ;;  %s5887_s0 = inlined_call_operand.vmem [shape: f32[32,4], index: 0, kind: input, shape index: {}]   ;;  %s5888_s4 = inlined_call_operand.vmem [shape: f32[1,32], index: 4, kind: input, shape index: {}]   ;;  %s5889_s2 = inlined_call_operand.vmem [shape: f32[1,96], index: 2, kind: input, shape index: {}]   ;;  %s5890_s5 = inlined_call_operand.vmem [shape: f32[32,96], index: 5, kind: input, shape index: {}]   ;;  %s5891_s8 = inlined_call_operand.vmem [shape: f32[1,32], index: 8, kind: input, shape index: {}]   ;;  %s5892_s7 = inlined_call_operand.vmem [shape: f32[32,96], index: 7, kind: input, shape index: {}]   ;;  %s5893_s6 = inlined_call_operand.vmem [shape: f32[1,96], index: 6, kind: input, shape index: {}]   ;;  %s5894_s9 = inlined_call_operand.vmem [shape: f32[32,1], index: 9, kind: input, shape index: {}]   ;;  %s5895_s10 = inlined_call_operand.<no memory space> [shape: f32[1,1], index: 10, kind: input, shape index: {}]   ;;  %s5896_s11 = inlined_call_operand.vmem [shape: f32[8,1], index: 11, kind: output, shape index: {}]  }
   0x1   :  { %4691 = vmatprep.subr.bf16.mxu1 %v5095_v0  ;;  %v154_v1 = vld [vmem:[%s5885_s3] sm:$0xff]  ;;  %v155_v2 = vld [vmem:[%s5885_s3 + $0x8] sm:$0xff]  ;;  %v156_v7 = vld [vmem:[%s5885_s3 + $0x10] sm:$0xff]  ;;  %v5097_v8 = vmov 0.0   ;;  %vm275_vm3 = vcmask 254976   ;;  %vm159_vm4 = vcmask 261120  }
   0x2   :  { %v44_v3 = vld [vmem:[%s5886_s1] sm:$0xf]  ;;  %v5171_v4 = vpack.c.bf16 %v155_v2, %v154_v1  ;;  %v41_v6 = vld [vmem:[%s5887_s0 + $0x8] sm:$0xff]  ;;  %4322 = vmatprep.mubr.msk.f32.mxu1 %vm5096_vm2, %v5097_v8  ;;  %v157_v9 = vld [vmem:[%s5885_s3 + $0x18] sm:$0xff]  ;;  %vm391_vm5 = vcmask 257026   ;;  %vm629_vm6 = vcmask 261126  }
   0x3   :  { %4306 = vmatprep.subr.msk.mxu0 %vm65_vm0, %v44_v3  ;;  %v40_v5 = vld [vmem:[%s5887_s0] sm:$0xff]  ;;  %v5195_v11 = vpack.c.bf16 %v157_v9, %v156_v7  ;;  %v42_v31 = vld [vmem:[%s5887_s0 + $0x10] sm:$0xff]  ;;  %v43_v32 = vld [vmem:[%s5887_s0 + $0x18] sm:$0xff]  ;;  %vm510_vm7 = vcmask 259076   ;;  %vm4045_vm8 = vcmask 7168  }
   0x4   :  { %4307 = vmatpush3.msk.msra.mxu0 %vm65_vm0, %v44_v3  ;;  %4308 = vmatprep.mubr.msk.f32.mxu0 %vm52_vm1, %v40_v5  ;;  %v4058_v10 = vld [vmem:[%s5888_s4] ss:$0 sm:$0xff] }
   0x5   :  { %4693 = vmatpush3.bf16.msra.mxu1 %v5171_v4  ;;  %4309 = vmatmul.mubr.msk.f32.vlgmr.msra.gmra.mrb[0].mxu0 %vm52_vm1, %v41_v6  ;;  %v5222_v18 = vld [vmem:[%s5889_s2] ss:$0 sm:$0xff]  ;;  %s5099_s2 = smov 96  }
   0x6   :  { %4694 = vmatprep.subr.bf16.mxu1 %v5095_v0  ;;  %245 = vrot.lane.b32.xlu0 %v4058_v10, %s5098_s13 }
   0x7   :  { %4697 = vmatprep.subr.bf16.mxu0 %v5095_v0  ;;  %4311 = vmatprep.mubr.msk.f32.mxu0 %vm52_vm1, %v42_v31 }
   0x8   :  { %4699 = vmatpush3.bf16.msra.mxu0 %v5171_v4 }
   0x9   :  { %4696 = vmatpush3.bf16.msra.mxu1 %v5195_v11  ;;  %4700 = vmatprep.subr.bf16.mxu0 %v5095_v0 }
   0xa   :  { %4703 = vmatprep.subr.bf16.mxu1 %v5095_v0  ;;  %4312 = vmatmul.mubr.msk.f32.gmra.mrb[2].mxu0 %vm52_vm1, %v43_v32 }
   0xb   :  { %4333 = vmatprep.mubr.msk.f32.mxu0 %vm5096_vm2, %v5097_v8 }
   0xc   :  { %4323 = vmatmul.mubr.f32.vlgmr.msra.gmra.mrb[0].mxu1 %v5097_v8  ;;  %4702 = vmatpush3.bf16.msra.mxu0 %v5195_v11 }
   0xd   :  { %4705 = vmatpush3.bf16.msra.mxu1 %v5171_v4  ;;  %4344 = vmatprep.mubr.msk.f32.mxu1 %vm5096_vm2, %v5097_v8 }
   0xe   :  { %4706 = vmatprep.subr.bf16.mxu1 %v5095_v0  ;;  %4709 = vmatprep.subr.bf16.mxu0 %v5095_v0 }
  0x11   :  { %4708 = vmatpush3.bf16.msra.mxu1 %v5195_v11 }
  0x12   :  { %4715 = vmatprep.subr.bf16.mxu1 %v5095_v0 }
  0x78   :  { %v5215_v14 = vpop.permute.xlu0 %245 }
  0xd8   :  { %v5213_v12 = vpop.f32.mrb[0].mxu0 }
  0xd9   :  { %v135_v13 = vpop.f32.mrb[1].mxu0 }
  0xda   :  { %v5225_v19 = vadd.f32 %v5222_v18, %v135_v13 }
  0xdd   :  { %v5243_v37 = vpop.f32.mrb[2].mxu0 }
  0xde   :  { %v5245_v38 = vpop.f32.mrb[3].mxu0 }
  0xdf   :  { %v229_v15 = vpop.f32.mrb[0].mxu1 }
  0xe0   :  { %v248_v16 = vadd.f32 %v5215_v14, %v229_v15  ;;  %v4324_v17 = vpop.f32.mrb[1].mxu1  ;;  %v233_v20 = vadd.f32 %v229_v15, %v5225_v19 }
  0xe2   :  { %250 = vrot.lane.b32.xlu0 %v248_v16, %s5098_s13  ;;  %v4057_v21 = vmul.f32 -1.442695, %v233_v20 }
  0xe4   :  { %4903 = vpow2.f32 %v4057_v21 }
  0xee   :  { %v4904_v22 = vpop.eup %4903 }
  0xef   :  { %v237_v23 = vadd.f32 1.0, %v4904_v22 }
  0xf1   :  { %4905 = vrcp.f32 %v237_v23 }
  0xfb   :  { %v4906_v24 = vpop.eup %4905 }
 0x154   :  { %v251_v25 = vpop.permute.xlu0 %250 }
 0x155   :  { %v253_v26 = vmul.f32 %v4906_v24, %v251_v25 }
 0x157   :  { %255 = vrot.lane.b32.xlu1 %v253_v26, %s5098_s13 }
 0x1c9   :  { %v256_v27 = vpop.permute.xlu1 %255 }
 0x1ca   :  { %v258_v28 = vadd.f32 %v256_v27, %v5225_v19 }
 0x1cc   :  { %4907 = vtanh.f32 %v258_v28 }
 0x1d6   :  { %v4908_v29 = vpop.eup %4907 }
 0x1d7   :  { %v260_v30 = vsub.f32 0.0, %v4908_v29 }
 0x1d9   :  { %262 = vrot.lane.b32.xlu1 %v260_v30, %s5099_s2 }
 0x24b   :  { %v263_v33 = vpop.permute.xlu1 %262 }
 0x24c   :  { %v265_v34 = vmul.f32 %v4906_v24, %v263_v33 }
 0x24e   :  { %267 = vrot.lane.b32.xlu0 %v265_v34, %s5100_s18 }
 0x2c0   :  { %v268_v35 = vpop.permute.xlu0 %267 }
 0x2c1   :  { %v270_v36 = vadd.f32 %v4908_v29, %v268_v35 }
 0x2c3   :  { %272 = vrot.lane.b32.xlu1 %v270_v36, %s5098_s13 }
 0x335   :  { %v273_v39 = vpop.permute.xlu1 %272 }
 0x336   :  { %276 = vst.msk [vmem:[#allocation2] sm:$0x3] %vm275_vm3, %v273_v39  ;;  %4334 = vmatmul.mubr.msk.f32.vlgmr.msra.gmra.mrb[4].mxu0 %vm159_vm4, %v273_v39 }
 0x337   :  { %4711 = vmatpush3.bf16.msra.mxu0 %v5171_v4  ;;  %4355 = vmatprep.mubr.msk.f32.mxu0 %vm5096_vm2, %v5097_v8 }
 0x338   :  { %4712 = vmatprep.subr.bf16.mxu0 %v5095_v0 }
 0x33b   :  { %4714 = vmatpush3.bf16.msra.mxu0 %v5195_v11 }
 0x33c   :  { %4721 = vmatprep.subr.bf16.mxu0 %v5095_v0 }
 0x409   :  { %v345_v40 = vpop.f32.mrb[4].mxu0 }
 0x40a   :  { %v359_v41 = vadd.f32 %v345_v40, %v5215_v14  ;;  %v4335_v42 = vpop.f32.mrb[5].mxu0  ;;  %v350_v44 = vrot.slane %v345_v40, 6 }
 0x40c   :  { %v361_v43 = vrot.slane %v359_v41, 6  ;;  %v352_v45 = vadd.f32 %v350_v44, %v5225_v19 }
 0x40e   :  { %362 = vrot.lane.b32.xlu0 %v361_v43, %s5098_s13  ;;  %v4060_v46 = vmul.f32 -1.442695, %v352_v45 }
 0x410   :  { %4909 = vpow2.f32 %v4060_v46 }
 0x41a   :  { %v4910_v47 = vpop.eup %4909 }
 0x41b   :  { %v356_v48 = vadd.f32 1.0, %v4910_v47 }
 0x41d   :  { %4911 = vrcp.f32 %v356_v48 }
 0x427   :  { %v4912_v49 = vpop.eup %4911 }
 0x480   :  { %v363_v50 = vpop.permute.xlu0 %362 }
 0x481   :  { %v365_v51 = vmul.f32 %v4912_v49, %v363_v50 }
 0x483   :  { %367 = vrot.lane.b32.xlu1 %v365_v51, %s5098_s13 }
 0x4f5   :  { %v368_v52 = vpop.permute.xlu1 %367 }
 0x4f6   :  { %v370_v53 = vadd.f32 %v368_v52, %v5225_v19 }
 0x4f8   :  { %4913 = vtanh.f32 %v370_v53 }
 0x502   :  { %v4914_v54 = vpop.eup %4913 }
 0x503   :  { %v373_v55 = vrot.slane %v4914_v54, 2 }
 0x505   :  { %v375_v56 = vsub.f32 %v270_v36, %v373_v55 }
 0x507   :  { %v377_v57 = vrot.slane %v375_v56, 6 }
 0x509   :  { %378 = vrot.lane.b32.xlu0 %v377_v57, %s5099_s2 }
 0x57b   :  { %v379_v58 = vpop.permute.xlu0 %378 }
 0x57c   :  { %v381_v59 = vmul.f32 %v4912_v49, %v379_v58 }
 0x57e   :  { %383 = vrot.lane.b32.xlu1 %v381_v59, %s5100_s18 }
 0x5f0   :  { %v384_v60 = vpop.permute.xlu1 %383 }
 0x5f1   :  { %v5262_v61 = vadd.f32 %v4914_v54, %v384_v60  ;;  %v5315_v60 = vadd.f32 %v5213_v12, %v5222_v18 }
 0x5f3   :  { %v393_v62 = vrot.slane %v5262_v61, 2 }
 0x5f5   :  { %394 = vrot.lane.b32.xlu0 %v393_v62, %s5098_s13 }
 0x667   :  { %v395_v63 = vpop.permute.xlu0 %394 }
 0x668   :  { %4345 = vmatmul.mubr.msk.f32.vlgmr.msra.gmra.mrb[2].mxu1 %vm159_vm4, %v395_v63 }
 0x669   :  { %4717 = vmatpush3.bf16.msra.mxu1 %v5171_v4  ;;  %4366 = vmatprep.mubr.msk.f32.mxu1 %vm5096_vm2, %v5097_v8 }
 0x66a   :  { %4718 = vmatprep.subr.bf16.mxu1 %v5095_v0 }
 0x66d   :  { %4720 = vmatpush3.bf16.msra.mxu1 %v5195_v11 }
 0x66e   :  { %4727 = vmatprep.subr.bf16.mxu1 %v5095_v0 }
 0x73b   :  { %v464_v1 = vpop.f32.mrb[2].mxu1 }
 0x73c   :  { %v478_v2 = vadd.f32 %v464_v1, %v5215_v14  ;;  %v4346_v3 = vpop.f32.mrb[3].mxu1  ;;  %v469_v6 = vrot.slane %v464_v1, 4 }
 0x73e   :  { %v480_v5 = vrot.slane %v478_v2, 4  ;;  %v471_v7 = vadd.f32 %v469_v6, %v5225_v19 }
 0x740   :  { %481 = vrot.lane.b32.xlu1 %v480_v5, %s5098_s13  ;;  %v4062_v9 = vmul.f32 -1.442695, %v471_v7 }
 0x742   :  { %4915 = vpow2.f32 %v4062_v9 }
 0x74c   :  { %v4916_v10 = vpop.eup %4915 }
 0x74d   :  { %v475_v13 = vadd.f32 1.0, %v4916_v10 }
 0x74f   :  { %4917 = vrcp.f32 %v475_v13 }
 0x759   :  { %v4918_v15 = vpop.eup %4917 }
 0x7b2   :  { %v482_v16 = vpop.permute.xlu1 %481 }
 0x7b3   :  { %v484_v17 = vmul.f32 %v4918_v15, %v482_v16 }
 0x7b5   :  { %486 = vrot.lane.b32.xlu0 %v484_v17, %s5098_s13 }
 0x827   :  { %v487_v20 = vpop.permute.xlu0 %486 }
 0x828   :  { %v489_v21 = vadd.f32 %v487_v20, %v5225_v19 }
 0x82a   :  { %4919 = vtanh.f32 %v489_v21 }
 0x834   :  { %v4920_v22 = vpop.eup %4919 }
 0x835   :  { %v492_v23 = vrot.slane %v4920_v22, 2 }
 0x837   :  { %v494_v24 = vsub.f32 %v5262_v61, %v492_v23 }
 0x839   :  { %v496_v25 = vrot.slane %v494_v24, 6 }
 0x83b   :  { %497 = vrot.lane.b32.xlu1 %v496_v25, %s5099_s2 }
 0x8ad   :  { %v498_v26 = vpop.permute.xlu1 %497 }
 0x8ae   :  { %v500_v27 = vmul.f32 %v4918_v15, %v498_v26 }
 0x8b0   :  { %502 = vrot.lane.b32.xlu0 %v500_v27, %s5100_s18 }
 0x922   :  { %v503_v28 = vpop.permute.xlu0 %502 }
 0x923   :  { %v5281_v29 = vadd.f32 %v4920_v22, %v503_v28 }
 0x925   :  { %v512_v30 = vrot.slane %v5281_v29, 4 }
 0x927   :  { %513 = vrot.lane.b32.xlu1 %v512_v30, %s5098_s13 }
 0x999   :  { %v514_v31 = vpop.permute.xlu1 %513 }
 0x99a   :  { %4356 = vmatmul.mubr.msk.f32.vlgmr.msra.gmra.mrb[6].mxu0 %vm159_vm4, %v514_v31 }
 0x99b   :  { %4723 = vmatpush3.bf16.msra.mxu0 %v5171_v4  ;;  %4377 = vmatprep.mubr.msk.f32.mxu0 %vm5096_vm2, %v5097_v8 }
 0x99c   :  { %4724 = vmatprep.subr.bf16.mxu0 %v5095_v0 }
 0x99f   :  { %4726 = vmatpush3.bf16.msra.mxu0 %v5195_v11 }
 0x9a0   :  { %4733 = vmatprep.subr.bf16.mxu0 %v5095_v0 }
 0xa6d   :  { %v583_v32 = vpop.f32.mrb[6].mxu0 }
 0xa6e   :  { %v597_v33 = vadd.f32 %v583_v32, %v5215_v14  ;;  %v4357_v34 = vpop.f32.mrb[7].mxu0  ;;  %v588_v36 = vrot.slane %v583_v32, 2 }
 0xa70   :  { %v599_v35 = vrot.slane %v597_v33, 2  ;;  %v590_v39 = vadd.f32 %v588_v36, %v5225_v19 }
 0xa72   :  { %600 = vrot.lane.b32.xlu0 %v599_v35, %s5098_s13  ;;  %v4064_v40 = vmul.f32 -1.442695, %v590_v39 }
 0xa74   :  { %4921 = vpow2.f32 %v4064_v40 }
 0xa7e   :  { %v4922_v41 = vpop.eup %4921 }
 0xa7f   :  { %v594_v42 = vadd.f32 1.0, %v4922_v41 }
 0xa81   :  { %4923 = vrcp.f32 %v594_v42 }
 0xa8b   :  { %v4924_v43 = vpop.eup %4923 }
 0xae4   :  { %v601_v44 = vpop.permute.xlu0 %600 }
 0xae5   :  { %v603_v45 = vmul.f32 %v4924_v43, %v601_v44 }
 0xae7   :  { %605 = vrot.lane.b32.xlu1 %v603_v45, %s5098_s13 }
 0xb59   :  { %v606_v46 = vpop.permute.xlu1 %605 }
 0xb5a   :  { %v608_v47 = vadd.f32 %v606_v46, %v5225_v19 }
 0xb5c   :  { %4925 = vtanh.f32 %v608_v47 }
 0xb66   :  { %v4926_v48 = vpop.eup %4925 }
 0xb67   :  { %v611_v49 = vrot.slane %v4926_v48, 2 }
 0xb69   :  { %v613_v50 = vsub.f32 %v5281_v29, %v611_v49 }
 0xb6b   :  { %v615_v51 = vrot.slane %v613_v50, 6 }
 0xb6d   :  { %616 = vrot.lane.b32.xlu0 %v615_v51, %s5099_s2 }
 0xbdf   :  { %v617_v52 = vpop.permute.xlu0 %616 }
 0xbe0   :  { %v619_v53 = vmul.f32 %v4924_v43, %v617_v52 }
 0xbe2   :  { %621 = vrot.lane.b32.xlu1 %v619_v53, %s5100_s18 }
 0xc54   :  { %v622_v54 = vpop.permute.xlu1 %621 }
 0xc55   :  { %v5300_v55 = vadd.f32 %v4926_v48, %v622_v54 }
 0xc57   :  { %v631_v56 = vrot.slane %v5300_v55, 6 }
 0xc59   :  { %632 = vrot.lane.b32.xlu0 %v631_v56, %s5098_s13 }
 0xccb   :  { %v633_v19 = vpop.permute.xlu0 %632 }
 0xccc   :  { %4367 = vmatmul.mubr.msk.f32.vlgmr.msra.gmra.mrb[4].mxu1 %vm159_vm4, %v633_v19 }
 0xccd   :  { %4729 = vmatpush3.bf16.msra.mxu1 %v5171_v4  ;;  %4388 = vmatprep.mubr.msk.f32.mxu1 %vm5096_vm2, %v5097_v8 }
 0xcce   :  { %4730 = vmatprep.subr.bf16.mxu1 %v5095_v0 }
 0xcd1   :  { %4732 = vmatpush3.bf16.msra.mxu1 %v5195_v11 }
 0xcd2   :  { %4739 = vmatprep.subr.bf16.mxu1 %v5095_v0 }
 0xd9f   :  { %v702_v57 = vpop.f32.mrb[4].mxu1 }
 0xda0   :  { %v713_v58 = vadd.f32 %v702_v57, %v5215_v14  ;;  %v4368_v59 = vpop.f32.mrb[5].mxu1  ;;  %v706_v62 = vadd.f32 %v702_v57, %v5315_v60 }
 0xda2   :  { %715 = vrot.lane.b32.xlu1 %v713_v58, %s5098_s13  ;;  %v4066_v63 = vmul.f32 -1.442695, %v706_v62 }
 0xda4   :  { %4927 = vpow2.f32 %v4066_v63 }
 0xdae   :  { %v4928_v1 = vpop.eup %4927 }
 0xdaf   :  { %v710_v2 = vadd.f32 1.0, %v4928_v1 }
 0xdb1   :  { %4929 = vrcp.f32 %v710_v2 }
 0xdbb   :  { %v4930_v3 = vpop.eup %4929 }
 0xe14   :  { %v716_v5 = vpop.permute.xlu1 %715 }
 0xe15   :  { %v718_v6 = vmul.f32 %v4930_v3, %v716_v5 }
 0xe17   :  { %720 = vrot.lane.b32.xlu0 %v718_v6, %s5098_s13 }
 0xe89   :  { %v721_v7 = vpop.permute.xlu0 %720 }
 0xe8a   :  { %v723_v9 = vadd.f32 %v721_v7, %v5315_v60 }
 0xe8c   :  { %4931 = vtanh.f32 %v723_v9 }
 0xe96   :  { %v4932_v10 = vpop.eup %4931 }
 0xe97   :  { %v726_v13 = vrot.slane %v4932_v10, 2 }
 0xe99   :  { %v728_v12 = vsub.f32 %v5300_v55, %v726_v13 }
 0xe9b   :  { %v730_v15 = vrot.slane %v728_v12, 6 }
 0xe9d   :  { %731 = vrot.lane.b32.xlu1 %v730_v15, %s5099_s2 }
 0xf0f   :  { %v732_v16 = vpop.permute.xlu1 %731 }
 0xf10   :  { %v734_v17 = vmul.f32 %v4930_v3, %v732_v16 }
 0xf12   :  { %736 = vrot.lane.b32.xlu0 %v734_v17, %s5100_s18 }
 0xf84   :  { %v737_v20 = vpop.permute.xlu0 %736 }
 0xf85   :  { %v739_v21 = vadd.f32 %v4932_v10, %v737_v20 }
 0xf87   :  { %741 = vrot.lane.b32.xlu1 %v739_v21, %s5098_s13 }
 0xff9   :  { %v742_v22 = vpop.permute.xlu1 %741 }
 0xffa   :  { %744 = vst.msk [vmem:[#allocation2 + $0x8] sm:$0x3] %vm275_vm3, %v742_v22  ;;  %4378 = vmatmul.mubr.msk.f32.vlgmr.msra.gmra.mrb[8].mxu0 %vm159_vm4, %v742_v22 }
 0xffb   :  { %4735 = vmatpush3.bf16.msra.mxu0 %v5171_v4  ;;  %4399 = vmatprep.mubr.msk.f32.mxu0 %vm5096_vm2, %v5097_v8 }
 0xffc   :  { %4736 = vmatprep.subr.bf16.mxu0 %v5095_v0 }
 0xfff   :  { %4738 = vmatpush3.bf16.msra.mxu0 %v5195_v11 }
0x1000   :  { %4745 = vmatprep.subr.bf16.mxu0 %v5095_v0 }
0x10cd   :  { %v813_v23 = vpop.f32.mrb[8].mxu0 }
0x10ce   :  { %v827_v24 = vadd.f32 %v813_v23, %v5215_v14  ;;  %v4379_v25 = vpop.f32.mrb[9].mxu0  ;;  %v818_v27 = vrot.slane %v813_v23, 6 }
0x10d0   :  { %v829_v26 = vrot.slane %v827_v24, 6  ;;  %v820_v28 = vadd.f32 %v818_v27, %v5315_v60 }
0x10d2   :  { %830 = vrot.lane.b32.xlu0 %v829_v26, %s5098_s13  ;;  %v4068_v30 = vmul.f32 -1.442695, %v820_v28 }
0x10d4   :  { %4933 = vpow2.f32 %v4068_v30 }
0x10de   :  { %v4934_v31 = vpop.eup %4933 }
0x10df   :  { %v824_v32 = vadd.f32 1.0, %v4934_v31 }
0x10e1   :  { %4935 = vrcp.f32 %v824_v32 }
0x10eb   :  { %v4936_v33 = vpop.eup %4935 }
0x1144   :  { %v831_v34 = vpop.permute.xlu0 %830 }
0x1145   :  { %v833_v35 = vmul.f32 %v4936_v33, %v831_v34 }
0x1147   :  { %835 = vrot.lane.b32.xlu1 %v833_v35, %s5098_s13 }
0x11b9   :  { %v836_v36 = vpop.permute.xlu1 %835 }
0x11ba   :  { %v838_v39 = vadd.f32 %v836_v36, %v5315_v60 }
0x11bc   :  { %4937 = vtanh.f32 %v838_v39 }
0x11c6   :  { %v4938_v40 = vpop.eup %4937 }
0x11c7   :  { %v841_v41 = vrot.slane %v4938_v40, 2 }
0x11c9   :  { %v843_v42 = vsub.f32 %v739_v21, %v841_v41 }
0x11cb   :  { %v845_v43 = vrot.slane %v843_v42, 6 }
0x11cd   :  { %846 = vrot.lane.b32.xlu0 %v845_v43, %s5099_s2 }
0x123f   :  { %v847_v44 = vpop.permute.xlu0 %846 }
0x1240   :  { %v849_v45 = vmul.f32 %v4936_v33, %v847_v44 }
0x1242   :  { %851 = vrot.lane.b32.xlu1 %v849_v45, %s5100_s18 }
0x12b4   :  { %v852_v46 = vpop.permute.xlu1 %851 }
0x12b5   :  { %v5339_v47 = vadd.f32 %v4938_v40, %v852_v46 }
0x12b7   :  { %v860_v48 = vrot.slane %v5339_v47, 2 }
0x12b9   :  { %861 = vrot.lane.b32.xlu0 %v860_v48, %s5098_s13 }
0x132b   :  { %v862_v49 = vpop.permute.xlu0 %861 }
0x132c   :  { %4389 = vmatmul.mubr.msk.f32.vlgmr.msra.gmra.mrb[6].mxu1 %vm159_vm4, %v862_v49  ;;  %v5392_v49 = vadd.f32 %v5222_v18, %v5245_v38 }
0x132d   :  { %4741 = vmatpush3.bf16.msra.mxu1 %v5171_v4  ;;  %4410 = vmatprep.mubr.msk.f32.mxu1 %vm5096_vm2, %v5097_v8 }
0x132e   :  { %4742 = vmatprep.subr.bf16.mxu1 %v5095_v0 }
0x1331   :  { %4744 = vmatpush3.bf16.msra.mxu1 %v5195_v11 }
0x1332   :  { %4751 = vmatprep.subr.bf16.mxu1 %v5095_v0 }
0x13ff   :  { %v931_v50 = vpop.f32.mrb[6].mxu1 }
0x1400   :  { %v945_v51 = vadd.f32 %v931_v50, %v5215_v14  ;;  %v4390_v52 = vpop.f32.mrb[7].mxu1  ;;  %v936_v54 = vrot.slane %v931_v50, 4 }
0x1402   :  { %v947_v53 = vrot.slane %v945_v51, 4  ;;  %v938_v56 = vadd.f32 %v936_v54, %v5315_v60 }
0x1404   :  { %948 = vrot.lane.b32.xlu1 %v947_v53, %s5098_s13  ;;  %v4070_v19 = vmul.f32 -1.442695, %v938_v56 }
0x1406   :  { %4939 = vpow2.f32 %v4070_v19 }
0x1410   :  { %v4940_v57 = vpop.eup %4939 }
0x1411   :  { %v942_v58 = vadd.f32 1.0, %v4940_v57 }
0x1413   :  { %4941 = vrcp.f32 %v942_v58 }
0x141d   :  { %v4942_v59 = vpop.eup %4941 }
0x1476   :  { %v949_v62 = vpop.permute.xlu1 %948 }
0x1477   :  { %v951_v63 = vmul.f32 %v4942_v59, %v949_v62 }
0x1479   :  { %953 = vrot.lane.b32.xlu0 %v951_v63, %s5098_s13 }
0x14eb   :  { %v954_v1 = vpop.permute.xlu0 %953 }
0x14ec   :  { %v956_v2 = vadd.f32 %v954_v1, %v5315_v60 }
0x14ee   :  { %4943 = vtanh.f32 %v956_v2 }
0x14f8   :  { %v4944_v3 = vpop.eup %4943 }
0x14f9   :  { %v959_v5 = vrot.slane %v4944_v3, 2 }
0x14fb   :  { %v961_v6 = vsub.f32 %v5339_v47, %v959_v5 }
0x14fd   :  { %v963_v7 = vrot.slane %v961_v6, 6 }
0x14ff   :  { %964 = vrot.lane.b32.xlu1 %v963_v7, %s5099_s2 }
0x1571   :  { %v965_v9 = vpop.permute.xlu1 %964 }
0x1572   :  { %v967_v10 = vmul.f32 %v4942_v59, %v965_v9 }
0x1574   :  { %969 = vrot.lane.b32.xlu0 %v967_v10, %s5100_s18 }
0x15e6   :  { %v970_v13 = vpop.permute.xlu0 %969 }
0x15e7   :  { %v5358_v12 = vadd.f32 %v4944_v3, %v970_v13 }
0x15e9   :  { %v978_v15 = vrot.slane %v5358_v12, 4 }
0x15eb   :  { %979 = vrot.lane.b32.xlu1 %v978_v15, %s5098_s13 }
0x165d   :  { %v980_v16 = vpop.permute.xlu1 %979 }
0x165e   :  { %4400 = vmatmul.mubr.msk.f32.vlgmr.msra.gmra.mrb[10].mxu0 %vm159_vm4, %v980_v16 }
0x165f   :  { %4747 = vmatpush3.bf16.msra.mxu0 %v5171_v4  ;;  %4421 = vmatprep.mubr.msk.f32.mxu0 %vm5096_vm2, %v5097_v8 }
0x1660   :  { %4748 = vmatprep.subr.bf16.mxu0 %v5095_v0 }
0x1663   :  { %4750 = vmatpush3.bf16.msra.mxu0 %v5195_v11 }
0x1664   :  { %4757 = vmatprep.subr.bf16.mxu0 %v5095_v0 }
0x1731   :  { %v1049_v17 = vpop.f32.mrb[10].mxu0 }
0x1732   :  { %v1063_v20 = vadd.f32 %v1049_v17, %v5215_v14  ;;  %v4401_v21 = vpop.f32.mrb[11].mxu0  ;;  %v1054_v23 = vrot.slane %v1049_v17, 2 }
0x1734   :  { %v1065_v22 = vrot.slane %v1063_v20, 2  ;;  %v1056_v24 = vadd.f32 %v1054_v23, %v5315_v60 }
0x1736   :  { %1066 = vrot.lane.b32.xlu0 %v1065_v22, %s5098_s13  ;;  %v4072_v25 = vmul.f32 -1.442695, %v1056_v24 }
0x1738   :  { %4945 = vpow2.f32 %v4072_v25 }
0x1742   :  { %v4946_v26 = vpop.eup %4945 }
0x1743   :  { %v1060_v27 = vadd.f32 1.0, %v4946_v26 }
0x1745   :  { %4947 = vrcp.f32 %v1060_v27 }
0x174f   :  { %v4948_v28 = vpop.eup %4947 }
0x17a8   :  { %v1067_v30 = vpop.permute.xlu0 %1066 }
0x17a9   :  { %v1069_v31 = vmul.f32 %v4948_v28, %v1067_v30 }
0x17ab   :  { %1071 = vrot.lane.b32.xlu1 %v1069_v31, %s5098_s13 }
0x181d   :  { %v1072_v32 = vpop.permute.xlu1 %1071 }
0x181e   :  { %v1074_v33 = vadd.f32 %v1072_v32, %v5315_v60 }
0x1820   :  { %4949 = vtanh.f32 %v1074_v33 }
0x182a   :  { %v4950_v34 = vpop.eup %4949 }
0x182b   :  { %v1077_v35 = vrot.slane %v4950_v34, 2 }
0x182d   :  { %v1079_v36 = vsub.f32 %v5358_v12, %v1077_v35 }
0x182f   :  { %v1081_v39 = vrot.slane %v1079_v36, 6 }
0x1831   :  { %1082 = vrot.lane.b32.xlu0 %v1081_v39, %s5099_s2 }
0x18a3   :  { %v1083_v40 = vpop.permute.xlu0 %1082 }
0x18a4   :  { %v1085_v41 = vmul.f32 %v4948_v28, %v1083_v40 }
0x18a6   :  { %1087 = vrot.lane.b32.xlu1 %v1085_v41, %s5100_s18 }
0x1918   :  { %v1088_v42 = vpop.permute.xlu1 %1087 }
0x1919   :  { %v5377_v43 = vadd.f32 %v4950_v34, %v1088_v42 }
0x191b   :  { %v1096_v44 = vrot.slane %v5377_v43, 6 }
0x191d   :  { %1097 = vrot.lane.b32.xlu0 %v1096_v44, %s5098_s13 }
0x198f   :  { %v1098_v60 = vpop.permute.xlu0 %1097 }
0x1990   :  { %4411 = vmatmul.mubr.msk.f32.vlgmr.msra.gmra.mrb[8].mxu1 %vm159_vm4, %v1098_v60 }
0x1991   :  { %4753 = vmatpush3.bf16.msra.mxu1 %v5171_v4  ;;  %4432 = vmatprep.mubr.msk.f32.mxu1 %vm5096_vm2, %v5097_v8 }
0x1992   :  { %4754 = vmatprep.subr.bf16.mxu1 %v5095_v0 }
0x1995   :  { %4756 = vmatpush3.bf16.msra.mxu1 %v5195_v11 }
0x1996   :  { %4763 = vmatprep.subr.bf16.mxu1 %v5095_v0 }
0x1a63   :  { %v1167_v45 = vpop.f32.mrb[8].mxu1 }
0x1a64   :  { %v1178_v46 = vadd.f32 %v1167_v45, %v5215_v14  ;;  %v4412_v48 = vpop.f32.mrb[9].mxu1  ;;  %v1171_v50 = vadd.f32 %v1167_v45, %v5392_v49 }
0x1a66   :  { %1180 = vrot.lane.b32.xlu1 %v1178_v46, %s5098_s13  ;;  %v4074_v51 = vmul.f32 -1.442695, %v1171_v50 }
0x1a68   :  { %4951 = vpow2.f32 %v4074_v51 }
0x1a72   :  { %v4952_v52 = vpop.eup %4951 }
0x1a73   :  { %v1175_v53 = vadd.f32 1.0, %v4952_v52 }
0x1a75   :  { %4953 = vrcp.f32 %v1175_v53 }
0x1a7f   :  { %v4954_v54 = vpop.eup %4953 }
0x1ad8   :  { %v1181_v56 = vpop.permute.xlu1 %1180 }
0x1ad9   :  { %v1183_v19 = vmul.f32 %v4954_v54, %v1181_v56 }
0x1adb   :  { %1185 = vrot.lane.b32.xlu0 %v1183_v19, %s5098_s13 }
0x1b4d   :  { %v1186_v57 = vpop.permute.xlu0 %1185 }
0x1b4e   :  { %v1188_v58 = vadd.f32 %v1186_v57, %v5392_v49 }
0x1b50   :  { %4955 = vtanh.f32 %v1188_v58 }
0x1b5a   :  { %v4956_v59 = vpop.eup %4955 }
0x1b5b   :  { %v1191_v62 = vrot.slane %v4956_v59, 2 }
0x1b5d   :  { %v1193_v38 = vsub.f32 %v5377_v43, %v1191_v62 }
0x1b5f   :  { %v1195_v63 = vrot.slane %v1193_v38, 6 }
0x1b61   :  { %1196 = vrot.lane.b32.xlu1 %v1195_v63, %s5099_s2 }
0x1bd3   :  { %v1197_v1 = vpop.permute.xlu1 %1196 }
0x1bd4   :  { %v1199_v2 = vmul.f32 %v4954_v54, %v1197_v1 }
0x1bd6   :  { %1201 = vrot.lane.b32.xlu0 %v1199_v2, %s5100_s18 }
0x1c48   :  { %v1202_v3 = vpop.permute.xlu0 %1201 }
0x1c49   :  { %v1204_v5 = vadd.f32 %v4956_v59, %v1202_v3 }
0x1c4b   :  { %1206 = vrot.lane.b32.xlu1 %v1204_v5, %s5098_s13 }
0x1cbd   :  { %v1207_v6 = vpop.permute.xlu1 %1206 }
0x1cbe   :  { %1209 = vst.msk [vmem:[#allocation2 + $0x10] sm:$0x3] %vm275_vm3, %v1207_v6  ;;  %4422 = vmatmul.mubr.msk.f32.vlgmr.msra.gmra.mrb[12].mxu0 %vm159_vm4, %v1207_v6 }
0x1cbf   :  { %4759 = vmatpush3.bf16.msra.mxu0 %v5171_v4  ;;  %4443 = vmatprep.mubr.msk.f32.mxu0 %vm5096_vm2, %v5097_v8 }
0x1cc0   :  { %4760 = vmatprep.subr.bf16.mxu0 %v5095_v0 }
0x1cc3   :  { %4762 = vmatpush3.bf16.msra.mxu0 %v5195_v11 }
0x1cc4   :  { %4769 = vmatprep.subr.bf16.mxu0 %v5095_v0 }
0x1d91   :  { %v1278_v7 = vpop.f32.mrb[12].mxu0 }
0x1d92   :  { %v1292_v9 = vadd.f32 %v1278_v7, %v5215_v14  ;;  %v4423_v10 = vpop.f32.mrb[13].mxu0  ;;  %v1283_v15 = vrot.slane %v1278_v7, 6 }
0x1d94   :  { %v1294_v13 = vrot.slane %v1292_v9, 6  ;;  %v1285_v16 = vadd.f32 %v1283_v15, %v5392_v49 }
0x1d96   :  { %1295 = vrot.lane.b32.xlu0 %v1294_v13, %s5098_s13  ;;  %v4076_v17 = vmul.f32 -1.442695, %v1285_v16 }
0x1d98   :  { %4957 = vpow2.f32 %v4076_v17 }
0x1da2   :  { %v4958_v20 = vpop.eup %4957 }
0x1da3   :  { %v1289_v21 = vadd.f32 1.0, %v4958_v20 }
0x1da5   :  { %4959 = vrcp.f32 %v1289_v21 }
0x1daf   :  { %v4960_v22 = vpop.eup %4959 }
0x1e08   :  { %v1296_v23 = vpop.permute.xlu0 %1295 }
0x1e09   :  { %v1298_v24 = vmul.f32 %v4960_v22, %v1296_v23 }
0x1e0b   :  { %1300 = vrot.lane.b32.xlu1 %v1298_v24, %s5098_s13 }
0x1e7d   :  { %v1301_v25 = vpop.permute.xlu1 %1300 }
0x1e7e   :  { %v1303_v26 = vadd.f32 %v1301_v25, %v5392_v49 }
0x1e80   :  { %4961 = vtanh.f32 %v1303_v26 }
0x1e8a   :  { %v4962_v27 = vpop.eup %4961 }
0x1e8b   :  { %v1306_v28 = vrot.slane %v4962_v27, 2 }
0x1e8d   :  { %v1308_v30 = vsub.f32 %v1204_v5, %v1306_v28 }
0x1e8f   :  { %v1310_v31 = vrot.slane %v1308_v30, 6 }
0x1e91   :  { %1311 = vrot.lane.b32.xlu0 %v1310_v31, %s5099_s2 }
0x1f03   :  { %v1312_v32 = vpop.permute.xlu0 %1311 }
0x1f04   :  { %v1314_v33 = vmul.f32 %v4960_v22, %v1312_v32 }
0x1f06   :  { %1316 = vrot.lane.b32.xlu1 %v1314_v33, %s5100_s18 }
0x1f78   :  { %v1317_v34 = vpop.permute.xlu1 %1316 }
0x1f79   :  { %v5416_v35 = vadd.f32 %v4962_v27, %v1317_v34 }
0x1f7b   :  { %v1325_v36 = vrot.slane %v5416_v35, 2 }
0x1f7d   :  { %1326 = vrot.lane.b32.xlu0 %v1325_v36, %s5098_s13 }
0x1fef   :  { %v1327_v39 = vpop.permute.xlu0 %1326 }
0x1ff0   :  { %4433 = vmatmul.mubr.msk.f32.vlgmr.msra.gmra.mrb[10].mxu1 %vm159_vm4, %v1327_v39 }
0x1ff1   :  { %4765 = vmatpush3.bf16.msra.mxu1 %v5171_v4  ;;  %4454 = vmatprep.mubr.msk.f32.mxu1 %vm5096_vm2, %v5097_v8 }
0x1ff2   :  { %4766 = vmatprep.subr.bf16.mxu1 %v5095_v0 }
0x1ff5   :  { %4768 = vmatpush3.bf16.msra.mxu1 %v5195_v11 }
0x1ff6   :  { %4775 = vmatprep.subr.bf16.mxu1 %v5095_v0 }
0x20c3   :  { %v1396_v40 = vpop.f32.mrb[10].mxu1 }
0x20c4   :  { %v1410_v41 = vadd.f32 %v1396_v40, %v5215_v14  ;;  %v4434_v42 = vpop.f32.mrb[11].mxu1  ;;  %v1401_v60 = vrot.slane %v1396_v40, 4 }
0x20c6   :  { %v1412_v44 = vrot.slane %v1410_v41, 4  ;;  %v1403_v45 = vadd.f32 %v1401_v60, %v5392_v49  ;;  %v5468_v41 = vadd.f32 %v5243_v37, %v5222_v18 }
0x20c8   :  { %1413 = vrot.lane.b32.xlu1 %v1412_v44, %s5098_s13  ;;  %v4078_v46 = vmul.f32 -1.442695, %v1403_v45 }
0x20ca   :  { %4963 = vpow2.f32 %v4078_v46 }
0x20d4   :  { %v4964_v48 = vpop.eup %4963 }
0x20d5   :  { %v1407_v50 = vadd.f32 1.0, %v4964_v48 }
0x20d7   :  { %4965 = vrcp.f32 %v1407_v50 }
0x20e1   :  { %v4966_v51 = vpop.eup %4965 }
0x213a   :  { %v1414_v52 = vpop.permute.xlu1 %1413 }
0x213b   :  { %v1416_v53 = vmul.f32 %v4966_v51, %v1414_v52 }
0x213d   :  { %1418 = vrot.lane.b32.xlu0 %v1416_v53, %s5098_s13 }
0x21af   :  { %v1419_v54 = vpop.permute.xlu0 %1418 }
0x21b0   :  { %v1421_v56 = vadd.f32 %v1419_v54, %v5392_v49 }
0x21b2   :  { %4967 = vtanh.f32 %v1421_v56 }
0x21bc   :  { %v4968_v19 = vpop.eup %4967 }
0x21bd   :  { %v1424_v57 = vrot.slane %v4968_v19, 2 }
0x21bf   :  { %v1426_v58 = vsub.f32 %v5416_v35, %v1424_v57 }
0x21c1   :  { %v1428_v59 = vrot.slane %v1426_v58, 6 }
0x21c3   :  { %1429 = vrot.lane.b32.xlu1 %v1428_v59, %s5099_s2 }
0x2235   :  { %v1430_v62 = vpop.permute.xlu1 %1429 }
0x2236   :  { %v1432_v38 = vmul.f32 %v4966_v51, %v1430_v62 }
0x2238   :  { %1434 = vrot.lane.b32.xlu0 %v1432_v38, %s5100_s18 }
0x22aa   :  { %v1435_v63 = vpop.permute.xlu0 %1434 }
0x22ab   :  { %v5435_v1 = vadd.f32 %v4968_v19, %v1435_v63 }
0x22ad   :  { %v1443_v2 = vrot.slane %v5435_v1, 4 }
0x22af   :  { %1444 = vrot.lane.b32.xlu1 %v1443_v2, %s5098_s13 }
0x2321   :  { %v1445_v3 = vpop.permute.xlu1 %1444 }
0x2322   :  { %4444 = vmatmul.mubr.msk.f32.vlgmr.msra.gmra.mrb[14].mxu0 %vm159_vm4, %v1445_v3 }
0x2323   :  { %4771 = vmatpush3.bf16.msra.mxu0 %v5171_v4  ;;  %4465 = vmatprep.mubr.msk.f32.mxu0 %vm5096_vm2, %v5097_v8 }
0x2324   :  { %4772 = vmatprep.subr.bf16.mxu0 %v5095_v0 }
0x2327   :  { %4774 = vmatpush3.bf16.msra.mxu0 %v5195_v11 }
0x2328   :  { %4781 = vmatprep.subr.bf16.mxu0 %v5095_v0 }
0x23f5   :  { %v1514_v5 = vpop.f32.mrb[14].mxu0 }
0x23f6   :  { %v1528_v6 = vadd.f32 %v1514_v5, %v5215_v14  ;;  %v4445_v7 = vpop.f32.mrb[15].mxu0  ;;  %v1519_v10 = vrot.slane %v1514_v5, 2 }
0x23f8   :  { %v1530_v9 = vrot.slane %v1528_v6, 2  ;;  %v1521_v13 = vadd.f32 %v1519_v10, %v5392_v49 }
0x23fa   :  { %1531 = vrot.lane.b32.xlu0 %v1530_v9, %s5098_s13  ;;  %v4080_v15 = vmul.f32 -1.442695, %v1521_v13 }
0x23fc   :  { %4969 = vpow2.f32 %v4080_v15 }
0x2406   :  { %v4970_v16 = vpop.eup %4969 }
0x2407   :  { %v1525_v17 = vadd.f32 1.0, %v4970_v16 }
0x2409   :  { %4971 = vrcp.f32 %v1525_v17 }
0x2413   :  { %v4972_v20 = vpop.eup %4971 }
0x246c   :  { %v1532_v21 = vpop.permute.xlu0 %1531 }
0x246d   :  { %v1534_v22 = vmul.f32 %v4972_v20, %v1532_v21 }
0x246f   :  { %1536 = vrot.lane.b32.xlu1 %v1534_v22, %s5098_s13 }
0x24e1   :  { %v1537_v23 = vpop.permute.xlu1 %1536 }
0x24e2   :  { %v1539_v24 = vadd.f32 %v1537_v23, %v5392_v49 }
0x24e4   :  { %4973 = vtanh.f32 %v1539_v24 }
0x24ee   :  { %v4974_v25 = vpop.eup %4973 }
0x24ef   :  { %v1542_v26 = vrot.slane %v4974_v25, 2 }
0x24f1   :  { %v1544_v27 = vsub.f32 %v5435_v1, %v1542_v26 }
0x24f3   :  { %v1546_v28 = vrot.slane %v1544_v27, 6 }
0x24f5   :  { %1547 = vrot.lane.b32.xlu0 %v1546_v28, %s5099_s2 }
0x2567   :  { %v1548_v30 = vpop.permute.xlu0 %1547 }
0x2568   :  { %v1550_v31 = vmul.f32 %v4972_v20, %v1548_v30 }
0x256a   :  { %1552 = vrot.lane.b32.xlu1 %v1550_v31, %s5100_s18 }
0x25dc   :  { %v1553_v32 = vpop.permute.xlu1 %1552 }
0x25dd   :  { %v5454_v33 = vadd.f32 %v4974_v25, %v1553_v32 }
0x25df   :  { %v1561_v34 = vrot.slane %v5454_v33, 6 }
0x25e1   :  { %1562 = vrot.lane.b32.xlu0 %v1561_v34, %s5098_s13 }
0x2653   :  { %v1563_v49 = vpop.permute.xlu0 %1562 }
0x2654   :  { %4455 = vmatmul.mubr.msk.f32.vlgmr.msra.gmra.mrb[12].mxu1 %vm159_vm4, %v1563_v49 }
0x2655   :  { %4777 = vmatpush3.bf16.msra.mxu1 %v5171_v4  ;;  %4476 = vmatprep.mubr.msk.f32.mxu1 %vm5096_vm2, %v5097_v8 }
0x2656   :  { %4778 = vmatprep.subr.bf16.mxu1 %v5095_v0 }
0x2659   :  { %4780 = vmatpush3.bf16.msra.mxu1 %v5195_v11 }
0x2727   :  { %v1632_v36 = vpop.f32.mrb[12].mxu1 }
0x2728   :  { %v1643_v39 = vadd.f32 %v1632_v36, %v5215_v14  ;;  %v4456_v40 = vpop.f32.mrb[13].mxu1  ;;  %v1636_v42 = vadd.f32 %v1632_v36, %v5468_v41 }
0x272a   :  { %1645 = vrot.lane.b32.xlu1 %v1643_v39, %s5098_s13  ;;  %v4082_v44 = vmul.f32 -1.442695, %v1636_v42 }
0x272c   :  { %4975 = vpow2.f32 %v4082_v44 }
0x2736   :  { %v4976_v60 = vpop.eup %4975 }
0x2737   :  { %v1640_v45 = vadd.f32 1.0, %v4976_v60 }
0x2739   :  { %4977 = vrcp.f32 %v1640_v45 }
0x2743   :  { %v4978_v46 = vpop.eup %4977 }
0x279c   :  { %v1646_v48 = vpop.permute.xlu1 %1645 }
0x279d   :  { %v1648_v50 = vmul.f32 %v4978_v46, %v1646_v48 }
0x279f   :  { %1650 = vrot.lane.b32.xlu0 %v1648_v50, %s5098_s13 }
0x2811   :  { %v1651_v51 = vpop.permute.xlu0 %1650 }
0x2812   :  { %v1653_v52 = vadd.f32 %v1651_v51, %v5468_v41 }
0x2814   :  { %4979 = vtanh.f32 %v1653_v52 }
0x281e   :  { %v4980_v53 = vpop.eup %4979 }
0x281f   :  { %v1656_v54 = vrot.slane %v4980_v53, 2 }
0x2821   :  { %v1658_v18 = vsub.f32 %v5454_v33, %v1656_v54 }
0x2823   :  { %v1660_v37 = vrot.slane %v1658_v18, 6 }
0x2825   :  { %1661 = vrot.lane.b32.xlu1 %v1660_v37, %s5099_s2 }
0x2897   :  { %v1662_v56 = vpop.permute.xlu1 %1661 }
0x2898   :  { %v1664_v19 = vmul.f32 %v4978_v46, %v1662_v56  ;;  %v2030_v56 = vld [vmem:[%s5890_s5] sm:$0xff] }
0x289a   :  { %1666 = vrot.lane.b32.xlu0 %v1664_v19, %s5100_s18  ;;  %v2031_v19 = vld [vmem:[%s5890_s5 + $0x8] sm:$0xff] }
0x290c   :  { %v1667_v57 = vpop.permute.xlu0 %1666 }
0x290d   :  { %v1669_v58 = vadd.f32 %v4980_v53, %v1667_v57  ;;  %v4787_v57 = vpack.c.bf16 %v2031_v19, %v2030_v56 }
0x290f   :  { %1671 = vrot.lane.b32.xlu1 %v1669_v58, %s5098_s13  ;;  %4788 = vmatprep.subr.bf16.mxu1 %v4787_v57 }
0x2981   :  { %v1672_v59 = vpop.permute.xlu1 %1671 }
0x2982   :  { %1674 = vst.msk [vmem:[#allocation2 + $0x18] sm:$0x3] %vm275_vm3, %v1672_v59  ;;  %4466 = vmatmul.mubr.msk.f32.vlgmr.msra.gmra.mrb[16].mxu0 %vm159_vm4, %v1672_v59 }
0x2983   :  { %4783 = vmatpush3.bf16.msra.mxu0 %v5171_v4  ;;  %4487 = vmatprep.mubr.msk.f32.mxu0 %vm5096_vm2, %v5097_v8 }
0x2984   :  { %4784 = vmatprep.subr.bf16.mxu0 %v5095_v0 }
0x2987   :  { %4786 = vmatpush3.bf16.msra.mxu0 %v5195_v11 }
0x2988   :  { %4795 = vmatprep.subr.bf16.mxu0 %v5095_v0 }
0x2a55   :  { %v1743_v62 = vpop.f32.mrb[16].mxu0 }
0x2a56   :  { %v1757_v38 = vadd.f32 %v1743_v62, %v5215_v14  ;;  %v4467_v63 = vpop.f32.mrb[17].mxu0  ;;  %v1748_v3 = vrot.slane %v1743_v62, 6 }
0x2a57   :  { %v4095_v63 = vld [vmem:[%s5891_s8] ss:$0 sm:$0xff] }
0x2a58   :  { %v1759_v2 = vrot.slane %v1757_v38, 6  ;;  %v1750_v5 = vadd.f32 %v1748_v3, %v5468_v41 }
0x2a5a   :  { %1760 = vrot.lane.b32.xlu0 %v1759_v2, %s5098_s13  ;;  %v4084_v4 = vmul.f32 -1.442695, %v1750_v5  ;;  %v2139_v2 = vld [vmem:[%s5892_s7 + $0x8] sm:$0xff]  ;;  %v2141_v5 = vld [vmem:[%s5892_s7 + $0x18] sm:$0xff] }
0x2a5c   :  { %4981 = vpow2.f32 %v4084_v4 }
0x2a66   :  { %v4982_v6 = vpop.eup %4981 }
0x2a67   :  { %v1754_v7 = vadd.f32 1.0, %v4982_v6 }
0x2a69   :  { %4983 = vrcp.f32 %v1754_v7 }
0x2a73   :  { %v4984_v9 = vpop.eup %4983 }
0x2acc   :  { %v1761_v10 = vpop.permute.xlu0 %1760 }
0x2acd   :  { %v1763_v11 = vmul.f32 %v4984_v9, %v1761_v10 }
0x2acf   :  { %1765 = vrot.lane.b32.xlu1 %v1763_v11, %s5098_s13 }
0x2b41   :  { %v1766_v13 = vpop.permute.xlu1 %1765 }
0x2b42   :  { %v1768_v15 = vadd.f32 %v1766_v13, %v5468_v41 }
0x2b44   :  { %4985 = vtanh.f32 %v1768_v15 }
0x2b4e   :  { %v4986_v16 = vpop.eup %4985 }
0x2b4f   :  { %v1771_v17 = vrot.slane %v4986_v16, 2 }
0x2b51   :  { %v1773_v20 = vsub.f32 %v1669_v58, %v1771_v17 }
0x2b53   :  { %v1775_v21 = vrot.slane %v1773_v20, 6 }
0x2b55   :  { %1776 = vrot.lane.b32.xlu0 %v1775_v21, %s5099_s2 }
0x2bc7   :  { %v1777_v22 = vpop.permute.xlu0 %1776 }
0x2bc8   :  { %v1779_v23 = vmul.f32 %v4984_v9, %v1777_v22 }
0x2bca   :  { %1781 = vrot.lane.b32.xlu1 %v1779_v23, %s5100_s18 }
0x2c3c   :  { %v1782_v24 = vpop.permute.xlu1 %1781 }
0x2c3d   :  { %v5492_v25 = vadd.f32 %v4986_v16, %v1782_v24 }
0x2c3f   :  { %v1790_v26 = vrot.slane %v5492_v25, 2 }
0x2c41   :  { %1791 = vrot.lane.b32.xlu0 %v1790_v26, %s5098_s13 }
0x2cb3   :  { %v1792_v27 = vpop.permute.xlu0 %1791 }
0x2cb4   :  { %4477 = vmatmul.mubr.msk.f32.vlgmr.msra.gmra.mrb[14].mxu1 %vm159_vm4, %v1792_v27 }
0x2cb5   :  { %4790 = vmatpush3.bf16.msra.mxu1 %v4787_v57 }
0x2d87   :  { %v1861_v28 = vpop.f32.mrb[14].mxu1 }
0x2d88   :  { %v1875_v30 = vadd.f32 %v1861_v28, %v5215_v14  ;;  %v4478_v31 = vpop.f32.mrb[15].mxu1  ;;  %v1866_v34 = vrot.slane %v1861_v28, 4 }
0x2d8a   :  { %v1877_v32 = vrot.slane %v1875_v30, 4  ;;  %v1868_v49 = vadd.f32 %v1866_v34, %v5468_v41 }
0x2d8c   :  { %1878 = vrot.lane.b32.xlu1 %v1877_v32, %s5098_s13  ;;  %v4086_v36 = vmul.f32 -1.442695, %v1868_v49 }
0x2d8e   :  { %4987 = vpow2.f32 %v4086_v36 }
0x2d98   :  { %v4988_v39 = vpop.eup %4987 }
0x2d99   :  { %v1872_v40 = vadd.f32 1.0, %v4988_v39 }
0x2d9b   :  { %4989 = vrcp.f32 %v1872_v40 }
0x2da5   :  { %v4990_v42 = vpop.eup %4989 }
0x2dfe   :  { %v1879_v44 = vpop.permute.xlu1 %1878 }
0x2dff   :  { %v1881_v60 = vmul.f32 %v4990_v42, %v1879_v44 }
0x2e01   :  { %1883 = vrot.lane.b32.xlu0 %v1881_v60, %s5098_s13 }
0x2e73   :  { %v1884_v45 = vpop.permute.xlu0 %1883 }
0x2e74   :  { %v1886_v46 = vadd.f32 %v1884_v45, %v5468_v41 }
0x2e76   :  { %4991 = vtanh.f32 %v1886_v46 }
0x2e80   :  { %v4992_v48 = vpop.eup %4991 }
0x2e81   :  { %v1889_v50 = vrot.slane %v4992_v48, 2 }
0x2e83   :  { %v1891_v51 = vsub.f32 %v5492_v25, %v1889_v50 }
0x2e85   :  { %v1893_v52 = vrot.slane %v1891_v51, 6 }
0x2e87   :  { %1894 = vrot.lane.b32.xlu1 %v1893_v52, %s5099_s2 }
0x2ef9   :  { %v1895_v53 = vpop.permute.xlu1 %1894 }
0x2efa   :  { %v1897_v54 = vmul.f32 %v4990_v42, %v1895_v53 }
0x2efc   :  { %1899 = vrot.lane.b32.xlu0 %v1897_v54, %s5100_s18 }
0x2f00   :  { %388 = vrot.lane.b32.xlu0 %v5262_v61, %s5098_s13 }
0x2f04   :  { %626 = vrot.lane.b32.xlu0 %v5300_v55, %s5098_s13  ;;  %v2032_v55 = vld [vmem:[%s5890_s5 + $0x10] sm:$0xff] }
0x2f08   :  { %974 = vrot.lane.b32.xlu0 %v5358_v12, %s5098_s13  ;;  %v2033_v12 = vld [vmem:[%s5890_s5 + $0x18] sm:$0xff] }
0x2f09   :  { %v4791_v59 = vpack.c.bf16 %v2033_v12, %v2032_v55 }
0x2f0b   :  { %4792 = vmatprep.subr.bf16.mxu1 %v4791_v59 }
0x2f0c   :  { %4794 = vmatpush3.bf16.msra.mxu1 %v4791_v59  ;;  %2225 = vrot.lane.b32.xlu0 %v4095_v63, %s5098_s13 }
0x2f0d   :  { %4801 = vmatprep.subr.bf16.mxu1 %v5095_v0 }
0x2f6e   :  { %v1900_v18 = vpop.permute.xlu0 %1899 }
0x2f6f   :  { %v5511_v37 = vadd.f32 %v4992_v48, %v1900_v18 }
0x2f71   :  { %v1908_v61 = vrot.slane %v5511_v37, 4 }
0x2f72   :  { %v389_v58 = vpop.permute.xlu0 %388 }
0x2f73   :  { %392 = vst.msk [vmem:[#allocation2] sm:$0xc] %vm391_vm5, %v389_v58  ;;  %1909 = vrot.lane.b32.xlu1 %v1908_v61, %s5098_s13 }
0x2f76   :  { %v627_v62 = vpop.permute.xlu0 %626 }
0x2f77   :  { %630 = vst.msk [vmem:[#allocation2] sm:$0xc0] %vm629_vm6, %v627_v62  ;;  %507 = vrot.lane.b32.xlu1 %v5281_v29, %s5098_s13  ;;  %v2138_v29 = vld [vmem:[%s5892_s7] sm:$0xff] }
0x2f78   :  { %v5547_v3 = vpack.c.bf16 %v2139_v2, %v2138_v29 }
0x2f7a   :  { %v975_v38 = vpop.permute.xlu0 %974 }
0x2f7b   :  { %977 = vst.msk [vmem:[#allocation2 + $0x8] sm:$0x30] %vm510_vm7, %v975_v38  ;;  %856 = vrot.lane.b32.xlu1 %v5339_v47, %s5098_s13  ;;  %v2140_v47 = vld [vmem:[%s5892_s7 + $0x10] sm:$0xff] }
0x2f7e   :  { %v5582_v20 = vpop.permute.xlu0 %2225 }
0x2f7f   :  { %1092 = vrot.lane.b32.xlu1 %v5377_v43, %s5098_s13  ;;  %v5557_v43 = vpack.c.bf16 %v2141_v5, %v2140_v47 }
0x2fe5   :  { %v1910_v4 = vpop.permute.xlu1 %1909 }
0x2fe6   :  { %4488 = vmatmul.mubr.msk.f32.vlgmr.msra.gmra.mrb[18].mxu0 %vm159_vm4, %v1910_v4 }
0x2fe7   :  { %4797 = vmatpush3.bf16.msra.mxu0 %v5547_v3  ;;  %4512 = vmatprep.mubr.msk.f32.mxu0 %vm5096_vm2, %v5097_v8 }
0x2fe8   :  { %4798 = vmatprep.subr.bf16.mxu0 %v5095_v0 }
0x2fe9   :  { %v508_v6 = vpop.permute.xlu1 %507 }
0x2fea   :  { %511 = vst.msk [vmem:[#allocation2] sm:$0x30] %vm510_vm7, %v508_v6 }
0x2feb   :  { %4800 = vmatpush3.bf16.msra.mxu0 %v5557_v43 }
0x2fec   :  { %4807 = vmatprep.subr.bf16.mxu0 %v5095_v0 }
0x2fed   :  { %v857_v7 = vpop.permute.xlu1 %856 }
0x2fee   :  { %4513 = vmatmul.mubr.f32.vlgmr.msra.gmra.mrb[20].mxu0 %v5097_v8  ;;  %859 = vst.msk [vmem:[#allocation2 + $0x8] sm:$0xc] %vm391_vm5, %v857_v7 }
0x2fef   :  { %4809 = vmatpush3.bf16.msra.mxu0 %v5547_v3  ;;  %4534 = vmatprep.mubr.msk.f32.mxu0 %vm5096_vm2, %v5097_v8 }
0x2ff0   :  { %4810 = vmatprep.subr.bf16.mxu0 %v5095_v0 }
0x2ff1   :  { %v1093_v9 = vpop.permute.xlu1 %1092  ;;  %v2026_v10 = vld [vmem:[#allocation2] sm:$0xff] }
0x2ff2   :  { %1095 = vst.msk [vmem:[#allocation2 + $0x8] sm:$0xc0] %vm629_vm6, %v1093_v9  ;;  %4498 = vmatprep.mubr.msk.f32.mxu1 %vm159_vm4, %v2026_v10 }
0x2ff3   :  { %4812 = vmatpush3.bf16.msra.mxu0 %v5557_v43 }
0x2ff4   :  { %4819 = vmatprep.subr.bf16.mxu0 %v5095_v0 }
0x2ff9   :  { %v2027_v11 = vld [vmem:[#allocation2 + $0x8] sm:$0xff] }
0x2ffa   :  { %4499 = vmatmul.mubr.msk.f32.vlgmr.msra.gmra.mrb[16].mxu1 %vm159_vm4, %v2027_v11 }
0x2ffb   :  { %4803 = vmatpush3.bf16.msra.mxu1 %v5547_v3 }
0x2ffc   :  { %4804 = vmatprep.subr.bf16.mxu1 %v5095_v0 }
0x2fff   :  { %4806 = vmatpush3.bf16.msra.mxu1 %v5557_v43 }
0x3000   :  { %4813 = vmatprep.subr.bf16.mxu1 %v5095_v0 }
0x30b9   :  { %v1979_v13 = vpop.f32.mrb[18].mxu0 }
0x30ba   :  { %v1993_v15 = vadd.f32 %v1979_v13, %v5215_v14  ;;  %v4489_v16 = vpop.f32.mrb[19].mxu0  ;;  %v1984_v27 = vrot.slane %v1979_v13, 2  ;;  %v5591_v14 = vld [vmem:[%s5893_s6] ss:$0 sm:$0xff] }
0x30bc   :  { %v1995_v17 = vrot.slane %v1993_v15, 2  ;;  %v1986_v28 = vadd.f32 %v1984_v27, %v5468_v41 }
0x30be   :  { %1996 = vrot.lane.b32.xlu1 %v1995_v17, %s5098_s13  ;;  %v4088_v31 = vmul.f32 -1.442695, %v1986_v28 }
0x30c0   :  { %4993 = vpow2.f32 %v4088_v31 }
0x30c1   :  { %v2209_v21 = vpop.f32.mrb[20].mxu0 }
0x30c2   :  { %v2228_v22 = vadd.f32 %v5582_v20, %v2209_v21  ;;  %v4514_v23 = vpop.f32.mrb[21].mxu0 }
0x30c4   :  { %2230 = vrot.lane.b32.xlu0 %v2228_v22, %s5098_s13 }
0x30ca   :  { %v4994_v49 = vpop.eup %4993 }
0x30cb   :  { %v1990_v36 = vadd.f32 1.0, %v4994_v49 }
0x30cd   :  { %v5586_v24 = vpop.f32.mrb[16].mxu1 }
0x30ce   :  { %v2119_v26 = vpop.f32.mrb[17].mxu1 }
0x30cf   :  { %v5595_v30 = vadd.f32 %v5591_v14, %v2119_v26 }
0x30d1   :  { %v2213_v32 = vadd.f32 %v2209_v21, %v5595_v30 }
0x30d3   :  { %v4094_v34 = vmul.f32 -1.442695, %v2213_v32 }
0x30d5   :  { %4995 = vpow2.f32 %v4094_v34 }
0x30d6   :  { %4997 = vrcp.f32 %v1990_v36 }
0x30df   :  { %v4996_v39 = vpop.eup %4995 }
0x30e0   :  { %v2217_v40 = vadd.f32 1.0, %v4996_v39  ;;  %v4998_v42 = vpop.eup %4997 }
0x30e2   :  { %4999 = vrcp.f32 %v2217_v40 }
0x30ec   :  { %v5000_v45 = vpop.eup %4999 }
0x3130   :  { %v1997_v44 = vpop.permute.xlu1 %1996 }
0x3131   :  { %v1999_v60 = vmul.f32 %v4998_v42, %v1997_v44 }
0x3133   :  { %2001 = vrot.lane.b32.xlu1 %v1999_v60, %s5098_s13 }
0x3136   :  { %v2231_v46 = vpop.permute.xlu0 %2230 }
0x3137   :  { %v2233_v48 = vmul.f32 %v5000_v45, %v2231_v46 }
0x3139   :  { %2235 = vrot.lane.b32.xlu0 %v2233_v48, %s5098_s13 }
0x31a5   :  { %v2002_v50 = vpop.permute.xlu1 %2001 }
0x31a6   :  { %v2004_v51 = vadd.f32 %v2002_v50, %v5468_v41 }
0x31a8   :  { %5001 = vtanh.f32 %v2004_v51 }
0x31ab   :  { %v2236_v52 = vpop.permute.xlu0 %2235 }
0x31ac   :  { %v2238_v53 = vadd.f32 %v2236_v52, %v5595_v30 }
0x31ae   :  { %5003 = vtanh.f32 %v2238_v53 }
0x31b2   :  { %v5002_v54 = vpop.eup %5001 }
0x31b3   :  { %v2007_v18 = vrot.slane %v5002_v54, 2 }
0x31b5   :  { %v2009_v56 = vsub.f32 %v5511_v37, %v2007_v18 }
0x31b7   :  { %v2011_v19 = vrot.slane %v2009_v56, 6 }
0x31b8   :  { %v5004_v61 = vpop.eup %5003 }
0x31b9   :  { %2012 = vrot.lane.b32.xlu1 %v2011_v19, %s5099_s2  ;;  %v2240_v57 = vsub.f32 0.0, %v5004_v61 }
0x31bb   :  { %2242 = vrot.lane.b32.xlu0 %v2240_v57, %s5099_s2 }
0x322b   :  { %v2013_v58 = vpop.permute.xlu1 %2012 }
0x322c   :  { %v2015_v55 = vmul.f32 %v4998_v42, %v2013_v58 }
0x322d   :  { %v2243_v12 = vpop.permute.xlu0 %2242 }
0x322e   :  { %v2245_v41 = vmul.f32 %v5000_v45, %v2243_v12  ;;  %2017 = vrot.lane.b32.xlu1 %v2015_v55, %s5100_s18 }
0x3230   :  { %2247 = vrot.lane.b32.xlu0 %v2245_v41, %s5100_s18 }
0x3232   :  { %1321 = vrot.lane.b32.xlu1 %v5416_v35, %s5098_s13 }
0x3234   :  { %1439 = vrot.lane.b32.xlu0 %v5435_v1, %s5098_s13 }
0x3236   :  { %1557 = vrot.lane.b32.xlu1 %v5454_v33, %s5098_s13 }
0x3238   :  { %1786 = vrot.lane.b32.xlu0 %v5492_v25, %s5098_s13 }
0x323a   :  { %1904 = vrot.lane.b32.xlu1 %v5511_v37, %s5098_s13 }
0x32a0   :  { %v2018_v59 = vpop.permute.xlu1 %2017 }
0x32a1   :  { %v2020_v62 = vadd.f32 %v5002_v54, %v2018_v59 }
0x32a2   :  { %v2248_v38 = vpop.permute.xlu0 %2247 }
0x32a3   :  { %v2250_v63 = vadd.f32 %v5004_v61, %v2248_v38  ;;  %2022 = vrot.lane.b32.xlu0 %v2020_v62, %s5098_s13 }
0x32a4   :  { %v1322_v29 = vpop.permute.xlu1 %1321 }
0x32a5   :  { %1324 = vst.msk [vmem:[#allocation2 + $0x10] sm:$0xc] %vm391_vm5, %v1322_v29  ;;  %2252 = vrot.lane.b32.xlu1 %v2250_v63, %s5098_s13 }
0x32a6   :  { %v1440_v35 = vpop.permute.xlu0 %1439 }
0x32a7   :  { %1442 = vst.msk [vmem:[#allocation2 + $0x10] sm:$0x30] %vm510_vm7, %v1440_v35 }
0x32a8   :  { %v1558_v1 = vpop.permute.xlu1 %1557 }
0x32a9   :  { %1560 = vst.msk [vmem:[#allocation2 + $0x10] sm:$0xc0] %vm629_vm6, %v1558_v1 }
0x32aa   :  { %v1787_v33 = vpop.permute.xlu0 %1786 }
0x32ab   :  { %1789 = vst.msk [vmem:[#allocation2 + $0x18] sm:$0xc] %vm391_vm5, %v1787_v33 }
0x32ac   :  { %v1905_v25 = vpop.permute.xlu1 %1904 }
0x32ad   :  { %1907 = vst.msk [vmem:[#allocation2 + $0x18] sm:$0x30] %vm510_vm7, %v1905_v25 }
0x32b0   :  { %v2028_v37 = vld [vmem:[#allocation2 + $0x10] sm:$0xff] }
0x32b1   :  { %4501 = vmatprep.mubr.msk.f32.mxu1 %vm159_vm4, %v2028_v37 }
0x3315   :  { %v2023_v2 = vpop.permute.xlu0 %2022 }
0x3316   :  { %2025 = vst.msk [vmem:[#allocation2 + $0x18] sm:$0xc0] %vm629_vm6, %v2023_v2 }
0x3317   :  { %v2253_v5 = vpop.permute.xlu1 %2252 }
0x331d   :  { %v2029_v47 = vld [vmem:[#allocation2 + $0x18] sm:$0xff] }
0x331e   :  { %4502 = vmatmul.mubr.msk.f32.gmra.mrb[18].mxu1 %vm159_vm4, %v2029_v47 }
0x331f   :  { %4523 = vmatprep.mubr.msk.f32.mxu1 %vm5096_vm2, %v5097_v8 }
0x3322   :  { %4524 = vmatmul.mubr.msk.f32.vlgmr.msra.gmra.mrb[20].mxu1 %vm159_vm4, %v2253_v5 }
0x3323   :  { %4815 = vmatpush3.bf16.msra.mxu1 %v5547_v3  ;;  %4545 = vmatprep.mubr.msk.f32.mxu1 %vm5096_vm2, %v5097_v8 }
0x3324   :  { %4816 = vmatprep.subr.bf16.mxu1 %v5095_v0 }
0x3327   :  { %4818 = vmatpush3.bf16.msra.mxu1 %v5557_v43 }
0x3328   :  { %4825 = vmatprep.subr.bf16.mxu1 %v5095_v0 }
0x33f1   :  { %v5636_v4 = vpop.f32.mrb[18].mxu1 }
0x33f2   :  { %v5638_v6 = vpop.f32.mrb[19].mxu1 }
0x33f5   :  { %v2322_v7 = vpop.f32.mrb[20].mxu1 }
0x33f6   :  { %v2336_v9 = vadd.f32 %v2322_v7, %v5582_v20  ;;  %v4525_v10 = vpop.f32.mrb[21].mxu1  ;;  %v2327_v13 = vrot.slane %v2322_v7, 6 }
0x33f8   :  { %v2338_v11 = vrot.slane %v2336_v9, 6  ;;  %v2329_v15 = vadd.f32 %v2327_v13, %v5595_v30 }
0x33fa   :  { %2339 = vrot.lane.b32.xlu0 %v2338_v11, %s5098_s13  ;;  %v4097_v16 = vmul.f32 -1.442695, %v2329_v15 }
0x33fc   :  { %5005 = vpow2.f32 %v4097_v16 }
0x3406   :  { %v5006_v17 = vpop.eup %5005 }
0x3407   :  { %v2333_v21 = vadd.f32 1.0, %v5006_v17 }
0x3409   :  { %5007 = vrcp.f32 %v2333_v21 }
0x3413   :  { %v5008_v22 = vpop.eup %5007 }
0x346c   :  { %v2340_v23 = vpop.permute.xlu0 %2339 }
0x346d   :  { %v2342_v26 = vmul.f32 %v5008_v22, %v2340_v23 }
0x346f   :  { %2344 = vrot.lane.b32.xlu1 %v2342_v26, %s5098_s13 }
0x34e1   :  { %v2345_v27 = vpop.permute.xlu1 %2344 }
0x34e2   :  { %v2347_v28 = vadd.f32 %v2345_v27, %v5595_v30 }
0x34e4   :  { %5009 = vtanh.f32 %v2347_v28 }
0x34ee   :  { %v5010_v31 = vpop.eup %5009 }
0x34ef   :  { %v2350_v32 = vrot.slane %v5010_v31, 2 }
0x34f1   :  { %v2352_v34 = vsub.f32 %v2250_v63, %v2350_v32 }
0x34f3   :  { %v2354_v49 = vrot.slane %v2352_v34, 6 }
0x34f5   :  { %2355 = vrot.lane.b32.xlu0 %v2354_v49, %s5099_s2 }
0x3567   :  { %v2356_v36 = vpop.permute.xlu0 %2355 }
0x3568   :  { %v2358_v39 = vmul.f32 %v5008_v22, %v2356_v36 }
0x356a   :  { %2360 = vrot.lane.b32.xlu1 %v2358_v39, %s5100_s18 }
0x35dc   :  { %v2361_v40 = vpop.permute.xlu1 %2360 }
0x35dd   :  { %v2363_v42 = vadd.f32 %v5010_v31, %v2361_v40  ;;  %v5689_v40 = vadd.f32 %v5586_v24, %v5591_v14 }
0x35df   :  { %v2365_v44 = vrot.slane %v2363_v42, 2 }
0x35e1   :  { %2366 = vrot.lane.b32.xlu0 %v2365_v44, %s5098_s13 }
0x3653   :  { %v2367_v60 = vpop.permute.xlu0 %2366 }
0x3654   :  { %4535 = vmatmul.mubr.msk.f32.vlgmr.msra.gmra.mrb[22].mxu0 %vm159_vm4, %v2367_v60 }
0x3655   :  { %4821 = vmatpush3.bf16.msra.mxu0 %v5547_v3  ;;  %4556 = vmatprep.mubr.msk.f32.mxu0 %vm5096_vm2, %v5097_v8 }
0x3656   :  { %4822 = vmatprep.subr.bf16.mxu0 %v5095_v0 }
0x3659   :  { %4824 = vmatpush3.bf16.msra.mxu0 %v5557_v43 }
0x365a   :  { %4831 = vmatprep.subr.bf16.mxu0 %v5095_v0 }
0x3727   :  { %v2436_v45 = vpop.f32.mrb[22].mxu0 }
0x3728   :  { %v2450_v46 = vadd.f32 %v2436_v45, %v5582_v20  ;;  %v4536_v48 = vpop.f32.mrb[23].mxu0  ;;  %v2441_v51 = vrot.slane %v2436_v45, 4 }
0x372a   :  { %v2452_v50 = vrot.slane %v2450_v46, 4  ;;  %v2443_v52 = vadd.f32 %v2441_v51, %v5595_v30 }
0x372c   :  { %2453 = vrot.lane.b32.xlu1 %v2452_v50, %s5098_s13  ;;  %v4099_v53 = vmul.f32 -1.442695, %v2443_v52 }
0x372e   :  { %5011 = vpow2.f32 %v4099_v53 }
0x3738   :  { %v5012_v54 = vpop.eup %5011 }
0x3739   :  { %v2447_v18 = vadd.f32 1.0, %v5012_v54 }
0x373b   :  { %5013 = vrcp.f32 %v2447_v18 }
0x3745   :  { %v5014_v56 = vpop.eup %5013 }
0x379e   :  { %v2454_v19 = vpop.permute.xlu1 %2453 }
0x379f   :  { %v2456_v61 = vmul.f32 %v5014_v56, %v2454_v19 }
0x37a1   :  { %2458 = vrot.lane.b32.xlu0 %v2456_v61, %s5098_s13 }
0x3813   :  { %v2459_v57 = vpop.permute.xlu0 %2458 }
0x3814   :  { %v2461_v58 = vadd.f32 %v2459_v57, %v5595_v30 }
0x3816   :  { %5015 = vtanh.f32 %v2461_v58 }
0x3820   :  { %v5016_v55 = vpop.eup %5015 }
0x3821   :  { %v2464_v12 = vrot.slane %v5016_v55, 2 }
0x3823   :  { %v2466_v41 = vsub.f32 %v2363_v42, %v2464_v12 }
0x3825   :  { %v2468_v59 = vrot.slane %v2466_v41, 6 }
0x3827   :  { %2469 = vrot.lane.b32.xlu1 %v2468_v59, %s5099_s2 }
0x3899   :  { %v2470_v62 = vpop.permute.xlu1 %2469 }
0x389a   :  { %v2472_v38 = vmul.f32 %v5014_v56, %v2470_v62 }
0x389c   :  { %2474 = vrot.lane.b32.xlu0 %v2472_v38, %s5100_s18 }
0x390e   :  { %v2475_v63 = vpop.permute.xlu0 %2474 }
0x390f   :  { %v2477_v29 = vadd.f32 %v5016_v55, %v2475_v63 }
0x3911   :  { %v2479_v35 = vrot.slane %v2477_v29, 4 }
0x3913   :  { %2480 = vrot.lane.b32.xlu1 %v2479_v35, %s5098_s13 }
0x3985   :  { %v2481_v1 = vpop.permute.xlu1 %2480 }
0x3986   :  { %4546 = vmatmul.mubr.msk.f32.vlgmr.msra.gmra.mrb[22].mxu1 %vm159_vm4, %v2481_v1 }
0x3987   :  { %4827 = vmatpush3.bf16.msra.mxu1 %v5547_v3  ;;  %4567 = vmatprep.mubr.msk.f32.mxu1 %vm5096_vm2, %v5097_v8 }
0x3988   :  { %4828 = vmatprep.subr.bf16.mxu1 %v5095_v0 }
0x398b   :  { %4830 = vmatpush3.bf16.msra.mxu1 %v5557_v43 }
0x398c   :  { %4837 = vmatprep.subr.bf16.mxu1 %v5095_v0 }
0x3a59   :  { %v2550_v33 = vpop.f32.mrb[22].mxu1 }
0x3a5a   :  { %v2564_v25 = vadd.f32 %v2550_v33, %v5582_v20  ;;  %v4547_v37 = vpop.f32.mrb[23].mxu1  ;;  %v2555_v47 = vrot.slane %v2550_v33, 2 }
0x3a5c   :  { %v2566_v2 = vrot.slane %v2564_v25, 2  ;;  %v2557_v5 = vadd.f32 %v2555_v47, %v5595_v30 }
0x3a5e   :  { %2567 = vrot.lane.b32.xlu0 %v2566_v2, %s5098_s13  ;;  %v4101_v7 = vmul.f32 -1.442695, %v2557_v5 }
0x3a60   :  { %5017 = vpow2.f32 %v4101_v7 }
0x3a6a   :  { %v5018_v9 = vpop.eup %5017 }
0x3a6b   :  { %v2561_v10 = vadd.f32 1.0, %v5018_v9 }
0x3a6d   :  { %5019 = vrcp.f32 %v2561_v10 }
0x3a77   :  { %v5020_v11 = vpop.eup %5019 }
0x3ad0   :  { %v2568_v13 = vpop.permute.xlu0 %2567 }
0x3ad1   :  { %v2570_v15 = vmul.f32 %v5020_v11, %v2568_v13 }
0x3ad3   :  { %2572 = vrot.lane.b32.xlu1 %v2570_v15, %s5098_s13 }
0x3b45   :  { %v2573_v16 = vpop.permute.xlu1 %2572 }
0x3b46   :  { %v2575_v17 = vadd.f32 %v2573_v16, %v5595_v30 }
0x3b48   :  { %5021 = vtanh.f32 %v2575_v17 }
0x3b52   :  { %v5022_v21 = vpop.eup %5021 }
0x3b53   :  { %v2578_v22 = vrot.slane %v5022_v21, 2 }
0x3b55   :  { %v2580_v23 = vsub.f32 %v2477_v29, %v2578_v22 }
0x3b57   :  { %v2582_v26 = vrot.slane %v2580_v23, 6 }
0x3b59   :  { %2583 = vrot.lane.b32.xlu0 %v2582_v26, %s5099_s2 }
0x3bcb   :  { %v2584_v27 = vpop.permute.xlu0 %2583 }
0x3bcc   :  { %v2586_v28 = vmul.f32 %v5020_v11, %v2584_v27 }
0x3bce   :  { %2588 = vrot.lane.b32.xlu1 %v2586_v28, %s5100_s18 }
0x3c40   :  { %v2589_v31 = vpop.permute.xlu1 %2588 }
0x3c41   :  { %v2591_v32 = vadd.f32 %v5022_v21, %v2589_v31 }
0x3c43   :  { %v2593_v34 = vrot.slane %v2591_v32, 6 }
0x3c45   :  { %2594 = vrot.lane.b32.xlu0 %v2593_v34, %s5098_s13 }
0x3cb7   :  { %v2595_v49 = vpop.permute.xlu0 %2594 }
0x3cb8   :  { %4557 = vmatmul.mubr.msk.f32.vlgmr.msra.gmra.mrb[24].mxu0 %vm159_vm4, %v2595_v49 }
0x3cb9   :  { %4833 = vmatpush3.bf16.msra.mxu0 %v5547_v3  ;;  %4578 = vmatprep.mubr.msk.f32.mxu0 %vm5096_vm2, %v5097_v8 }
0x3cba   :  { %4834 = vmatprep.subr.bf16.mxu0 %v5095_v0 }
0x3cbd   :  { %4836 = vmatpush3.bf16.msra.mxu0 %v5557_v43 }
0x3cbe   :  { %4843 = vmatprep.subr.bf16.mxu0 %v5095_v0 }
0x3d8b   :  { %v2664_v30 = vpop.f32.mrb[24].mxu0 }
0x3d8c   :  { %v2675_v36 = vadd.f32 %v2664_v30, %v5582_v20  ;;  %v4558_v39 = vpop.f32.mrb[25].mxu0  ;;  %v2668_v42 = vadd.f32 %v2664_v30, %v5689_v40 }
0x3d8e   :  { %2677 = vrot.lane.b32.xlu1 %v2675_v36, %s5098_s13  ;;  %v4103_v44 = vmul.f32 -1.442695, %v2668_v42 }
0x3d90   :  { %5023 = vpow2.f32 %v4103_v44 }
0x3d9a   :  { %v5024_v60 = vpop.eup %5023 }
0x3d9b   :  { %v2672_v45 = vadd.f32 1.0, %v5024_v60 }
0x3d9d   :  { %5025 = vrcp.f32 %v2672_v45 }
0x3da7   :  { %v5026_v46 = vpop.eup %5025 }
0x3e00   :  { %v2678_v48 = vpop.permute.xlu1 %2677 }
0x3e01   :  { %v2680_v50 = vmul.f32 %v5026_v46, %v2678_v48 }
0x3e03   :  { %2682 = vrot.lane.b32.xlu0 %v2680_v50, %s5098_s13 }
0x3e75   :  { %v2683_v51 = vpop.permute.xlu0 %2682 }
0x3e76   :  { %v2685_v52 = vadd.f32 %v2683_v51, %v5689_v40 }
0x3e78   :  { %5027 = vtanh.f32 %v2685_v52 }
0x3e82   :  { %v5028_v53 = vpop.eup %5027 }
0x3e83   :  { %v2688_v54 = vrot.slane %v5028_v53, 2 }
0x3e85   :  { %v2690_v24 = vsub.f32 %v2591_v32, %v2688_v54 }
0x3e87   :  { %v2692_v18 = vrot.slane %v2690_v24, 6 }
0x3e89   :  { %2693 = vrot.lane.b32.xlu1 %v2692_v18, %s5099_s2 }
0x3efb   :  { %v2694_v56 = vpop.permute.xlu1 %2693 }
0x3efc   :  { %v2696_v19 = vmul.f32 %v5026_v46, %v2694_v56 }
0x3efe   :  { %2698 = vrot.lane.b32.xlu0 %v2696_v19, %s5100_s18 }
0x3f70   :  { %v2699_v61 = vpop.permute.xlu0 %2698 }
0x3f71   :  { %v2701_v57 = vadd.f32 %v5028_v53, %v2699_v61 }
0x3f73   :  { %2703 = vrot.lane.b32.xlu1 %v2701_v57, %s5098_s13 }
0x3fe5   :  { %v2704_v58 = vpop.permute.xlu1 %2703 }
0x3fe6   :  { %4568 = vmatmul.mubr.msk.f32.vlgmr.msra.gmra.mrb[24].mxu1 %vm159_vm4, %v2704_v58 }
0x3fe7   :  { %4839 = vmatpush3.bf16.msra.mxu1 %v5547_v3  ;;  %4589 = vmatprep.mubr.msk.f32.mxu1 %vm5096_vm2, %v5097_v8 }
0x3fe8   :  { %4840 = vmatprep.subr.bf16.mxu1 %v5095_v0 }
0x3feb   :  { %4842 = vmatpush3.bf16.msra.mxu1 %v5557_v43 }
0x3fec   :  { %4849 = vmatprep.subr.bf16.mxu1 %v5095_v0 }
0x40b9   :  { %v2773_v55 = vpop.f32.mrb[24].mxu1 }
0x40ba   :  { %v2787_v12 = vadd.f32 %v2773_v55, %v5582_v20  ;;  %v4569_v41 = vpop.f32.mrb[25].mxu1  ;;  %v2778_v62 = vrot.slane %v2773_v55, 6 }
0x40bc   :  { %v2789_v59 = vrot.slane %v2787_v12, 6  ;;  %v2780_v38 = vadd.f32 %v2778_v62, %v5689_v40 }
0x40be   :  { %2790 = vrot.lane.b32.xlu0 %v2789_v59, %s5098_s13  ;;  %v4105_v63 = vmul.f32 -1.442695, %v2780_v38 }
0x40c0   :  { %5029 = vpow2.f32 %v4105_v63 }
0x40ca   :  { %v5030_v29 = vpop.eup %5029 }
0x40cb   :  { %v2784_v35 = vadd.f32 1.0, %v5030_v29 }
0x40cd   :  { %5031 = vrcp.f32 %v2784_v35 }
0x40d7   :  { %v5032_v1 = vpop.eup %5031 }
0x4130   :  { %v2791_v33 = vpop.permute.xlu0 %2790 }
0x4131   :  { %v2793_v25 = vmul.f32 %v5032_v1, %v2791_v33 }
0x4133   :  { %2795 = vrot.lane.b32.xlu1 %v2793_v25, %s5098_s13 }
0x41a5   :  { %v2796_v37 = vpop.permute.xlu1 %2795 }
0x41a6   :  { %v2798_v2 = vadd.f32 %v2796_v37, %v5689_v40 }
0x41a8   :  { %5033 = vtanh.f32 %v2798_v2 }
0x41b2   :  { %v5034_v47 = vpop.eup %5033 }
0x41b3   :  { %v2801_v5 = vrot.slane %v5034_v47, 2 }
0x41b5   :  { %v2803_v7 = vsub.f32 %v2701_v57, %v2801_v5 }
0x41b7   :  { %v2805_v9 = vrot.slane %v2803_v7, 6 }
0x41b9   :  { %2806 = vrot.lane.b32.xlu0 %v2805_v9, %s5099_s2 }
0x422b   :  { %v2807_v10 = vpop.permute.xlu0 %2806 }
0x422c   :  { %v2809_v11 = vmul.f32 %v5032_v1, %v2807_v10 }
0x422e   :  { %2811 = vrot.lane.b32.xlu1 %v2809_v11, %s5100_s18  ;;  %v5753_v11 = vadd.f32 %v5591_v14, %v5638_v6 }
0x42a0   :  { %v2812_v13 = vpop.permute.xlu1 %2811 }
0x42a1   :  { %v2814_v15 = vadd.f32 %v5034_v47, %v2812_v13 }
0x42a3   :  { %v2816_v16 = vrot.slane %v2814_v15, 2 }
0x42a5   :  { %2817 = vrot.lane.b32.xlu0 %v2816_v16, %s5098_s13 }
0x4317   :  { %v2818_v17 = vpop.permute.xlu0 %2817 }
0x4318   :  { %4579 = vmatmul.mubr.msk.f32.vlgmr.msra.gmra.mrb[26].mxu0 %vm159_vm4, %v2818_v17 }
0x4319   :  { %4845 = vmatpush3.bf16.msra.mxu0 %v5547_v3  ;;  %4600 = vmatprep.mubr.msk.f32.mxu0 %vm5096_vm2, %v5097_v8 }
0x431a   :  { %4846 = vmatprep.subr.bf16.mxu0 %v5095_v0 }
0x431d   :  { %4848 = vmatpush3.bf16.msra.mxu0 %v5557_v43 }
0x431e   :  { %4855 = vmatprep.subr.bf16.mxu0 %v5095_v0 }
0x43eb   :  { %v2887_v21 = vpop.f32.mrb[26].mxu0 }
0x43ec   :  { %v2901_v22 = vadd.f32 %v2887_v21, %v5582_v20  ;;  %v4580_v23 = vpop.f32.mrb[27].mxu0  ;;  %v2892_v27 = vrot.slane %v2887_v21, 4 }
0x43ee   :  { %v2903_v26 = vrot.slane %v2901_v22, 4  ;;  %v2894_v28 = vadd.f32 %v2892_v27, %v5689_v40 }
0x43f0   :  { %2904 = vrot.lane.b32.xlu1 %v2903_v26, %s5098_s13  ;;  %v4107_v31 = vmul.f32 -1.442695, %v2894_v28 }
0x43f2   :  { %5035 = vpow2.f32 %v4107_v31 }
0x43fc   :  { %v5036_v32 = vpop.eup %5035 }
0x43fd   :  { %v2898_v34 = vadd.f32 1.0, %v5036_v32 }
0x43ff   :  { %5037 = vrcp.f32 %v2898_v34 }
0x4409   :  { %v5038_v49 = vpop.eup %5037 }
0x4462   :  { %v2905_v30 = vpop.permute.xlu1 %2904 }
0x4463   :  { %v2907_v36 = vmul.f32 %v5038_v49, %v2905_v30 }
0x4465   :  { %2909 = vrot.lane.b32.xlu0 %v2907_v36, %s5098_s13 }
0x44d7   :  { %v2910_v39 = vpop.permute.xlu0 %2909 }
0x44d8   :  { %v2912_v42 = vadd.f32 %v2910_v39, %v5689_v40 }
0x44da   :  { %5039 = vtanh.f32 %v2912_v42 }
0x44e4   :  { %v5040_v44 = vpop.eup %5039 }
0x44e5   :  { %v2915_v60 = vrot.slane %v5040_v44, 2 }
0x44e7   :  { %v2917_v45 = vsub.f32 %v2814_v15, %v2915_v60 }
0x44e9   :  { %v2919_v46 = vrot.slane %v2917_v45, 6 }
0x44eb   :  { %2920 = vrot.lane.b32.xlu1 %v2919_v46, %s5099_s2 }
0x455d   :  { %v2921_v48 = vpop.permute.xlu1 %2920 }
0x455e   :  { %v2923_v50 = vmul.f32 %v5038_v49, %v2921_v48 }
0x4560   :  { %2925 = vrot.lane.b32.xlu0 %v2923_v50, %s5100_s18 }
0x45d2   :  { %v2926_v51 = vpop.permute.xlu0 %2925 }
0x45d3   :  { %v2928_v52 = vadd.f32 %v5040_v44, %v2926_v51 }
0x45d5   :  { %v2930_v53 = vrot.slane %v2928_v52, 4 }
0x45d7   :  { %2931 = vrot.lane.b32.xlu1 %v2930_v53, %s5098_s13 }
0x4649   :  { %v2932_v54 = vpop.permute.xlu1 %2931 }
0x464a   :  { %4590 = vmatmul.mubr.msk.f32.vlgmr.msra.gmra.mrb[26].mxu1 %vm159_vm4, %v2932_v54 }
0x464b   :  { %4851 = vmatpush3.bf16.msra.mxu1 %v5547_v3  ;;  %4611 = vmatprep.mubr.msk.f32.mxu1 %vm5096_vm2, %v5097_v8 }
0x464c   :  { %4852 = vmatprep.subr.bf16.mxu1 %v5095_v0 }
0x464f   :  { %4854 = vmatpush3.bf16.msra.mxu1 %v5557_v43 }
0x4650   :  { %4861 = vmatprep.subr.bf16.mxu1 %v5095_v0 }
0x471d   :  { %v3001_v24 = vpop.f32.mrb[26].mxu1 }
0x471e   :  { %v3015_v18 = vadd.f32 %v3001_v24, %v5582_v20  ;;  %v4591_v56 = vpop.f32.mrb[27].mxu1  ;;  %v3006_v61 = vrot.slane %v3001_v24, 2 }
0x4720   :  { %v3017_v19 = vrot.slane %v3015_v18, 2  ;;  %v3008_v57 = vadd.f32 %v3006_v61, %v5689_v40 }
0x4722   :  { %3018 = vrot.lane.b32.xlu0 %v3017_v19, %s5098_s13  ;;  %v4109_v58 = vmul.f32 -1.442695, %v3008_v57 }
0x4724   :  { %5041 = vpow2.f32 %v4109_v58 }
0x472e   :  { %v5042_v55 = vpop.eup %5041 }
0x472f   :  { %v3012_v12 = vadd.f32 1.0, %v5042_v55 }
0x4731   :  { %5043 = vrcp.f32 %v3012_v12 }
0x473b   :  { %v5044_v41 = vpop.eup %5043 }
0x4794   :  { %v3019_v59 = vpop.permute.xlu0 %3018 }
0x4795   :  { %v3021_v62 = vmul.f32 %v5044_v41, %v3019_v59 }
0x4797   :  { %3023 = vrot.lane.b32.xlu1 %v3021_v62, %s5098_s13 }
0x4809   :  { %v3024_v38 = vpop.permute.xlu1 %3023 }
0x480a   :  { %v3026_v63 = vadd.f32 %v3024_v38, %v5689_v40 }
0x480c   :  { %5045 = vtanh.f32 %v3026_v63 }
0x4816   :  { %v5046_v29 = vpop.eup %5045 }
0x4817   :  { %v3029_v35 = vrot.slane %v5046_v29, 2 }
0x4819   :  { %v3031_v1 = vsub.f32 %v2928_v52, %v3029_v35 }
0x481b   :  { %v3033_v33 = vrot.slane %v3031_v1, 6 }
0x481d   :  { %3034 = vrot.lane.b32.xlu0 %v3033_v33, %s5099_s2 }
0x488f   :  { %v3035_v25 = vpop.permute.xlu0 %3034 }
0x4890   :  { %v3037_v37 = vmul.f32 %v5044_v41, %v3035_v25 }
0x4892   :  { %3039 = vrot.lane.b32.xlu1 %v3037_v37, %s5100_s18 }
0x4904   :  { %v3040_v2 = vpop.permute.xlu1 %3039 }
0x4905   :  { %v3042_v47 = vadd.f32 %v5046_v29, %v3040_v2 }
0x4907   :  { %v3044_v5 = vrot.slane %v3042_v47, 6 }
0x4909   :  { %3045 = vrot.lane.b32.xlu0 %v3044_v5, %s5098_s13 }
0x497b   :  { %v3046_v7 = vpop.permute.xlu0 %3045 }
0x497c   :  { %4601 = vmatmul.mubr.msk.f32.vlgmr.msra.gmra.mrb[28].mxu0 %vm159_vm4, %v3046_v7 }
0x497d   :  { %4857 = vmatpush3.bf16.msra.mxu0 %v5547_v3  ;;  %4622 = vmatprep.mubr.msk.f32.mxu0 %vm5096_vm2, %v5097_v8 }
0x497e   :  { %4858 = vmatprep.subr.bf16.mxu0 %v5095_v0 }
0x4981   :  { %4860 = vmatpush3.bf16.msra.mxu0 %v5557_v43 }
0x4982   :  { %4867 = vmatprep.subr.bf16.mxu0 %v5095_v0 }
0x4a4f   :  { %v3115_v40 = vpop.f32.mrb[28].mxu0 }
0x4a50   :  { %v3126_v9 = vadd.f32 %v3115_v40, %v5582_v20  ;;  %v4602_v10 = vpop.f32.mrb[29].mxu0  ;;  %v3119_v13 = vadd.f32 %v3115_v40, %v5753_v11 }
0x4a52   :  { %3128 = vrot.lane.b32.xlu1 %v3126_v9, %s5098_s13  ;;  %v4111_v15 = vmul.f32 -1.442695, %v3119_v13 }
0x4a54   :  { %5047 = vpow2.f32 %v4111_v15 }
0x4a5e   :  { %v5048_v16 = vpop.eup %5047 }
0x4a5f   :  { %v3123_v17 = vadd.f32 1.0, %v5048_v16 }
0x4a61   :  { %5049 = vrcp.f32 %v3123_v17 }
0x4a6b   :  { %v5050_v21 = vpop.eup %5049 }
0x4ac4   :  { %v3129_v22 = vpop.permute.xlu1 %3128 }
0x4ac5   :  { %v3131_v23 = vmul.f32 %v5050_v21, %v3129_v22 }
0x4ac7   :  { %3133 = vrot.lane.b32.xlu0 %v3131_v23, %s5098_s13 }
0x4b39   :  { %v3134_v26 = vpop.permute.xlu0 %3133 }
0x4b3a   :  { %v3136_v27 = vadd.f32 %v3134_v26, %v5753_v11 }
0x4b3c   :  { %5051 = vtanh.f32 %v3136_v27 }
0x4b46   :  { %v5052_v28 = vpop.eup %5051 }
0x4b47   :  { %v3139_v31 = vrot.slane %v5052_v28, 2 }
0x4b49   :  { %v3141_v6 = vsub.f32 %v3042_v47, %v3139_v31 }
0x4b4b   :  { %v3143_v32 = vrot.slane %v3141_v6, 6 }
0x4b4d   :  { %3144 = vrot.lane.b32.xlu1 %v3143_v32, %s5099_s2 }
0x4bbf   :  { %v3145_v34 = vpop.permute.xlu1 %3144 }
0x4bc0   :  { %v3147_v49 = vmul.f32 %v5050_v21, %v3145_v34 }
0x4bc2   :  { %3149 = vrot.lane.b32.xlu0 %v3147_v49, %s5100_s18 }
0x4c34   :  { %v3150_v30 = vpop.permute.xlu0 %3149 }
0x4c35   :  { %v3152_v36 = vadd.f32 %v5052_v28, %v3150_v30 }
0x4c37   :  { %3154 = vrot.lane.b32.xlu1 %v3152_v36, %s5098_s13 }
0x4ca9   :  { %v3155_v39 = vpop.permute.xlu1 %3154 }
0x4caa   :  { %4612 = vmatmul.mubr.msk.f32.vlgmr.msra.gmra.mrb[28].mxu1 %vm159_vm4, %v3155_v39 }
0x4cab   :  { %4863 = vmatpush3.bf16.msra.mxu1 %v5547_v3  ;;  %4633 = vmatprep.mubr.msk.f32.mxu1 %vm5096_vm2, %v5097_v8 }
0x4cac   :  { %4864 = vmatprep.subr.bf16.mxu1 %v5095_v0 }
0x4caf   :  { %4866 = vmatpush3.bf16.msra.mxu1 %v5557_v43 }
0x4cb0   :  { %4873 = vmatprep.subr.bf16.mxu1 %v5095_v0 }
0x4d7d   :  { %v3224_v42 = vpop.f32.mrb[28].mxu1 }
0x4d7e   :  { %v3238_v44 = vadd.f32 %v3224_v42, %v5582_v20  ;;  %v4613_v60 = vpop.f32.mrb[29].mxu1  ;;  %v3229_v46 = vrot.slane %v3224_v42, 6 }
0x4d80   :  { %v3240_v45 = vrot.slane %v3238_v44, 6  ;;  %v3231_v48 = vadd.f32 %v3229_v46, %v5753_v11 }
0x4d82   :  { %3241 = vrot.lane.b32.xlu0 %v3240_v45, %s5098_s13  ;;  %v4113_v50 = vmul.f32 -1.442695, %v3231_v48 }
0x4d84   :  { %5053 = vpow2.f32 %v4113_v50 }
0x4d8e   :  { %v5054_v51 = vpop.eup %5053 }
0x4d8f   :  { %v3235_v52 = vadd.f32 1.0, %v5054_v51 }
0x4d91   :  { %5055 = vrcp.f32 %v3235_v52 }
0x4d9b   :  { %v5056_v53 = vpop.eup %5055 }
0x4df4   :  { %v3242_v54 = vpop.permute.xlu0 %3241 }
0x4df5   :  { %v3244_v24 = vmul.f32 %v5056_v53, %v3242_v54 }
0x4df7   :  { %3246 = vrot.lane.b32.xlu1 %v3244_v24, %s5098_s13 }
0x4e69   :  { %v3247_v18 = vpop.permute.xlu1 %3246 }
0x4e6a   :  { %v3249_v56 = vadd.f32 %v3247_v18, %v5753_v11 }
0x4e6c   :  { %5057 = vtanh.f32 %v3249_v56 }
0x4e76   :  { %v5058_v19 = vpop.eup %5057 }
0x4e77   :  { %v3252_v61 = vrot.slane %v5058_v19, 2 }
0x4e79   :  { %v3254_v57 = vsub.f32 %v3152_v36, %v3252_v61 }
0x4e7b   :  { %v3256_v58 = vrot.slane %v3254_v57, 6 }
0x4e7d   :  { %3257 = vrot.lane.b32.xlu0 %v3256_v58, %s5099_s2 }
0x4eef   :  { %v3258_v55 = vpop.permute.xlu0 %3257 }
0x4ef0   :  { %v3260_v12 = vmul.f32 %v5056_v53, %v3258_v55  ;;  %v5817_v55 = vadd.f32 %v5636_v4, %v5591_v14 }
0x4ef2   :  { %3262 = vrot.lane.b32.xlu1 %v3260_v12, %s5100_s18 }
0x4f64   :  { %v3263_v41 = vpop.permute.xlu1 %3262 }
0x4f65   :  { %v3265_v59 = vadd.f32 %v5058_v19, %v3263_v41 }
0x4f67   :  { %v3267_v62 = vrot.slane %v3265_v59, 2 }
0x4f69   :  { %3268 = vrot.lane.b32.xlu0 %v3267_v62, %s5098_s13 }
0x4fdb   :  { %v3269_v38 = vpop.permute.xlu0 %3268 }
0x4fdc   :  { %4623 = vmatmul.mubr.msk.f32.vlgmr.msra.gmra.mrb[30].mxu0 %vm159_vm4, %v3269_v38 }
0x4fdd   :  { %4869 = vmatpush3.bf16.msra.mxu0 %v5547_v3  ;;  %4644 = vmatprep.mubr.msk.f32.mxu0 %vm5096_vm2, %v5097_v8 }
0x4fde   :  { %4870 = vmatprep.subr.bf16.mxu0 %v5095_v0 }
0x4fe1   :  { %4872 = vmatpush3.bf16.msra.mxu0 %v5557_v43 }
0x4fe2   :  { %4879 = vmatprep.subr.bf16.mxu0 %v5095_v0 }
0x50af   :  { %v3338_v63 = vpop.f32.mrb[30].mxu0 }
0x50b0   :  { %v3352_v29 = vadd.f32 %v3338_v63, %v5582_v20  ;;  %v4624_v35 = vpop.f32.mrb[31].mxu0  ;;  %v3343_v33 = vrot.slane %v3338_v63, 4 }
0x50b2   :  { %v3354_v1 = vrot.slane %v3352_v29, 4  ;;  %v3345_v25 = vadd.f32 %v3343_v33, %v5753_v11 }
0x50b4   :  { %3355 = vrot.lane.b32.xlu1 %v3354_v1, %s5098_s13  ;;  %v4115_v37 = vmul.f32 -1.442695, %v3345_v25 }
0x50b6   :  { %5059 = vpow2.f32 %v4115_v37 }
0x50c0   :  { %v5060_v2 = vpop.eup %5059 }
0x50c1   :  { %v3349_v47 = vadd.f32 1.0, %v5060_v2 }
0x50c3   :  { %5061 = vrcp.f32 %v3349_v47 }
0x50cd   :  { %v5062_v5 = vpop.eup %5061 }
0x5126   :  { %v3356_v7 = vpop.permute.xlu1 %3355 }
0x5127   :  { %v3358_v40 = vmul.f32 %v5062_v5, %v3356_v7 }
0x5129   :  { %3360 = vrot.lane.b32.xlu0 %v3358_v40, %s5098_s13 }
0x519b   :  { %v3361_v9 = vpop.permute.xlu0 %3360 }
0x519c   :  { %v3363_v10 = vadd.f32 %v3361_v9, %v5753_v11 }
0x519e   :  { %5063 = vtanh.f32 %v3363_v10 }
0x51a8   :  { %v5064_v13 = vpop.eup %5063 }
0x51a9   :  { %v3366_v15 = vrot.slane %v5064_v13, 2 }
0x51ab   :  { %v3368_v16 = vsub.f32 %v3265_v59, %v3366_v15 }
0x51ad   :  { %v3370_v17 = vrot.slane %v3368_v16, 6 }
0x51af   :  { %3371 = vrot.lane.b32.xlu1 %v3370_v17, %s5099_s2 }
0x5221   :  { %v3372_v21 = vpop.permute.xlu1 %3371 }
0x5222   :  { %v3374_v22 = vmul.f32 %v5062_v5, %v3372_v21 }
0x5224   :  { %3376 = vrot.lane.b32.xlu0 %v3374_v22, %s5100_s18 }
0x5296   :  { %v3377_v23 = vpop.permute.xlu0 %3376 }
0x5297   :  { %v3379_v26 = vadd.f32 %v5064_v13, %v3377_v23 }
0x5299   :  { %v3381_v27 = vrot.slane %v3379_v26, 4 }
0x529b   :  { %3382 = vrot.lane.b32.xlu1 %v3381_v27, %s5098_s13 }
0x530d   :  { %v3383_v28 = vpop.permute.xlu1 %3382 }
0x530e   :  { %4634 = vmatmul.mubr.msk.f32.vlgmr.msra.gmra.mrb[30].mxu1 %vm159_vm4, %v3383_v28 }
0x530f   :  { %4875 = vmatpush3.bf16.msra.mxu1 %v5547_v3  ;;  %4655 = vmatprep.mubr.msk.f32.mxu1 %vm5096_vm2, %v5097_v8 }
0x5310   :  { %4876 = vmatprep.subr.bf16.mxu1 %v5095_v0 }
0x5313   :  { %4878 = vmatpush3.bf16.msra.mxu1 %v5557_v43 }
0x5314   :  { %4885 = vmatprep.subr.bf16.mxu1 %v5095_v0 }
0x53e1   :  { %v3452_v31 = vpop.f32.mrb[30].mxu1 }
0x53e2   :  { %v3466_v6 = vadd.f32 %v3452_v31, %v5582_v20  ;;  %v4635_v32 = vpop.f32.mrb[31].mxu1  ;;  %v3457_v49 = vrot.slane %v3452_v31, 2 }
0x53e4   :  { %v3468_v34 = vrot.slane %v3466_v6, 2  ;;  %v3459_v30 = vadd.f32 %v3457_v49, %v5753_v11 }
0x53e6   :  { %3469 = vrot.lane.b32.xlu0 %v3468_v34, %s5098_s13  ;;  %v4117_v36 = vmul.f32 -1.442695, %v3459_v30 }
0x53e8   :  { %5065 = vpow2.f32 %v4117_v36 }
0x53f2   :  { %v5066_v39 = vpop.eup %5065 }
0x53f3   :  { %v3463_v42 = vadd.f32 1.0, %v5066_v39 }
0x53f5   :  { %5067 = vrcp.f32 %v3463_v42 }
0x53ff   :  { %v5068_v44 = vpop.eup %5067 }
0x5458   :  { %v3470_v60 = vpop.permute.xlu0 %3469 }
0x5459   :  { %v3472_v45 = vmul.f32 %v5068_v44, %v3470_v60 }
0x545b   :  { %3474 = vrot.lane.b32.xlu1 %v3472_v45, %s5098_s13 }
0x54cd   :  { %v3475_v46 = vpop.permute.xlu1 %3474 }
0x54ce   :  { %v3477_v48 = vadd.f32 %v3475_v46, %v5753_v11 }
0x54d0   :  { %5069 = vtanh.f32 %v3477_v48 }
0x54da   :  { %v5070_v50 = vpop.eup %5069 }
0x54db   :  { %v3480_v51 = vrot.slane %v5070_v50, 2 }
0x54dd   :  { %v3482_v52 = vsub.f32 %v3379_v26, %v3480_v51 }
0x54df   :  { %v3484_v53 = vrot.slane %v3482_v52, 6 }
0x54e1   :  { %3485 = vrot.lane.b32.xlu0 %v3484_v53, %s5099_s2 }
0x5553   :  { %v3486_v54 = vpop.permute.xlu0 %3485 }
0x5554   :  { %v3488_v24 = vmul.f32 %v5068_v44, %v3486_v54 }
0x5556   :  { %3490 = vrot.lane.b32.xlu1 %v3488_v24, %s5100_s18 }
0x55c8   :  { %v3491_v18 = vpop.permute.xlu1 %3490 }
0x55c9   :  { %v3493_v56 = vadd.f32 %v5070_v50, %v3491_v18 }
0x55cb   :  { %v3495_v19 = vrot.slane %v3493_v56, 6 }
0x55cd   :  { %3496 = vrot.lane.b32.xlu0 %v3495_v19, %s5098_s13 }
0x563f   :  { %v3497_v61 = vpop.permute.xlu0 %3496 }
0x5640   :  { %4645 = vmatmul.mubr.msk.f32.vlgmr.msra.gmra.mrb[32].mxu0 %vm159_vm4, %v3497_v61 }
0x5641   :  { %4881 = vmatpush3.bf16.msra.mxu0 %v5547_v3  ;;  %4666 = vmatprep.mubr.msk.f32.mxu0 %vm5096_vm2, %v5097_v8 }
0x5642   :  { %4882 = vmatprep.subr.bf16.mxu0 %v5095_v0 }
0x5645   :  { %4884 = vmatpush3.bf16.msra.mxu0 %v5557_v43 }
0x5646   :  { %4891 = vmatprep.subr.bf16.mxu0 %v5095_v0 }
0x5713   :  { %v3566_v11 = vpop.f32.mrb[32].mxu0 }
0x5714   :  { %v3577_v57 = vadd.f32 %v3566_v11, %v5582_v20  ;;  %v4646_v58 = vpop.f32.mrb[33].mxu0  ;;  %v3570_v12 = vadd.f32 %v3566_v11, %v5817_v55 }
0x5716   :  { %3579 = vrot.lane.b32.xlu1 %v3577_v57, %s5098_s13  ;;  %v4119_v41 = vmul.f32 -1.442695, %v3570_v12 }
0x5718   :  { %5071 = vpow2.f32 %v4119_v41 }
0x5722   :  { %v5072_v59 = vpop.eup %5071 }
0x5723   :  { %v3574_v62 = vadd.f32 1.0, %v5072_v59 }
0x5725   :  { %5073 = vrcp.f32 %v3574_v62 }
0x572f   :  { %v5074_v38 = vpop.eup %5073 }
0x5788   :  { %v3580_v63 = vpop.permute.xlu1 %3579 }
0x5789   :  { %v3582_v29 = vmul.f32 %v5074_v38, %v3580_v63 }
0x578b   :  { %3584 = vrot.lane.b32.xlu0 %v3582_v29, %s5098_s13 }
0x57fd   :  { %v3585_v35 = vpop.permute.xlu0 %3584 }
0x57fe   :  { %v3587_v1 = vadd.f32 %v3585_v35, %v5817_v55 }
0x5800   :  { %5075 = vtanh.f32 %v3587_v1 }
0x580a   :  { %v5076_v33 = vpop.eup %5075 }
0x580b   :  { %v3590_v25 = vrot.slane %v5076_v33, 2 }
0x580d   :  { %v3592_v14 = vsub.f32 %v3493_v56, %v3590_v25 }
0x580f   :  { %v3594_v4 = vrot.slane %v3592_v14, 6 }
0x5811   :  { %3595 = vrot.lane.b32.xlu1 %v3594_v4, %s5099_s2 }
0x5883   :  { %v3596_v37 = vpop.permute.xlu1 %3595 }
0x5884   :  { %v3598_v2 = vmul.f32 %v5074_v38, %v3596_v37 }
0x5886   :  { %3600 = vrot.lane.b32.xlu0 %v3598_v2, %s5100_s18 }
0x58f8   :  { %v3601_v47 = vpop.permute.xlu0 %3600 }
0x58f9   :  { %v3603_v5 = vadd.f32 %v5076_v33, %v3601_v47 }
0x58fb   :  { %3605 = vrot.lane.b32.xlu1 %v3603_v5, %s5098_s13 }
0x596d   :  { %v3606_v7 = vpop.permute.xlu1 %3605 }
0x596e   :  { %3608 = vst.msk [vmem:[#allocation2] sm:$0x3] %vm275_vm3, %v3606_v7  ;;  %4656 = vmatmul.mubr.msk.f32.vlgmr.msra.gmra.mrb[32].mxu1 %vm159_vm4, %v3606_v7 }
0x596f   :  { %4887 = vmatpush3.bf16.msra.mxu1 %v5547_v3  ;;  %4677 = vmatprep.mubr.msk.f32.mxu1 %vm5096_vm2, %v5097_v8 }
0x5970   :  { %4888 = vmatprep.subr.bf16.mxu1 %v5095_v0 }
0x5973   :  { %4890 = vmatpush3.bf16.msra.mxu1 %v5557_v43 }
0x5a41   :  { %v3677_v40 = vpop.f32.mrb[32].mxu1 }
0x5a42   :  { %v3691_v9 = vadd.f32 %v3677_v40, %v5582_v20  ;;  %v4657_v10 = vpop.f32.mrb[33].mxu1  ;;  %v3682_v15 = vrot.slane %v3677_v40, 6 }
0x5a44   :  { %v3693_v13 = vrot.slane %v3691_v9, 6  ;;  %v3684_v16 = vadd.f32 %v3682_v15, %v5817_v55 }
0x5a46   :  { %3694 = vrot.lane.b32.xlu0 %v3693_v13, %s5098_s13  ;;  %v4121_v17 = vmul.f32 -1.442695, %v3684_v16 }
0x5a48   :  { %5077 = vpow2.f32 %v4121_v17 }
0x5a52   :  { %v5078_v3 = vpop.eup %5077 }
0x5a53   :  { %v3688_v21 = vadd.f32 1.0, %v5078_v3  ;;  %v3962_v3 = vld [vmem:[%s5894_s9 + $0x8] sm:$0xff] }
0x5a55   :  { %5079 = vrcp.f32 %v3688_v21 }
0x5a5f   :  { %v5080_v22 = vpop.eup %5079 }
0x5ab8   :  { %v3695_v23 = vpop.permute.xlu0 %3694 }
0x5ab9   :  { %v3697_v26 = vmul.f32 %v5080_v22, %v3695_v23  ;;  %v3964_v23 = vld [vmem:[%s5894_s9 + $0x18] sm:$0xff] }
0x5abb   :  { %3699 = vrot.lane.b32.xlu1 %v3697_v26, %s5098_s13 }
0x5b2d   :  { %v3700_v43 = vpop.permute.xlu1 %3699 }
0x5b2e   :  { %v3702_v27 = vadd.f32 %v3700_v43, %v5817_v55  ;;  %v16_v43 = vstv %s5895_s10 }
0x5b2f   :  { %17 = vst [vmem:[#allocation3] sm:$0x1] %v16_v43 }
0x5b30   :  { %5081 = vtanh.f32 %v3702_v27 }
0x5b3a   :  { %v5082_v28 = vpop.eup %5081 }
0x5b3b   :  { %v3705_v31 = vrot.slane %v5082_v28, 2 }
0x5b3d   :  { %v3707_v6 = vsub.f32 %v3603_v5, %v3705_v31 }
0x5b3f   :  { %v3709_v32 = vrot.slane %v3707_v6, 6 }
0x5b41   :  { %3710 = vrot.lane.b32.xlu0 %v3709_v32, %s5099_s2 }
0x5bb3   :  { %v3711_v34 = vpop.permute.xlu0 %3710 }
0x5bb4   :  { %v3713_v49 = vmul.f32 %v5080_v22, %v3711_v34  ;;  %v3963_v22 = vld [vmem:[%s5894_s9 + $0x10] sm:$0xff] }
0x5bb5   :  { %v4895_v26 = vpack.c.bf16 %v3964_v23, %v3963_v22 }
0x5bb6   :  { %3715 = vrot.lane.b32.xlu1 %v3713_v49, %s5100_s18 }
0x5c28   :  { %v3716_v30 = vpop.permute.xlu1 %3715 }
0x5c29   :  { %v3718_v36 = vadd.f32 %v5082_v28, %v3716_v30 }
0x5c2b   :  { %v3724_v39 = vrot.slane %v3718_v36, 2 }
0x5c2d   :  { %3725 = vrot.lane.b32.xlu0 %v3724_v39, %s5098_s13 }
0x5c9f   :  { %v3726_v42 = vpop.permute.xlu0 %3725 }
0x5ca0   :  { %4667 = vmatmul.mubr.msk.f32.vlgmr.msra.gmra.mrb[34].mxu0 %vm159_vm4, %v3726_v42 }
0x5ca1   :  { %4688 = vmatprep.mubr.msk.f32.mxu0 %vm5096_vm2, %v5097_v8 }
0x5d73   :  { %v3795_v44 = vpop.f32.mrb[34].mxu0 }
0x5d74   :  { %v3809_v60 = vadd.f32 %v3795_v44, %v5582_v20  ;;  %v4668_v45 = vpop.f32.mrb[35].mxu0  ;;  %v3800_v48 = vrot.slane %v3795_v44, 4 }
0x5d76   :  { %v3811_v46 = vrot.slane %v3809_v60, 4  ;;  %v3802_v50 = vadd.f32 %v3800_v48, %v5817_v55 }
0x5d78   :  { %3812 = vrot.lane.b32.xlu1 %v3811_v46, %s5098_s13  ;;  %v4123_v51 = vmul.f32 -1.442695, %v3802_v50 }
0x5d7a   :  { %5083 = vpow2.f32 %v4123_v51 }
0x5d84   :  { %v5084_v52 = vpop.eup %5083 }
0x5d85   :  { %v3806_v53 = vadd.f32 1.0, %v5084_v52 }
0x5d87   :  { %5085 = vrcp.f32 %v3806_v53 }
0x5d91   :  { %v5086_v54 = vpop.eup %5085 }
0x5dea   :  { %v3813_v24 = vpop.permute.xlu1 %3812 }
0x5deb   :  { %v3815_v18 = vmul.f32 %v5086_v54, %v3813_v24 }
0x5ded   :  { %3817 = vrot.lane.b32.xlu0 %v3815_v18, %s5098_s13 }
0x5e5f   :  { %v3818_v8 = vpop.permute.xlu0 %3817 }
0x5e60   :  { %v3820_v56 = vadd.f32 %v3818_v8, %v5817_v55 }
0x5e62   :  { %5087 = vtanh.f32 %v3820_v56 }
0x5e6c   :  { %v5088_v19 = vpop.eup %5087 }
0x5e6d   :  { %v3823_v61 = vrot.slane %v5088_v19, 2 }
0x5e6f   :  { %v3825_v11 = vsub.f32 %v3718_v36, %v3823_v61 }
0x5e71   :  { %v3827_v57 = vrot.slane %v3825_v11, 6 }
0x5e73   :  { %3828 = vrot.lane.b32.xlu1 %v3827_v57, %s5099_s2 }
0x5ee5   :  { %v3829_v58 = vpop.permute.xlu1 %3828 }
0x5ee6   :  { %v3831_v12 = vmul.f32 %v5086_v54, %v3829_v58 }
0x5ee8   :  { %3833 = vrot.lane.b32.xlu0 %v3831_v12, %s5100_s18 }
0x5f5a   :  { %v3834_v41 = vpop.permute.xlu0 %3833 }
0x5f5b   :  { %v3836_v59 = vadd.f32 %v5088_v19, %v3834_v41 }
0x5f5d   :  { %v3842_v62 = vrot.slane %v3836_v59, 4 }
0x5f5f   :  { %3843 = vrot.lane.b32.xlu1 %v3842_v62, %s5098_s13 }
0x5fd1   :  { %v3844_v38 = vpop.permute.xlu1 %3843 }
0x5fd2   :  { %4678 = vmatmul.mubr.msk.f32.vlgmr.msra.gmra.mrb[34].mxu1 %vm159_vm4, %v3844_v38 }
0x60a5   :  { %v3913_v63 = vpop.f32.mrb[34].mxu1 }
0x60a6   :  { %v3927_v29 = vadd.f32 %v3913_v63, %v5582_v20  ;;  %v4679_v35 = vpop.f32.mrb[35].mxu1  ;;  %v3918_v33 = vrot.slane %v3913_v63, 2 }
0x60a8   :  { %v3929_v1 = vrot.slane %v3927_v29, 2  ;;  %v3920_v25 = vadd.f32 %v3918_v33, %v5817_v55 }
0x60aa   :  { %3930 = vrot.lane.b32.xlu0 %v3929_v1, %s5098_s13  ;;  %v4125_v14 = vmul.f32 -1.442695, %v3920_v25 }
0x60ac   :  { %5089 = vpow2.f32 %v4125_v14 }
0x60b6   :  { %v5090_v4 = vpop.eup %5089 }
0x60b7   :  { %v3924_v37 = vadd.f32 1.0, %v5090_v4 }
0x60b9   :  { %5091 = vrcp.f32 %v3924_v37 }
0x60c3   :  { %v5092_v2 = vpop.eup %5091 }
0x611c   :  { %v3931_v47 = vpop.permute.xlu0 %3930 }
0x611d   :  { %v3933_v5 = vmul.f32 %v5092_v2, %v3931_v47 }
0x611f   :  { %3935 = vrot.lane.b32.xlu1 %v3933_v5, %s5098_s13 }
0x6191   :  { %v3936_v7 = vpop.permute.xlu1 %3935 }
0x6192   :  { %v3938_v20 = vadd.f32 %v3936_v7, %v5817_v55  ;;  %v3961_v55 = vld [vmem:[%s5894_s9] sm:$0xff] }
0x6193   :  { %v4892_v21 = vpack.c.bf16 %v3962_v3, %v3961_v55 }
0x6194   :  { %5093 = vtanh.f32 %v3938_v20 }
0x6195   :  { %4893 = vmatpush3.bf16.msra.mxu0 %v4892_v21 }
0x6196   :  { %4894 = vmatprep.subr.bf16.mxu0 %v5095_v0  ;;  %v4126_v0 = vld [vmem:[#allocation3] ss:$0 sm:$0xff] }
0x6199   :  { %4896 = vmatpush3.bf16.msra.mxu0 %v4895_v26 }
0x619e   :  { %v5094_v40 = vpop.eup %5093 }
0x619f   :  { %v3941_v9 = vrot.slane %v5094_v40, 2 }
0x61a1   :  { %v3943_v10 = vsub.f32 %v3836_v59, %v3941_v9 }
0x61a3   :  { %v3945_v13 = vrot.slane %v3943_v10, 6 }
0x61a5   :  { %3946 = vrot.lane.b32.xlu0 %v3945_v13, %s5099_s2 }
0x61a9   :  { %3720 = vrot.lane.b32.xlu0 %v3718_v36, %s5098_s13 }
0x6217   :  { %v3947_v15 = vpop.permute.xlu0 %3946 }
0x6218   :  { %v3949_v16 = vmul.f32 %v5092_v2, %v3947_v15 }
0x621a   :  { %3951 = vrot.lane.b32.xlu1 %v3949_v16, %s5100_s18 }
0x621b   :  { %v3721_v17 = vpop.permute.xlu0 %3720 }
0x621c   :  { %3723 = vst.msk [vmem:[#allocation2] sm:$0xc] %vm391_vm5, %v3721_v17 }
0x621e   :  { %3838 = vrot.lane.b32.xlu1 %v3836_v59, %s5098_s13 }
0x628c   :  { %v3952_v27 = vpop.permute.xlu1 %3951 }
0x628d   :  { %v3954_v28 = vadd.f32 %v5094_v40, %v3952_v27 }
0x628f   :  { %3956 = vrot.lane.b32.xlu0 %v3954_v28, %s5098_s13 }
0x6290   :  { %v3839_v31 = vpop.permute.xlu1 %3838 }
0x6291   :  { %3841 = vst.msk [vmem:[#allocation2] sm:$0x30] %vm510_vm7, %v3839_v31 }
0x6301   :  { %v3957_v6 = vpop.permute.xlu0 %3956 }
0x6302   :  { %3959 = vst.msk [vmem:[#allocation2] sm:$0xc0] %vm629_vm6, %v3957_v6 }
0x6309   :  { %v3960_v32 = vld [vmem:[#allocation2] sm:$0xff] }
0x630a   :  { %4689 = vmatmul.mubr.msk.f32.vlgmr.msra.gmra.mrb[36].mxu0 %vm159_vm4, %v3960_v32 }
0x63dd   :  { %v4041_v34 = vpop.f32.mrb[36].mxu0 }
0x63de   :  { %v4042_v49 = vadd.f32 %v4126_v0, %v4041_v34  ;;  %v4690_v30 = vpop.f32.mrb[37].mxu0 }
0x63e0   :  { %4046 = vst.msk [vmem:[%s5896_s11] sm:$0xff] %vm4045_vm8, %v4042_v49 }

</bundles_post_ra>
